<compile_context>
chip_gen: v7x
topology: tpu7x:2x2x1
jax: 0.10.0
libtpu: 0.0.40
codegen_flags: <defaults>
</compile_context>

<pallas_src>
import functools

import jax
import jax.numpy as jnp
from jax.experimental import pallas as pl
from jax.experimental.pallas import tpu as pltpu

EPS = 1e-5
EXPANSION = 4
LANE = 128            # channel dims padded to a multiple of this
SUBLANE = 8
MAX_TM = 512          # row-tile size target (512-1024 ~ HBM roofline)
VMEM_LIMIT = 32 * 1024 * 1024


# ----------------------------- Pallas kernels ------------------------------ #

def _mm_bias_kernel(x_ref, w_ref, b_ref, o_ref, *, relu):
    acc = jnp.dot(x_ref[...], w_ref[...], preferred_element_type=jnp.float32)
    acc = acc + b_ref[...]
    if relu:
        acc = jnp.maximum(acc, 0.0)
    o_ref[...] = acc.astype(o_ref.dtype)


def _mm_bias_add_relu_kernel(x_ref, w_ref, b_ref, res_ref, o_ref):
    acc = jnp.dot(x_ref[...], w_ref[...], preferred_element_type=jnp.float32)
    acc = acc + b_ref[...] + res_ref[...].astype(jnp.float32)
    o_ref[...] = jnp.maximum(acc, 0.0).astype(o_ref.dtype)


def _mm_bias_proj_add_relu_kernel(x_ref, w_ref, b_ref,
                                  xs_ref, ws_ref, bs_ref, o_ref):
    # main path:  out2 @ w3 + b3
    acc = jnp.dot(x_ref[...], w_ref[...],
                  preferred_element_type=jnp.float32) + b_ref[...]
    # fused shortcut projection on the same row tile:  xs @ ws + bs
    sc = jnp.dot(xs_ref[...], ws_ref[...],
                 preferred_element_type=jnp.float32) + bs_ref[...]
    o_ref[...] = jnp.maximum(acc + sc, 0.0).astype(o_ref.dtype)


def _conv3x3_bias_relu_kernel(xpar_ref, w_ref, b_ref, o_ref, *, stride, Ho, Wo):
    # xpar_ref: (stride*stride, Hp, Wp, Cp) parity views of the zero-padded image
    # w_ref   : (9, Cp, Pp) per-tap BN-scaled weights
    # b_ref   : (1, Pp) f32 folded BN bias
    # o_ref   : (1, Ho, Wo, Pp)
    bias = b_ref[...]
    # TODO(synk): for large spatial dims, batch several output rows per matmul
    # instead of one small dot per (row, tap).
    for ho in range(Ho):
        acc = jnp.zeros((Wo, o_ref.shape[-1]), jnp.float32)
        for ky in range(3):
            for kx in range(3):
                p = (ky % stride) * stride + (kx % stride)
                oy, ox = ky // stride, kx // stride
                patch = xpar_ref[p, oy + ho, ox:ox + Wo, :]       # (Wo, Cp)
                acc = acc + jnp.dot(patch, w_ref[ky * 3 + kx],
                                    preferred_element_type=jnp.float32)
        o_ref[0, ho, :, :] = jnp.maximum(acc + bias, 0.0).astype(o_ref.dtype)


# ------------------------------ kernel wrappers ----------------------------- #

def _matmul_fused(x, w, b, *, relu=True, residual=None, proj=None,
                  out_dtype=jnp.bfloat16):
    """Row-tiled fused (Mp,K)@(K,N) + bias [+ residual | + shortcut matmul] [+ relu]."""
    Mp, K = x.shape
    N = w.shape[1]
    TM = Mp if Mp <= MAX_TM else MAX_TM
    assert Mp % TM == 0
    grid = (Mp // TM,)

    args = [x, w, b]
    in_specs = [
        pl.BlockSpec((TM, K), lambda i: (i, 0)),      # activation rows: tiled
        pl.BlockSpec((K, N), lambda i: (0, 0)),       # weights: resident
        pl.BlockSpec((1, N), lambda i: (0, 0)),       # bias: resident
    ]
    if proj is not None:
        xs, ws, bs = proj
        Ks = xs.shape[1]
        kernel = _mm_bias_proj_add_relu_kernel
        args += [xs, ws, bs]
        in_specs += [
            pl.BlockSpec((TM, Ks), lambda i: (i, 0)),
            pl.BlockSpec((Ks, N), lambda i: (0, 0)),
            pl.BlockSpec((1, N), lambda i: (0, 0)),
        ]
    elif residual is not None:
        kernel = _mm_bias_add_relu_kernel
        args.append(residual)
        in_specs.append(pl.BlockSpec((TM, N), lambda i: (i, 0)))
    else:
        kernel = functools.partial(_mm_bias_kernel, relu=relu)

    return pl.pallas_call(
        kernel,
        grid=grid,
        in_specs=in_specs,
        out_specs=pl.BlockSpec((TM, N), lambda i: (i, 0)),
        out_shape=jax.ShapeDtypeStruct((Mp, N), out_dtype),
        compiler_params=pltpu.CompilerParams(
            dimension_semantics=("parallel",),
            vmem_limit_bytes=VMEM_LIMIT),
    )(*args)


def _conv3x3_bn_relu(x_nhwc, w9, b, stride):
    """3x3 conv, pad=1, given stride.  x_nhwc: (N,H,W,Cp) bf16 -> (N,Ho,Wo,Pp) bf16."""
    N, H, W, Cp = x_nhwc.shape
    Pp = w9.shape[-1]
    Ho = (H + 2 - 3) // stride + 1
    Wo = (W + 2 - 3) // stride + 1
    s = stride
    Hp = Ho + 2 // s
    Wp = Wo + 2 // s

    xp = jnp.pad(x_nhwc, ((0, 0), (1, 1), (1, 1), (0, 0)))   # conv zero-padding
    if s == 1:
        xpar, npar = xp, 1                                    # (N, H+2, W+2, Cp)
    else:
        # Split the padded image into s*s parity views so every 3x3 tap becomes
        # a contiguous (unstrided) window inside the kernel. ~1x extra HBM pass,
        # vs 9x for a materialized im2col tensor.
        parts = []
        for py in range(s):
            for px in range(s):
                v = xp[:, py::s, px::s, :][:, :Hp, :Wp, :]
                v = jnp.pad(v, ((0, 0), (0, Hp - v.shape[1]),
                                (0, Wp - v.shape[2]), (0, 0)))
                parts.append(v)
        npar = s * s
        xpar = jnp.stack(parts, axis=1).reshape(N * npar, Hp, Wp, Cp)

    kernel = functools.partial(_conv3x3_bias_relu_kernel, stride=s, Ho=Ho, Wo=Wo)
    return pl.pallas_call(
        kernel,
        grid=(N,),
        in_specs=[
            pl.BlockSpec((npar, Hp, Wp, Cp), lambda n: (n, 0, 0, 0)),
            pl.BlockSpec((9, Cp, Pp), lambda n: (0, 0, 0)),
            pl.BlockSpec((1, Pp), lambda n: (0, 0)),
        ],
        out_specs=pl.BlockSpec((1, Ho, Wo, Pp), lambda n: (n, 0, 0, 0)),
        out_shape=jax.ShapeDtypeStruct((N, Ho, Wo, Pp), jnp.bfloat16),
        compiler_params=pltpu.CompilerParams(
            dimension_semantics=("parallel",),
            vmem_limit_bytes=VMEM_LIMIT),
    )(xpar, w9, b)


# ------------------------------- host-side glue ----------------------------- #

def _round_up(x, m):
    return (x + m - 1) // m * m


def _fold_bn(bn):
    """Fold BN (eval mode) into per-channel scale / bias."""
    scale = bn["gamma"] / jnp.sqrt(bn["var"] + EPS)
    bias = bn["beta"] - bn["mean"] * scale
    return scale, bias


def _prep_w(w_oi, scale, rows, cols):
    """(out,in) conv weight -> BN-scale folded, zero-padded (in_p,out_p), bf16."""
    m = w_oi.T * scale[None, :]
    m = jnp.pad(m, ((0, rows - m.shape[0]), (0, cols - m.shape[1])))
    return m.astype(jnp.bfloat16)


def _prep_b(bias, cols):
    return jnp.pad(bias, (0, cols - bias.shape[0])).reshape(1, cols).astype(jnp.float32)


def _pad_rows(x2d):
    """Pad rows so the M-tiling divides evenly (multiple of 8, or of MAX_TM)."""
    m = x2d.shape[0]
    mp = _round_up(m, SUBLANE) if m <= MAX_TM else _round_up(m, MAX_TM)
    if mp != m:
        x2d = jnp.pad(x2d, ((0, mp - m), (0, 0)))
    return x2d


def bottleneck_forward_nhwc(x, params, stride):
    N, H, W, Cin = x.shape
    planes = params["conv1_w"].shape[0]
    Cout = EXPANSION * planes
    Cin_p, Pp, Cout_p = (_round_up(c, LANE) for c in (Cin, planes, Cout))

    # Fold BN into weights/bias; pad channel dims to the 128-lane grid; bf16.
    s1, b1 = _fold_bn(params["bn1"])
    w1 = _prep_w(params["conv1_w"][:, :, 0, 0], s1, Cin_p, Pp)
    b1 = _prep_b(b1, Pp)

    s2, b2 = _fold_bn(params["bn2"])
    w2 = params["conv2_w"]                                          # (P, P, 3, 3)
    w2m = jnp.stack([_prep_w(w2[:, :, ky, kx], s2, Pp, Pp)
                     for ky in range(3) for kx in range(3)], axis=0)  # (9, Pp, Pp)
    b2 = _prep_b(b2, Pp)

    s3, b3 = _fold_bn(params["bn3"])
    w3 = _prep_w(params["conv3_w"][:, :, 0, 0], s3, Pp, Cout_p)
    b3 = _prep_b(b3, Cout_p)

    has_proj = (stride != 1) or (Cin != Cout)
    if has_proj:
        ss, bs = _fold_bn(params["short_bn"])
        ws = _prep_w(params["short_w"][:, :, 0, 0], ss, Cin_p, Cout_p)
        bs = _prep_b(bs, Cout_p)

    # Activations: channel-pad and cast to bf16 once (bf16 MXU in / f32 acc).
    xb = jnp.pad(x, ((0, 0), (0, 0), (0, 0), (0, Cin_p - Cin))).astype(jnp.bfloat16)

    # conv1 (1x1) + bn1 + relu  -- row-tiled fused matmul
    M1 = N * H * W
    o1 = _matmul_fused(_pad_rows(xb.reshape(M1, Cin_p)), w1, b1, relu=True)
    o1 = o1[:M1].reshape(N, H, W, Pp)

    # conv2 (3x3, stride, pad=1) + bn2 + relu  -- in-kernel 9-tap accumulation
    o2 = _conv3x3_bn_relu(o1, w2m, b2, stride)
    Ho, Wo = o2.shape[1], o2.shape[2]
    M2 = N * Ho * Wo
    o2 = _pad_rows(o2.reshape(M2, Pp))

    # conv3 (1x1) + bn3 + shortcut (+ its 1x1 projection + BN) + relu, one kernel
    if has_proj:
        xs = _pad_rows(xb[:, ::stride, ::stride, :].reshape(M2, Cin_p))
        out = _matmul_fused(o2, w3, b3, proj=(xs, ws, bs), out_dtype=jnp.float32)
    else:
        res = _pad_rows(xb.reshape(M2, Cout_p))
        out = _matmul_fused(o2, w3, b3, residual=res, out_dtype=jnp.float32)

    return out[:M2, :Cout].reshape(N, Ho, Wo, Cout)


def bottleneck_forward(x_nchw, params, stride):
    # TODO(synk): accepting/producing NHWC at the boundary would remove these
    # two standalone transposes (full HBM read+write each).
    x = jnp.transpose(x_nchw, (0, 2, 3, 1))
    out = bottleneck_forward_nhwc(x, params, stride)
    return jnp.transpose(out, (0, 3, 1, 2))


# ------------------------------ parameter init ------------------------------ #

def init_params(key, in_planes, planes):
    ks = jax.random.split(key, 12)
    cout = EXPANSION * planes

    def bn(k, c):
        k1, k2, k3, k4 = jax.random.split(k, 4)
        return {
            "gamma": jax.random.uniform(k1, (c,), jnp.float32, 0.5, 1.5),
            "beta": jax.random.normal(k2, (c,), jnp.float32) * 0.1,
            "mean": jax.random.normal(k3, (c,), jnp.float32) * 0.1,
            "var": jax.random.uniform(k4, (c,), jnp.float32, 0.5, 1.5),
        }

    return {
        "conv1_w": jax.random.normal(ks[0], (planes, in_planes, 1, 1), jnp.float32) * 0.2,
        "bn1": bn(ks[1], planes),
        "conv2_w": jax.random.normal(ks[2], (planes, planes, 3, 3), jnp.float32) * 0.1,
        "bn2": bn(ks[3], planes),
        "conv3_w": jax.random.normal(ks[4], (cout, planes, 1, 1), jnp.float32) * 0.2,
        "bn3": bn(ks[5], cout),
        "short_w": jax.random.normal(ks[6], (cout, in_planes, 1, 1), jnp.float32) * 0.2,
        "short_bn": bn(ks[7], cout),
    }


# --------------------------- pure-JAX reference ------------------------------ #

def _ref_bn(x_nchw, bn):
    g = bn["gamma"][None, :, None, None]
    b = bn["beta"][None, :, None, None]
    m = bn["mean"][None, :, None, None]
    v = bn["var"][None, :, None, None]
    return (x_nchw - m) / jnp.sqrt(v + EPS) * g + b


def _ref_conv(x, w, stride, pad):
    return jax.lax.conv_general_dilated(
        x, w, (stride, stride), [(pad, pad), (pad, pad)],
        dimension_numbers=("NCHW", "OIHW", "NCHW"))


def reference_forward(x, params, stride):
    out = jax.nn.relu(_ref_bn(_ref_conv(x, params["conv1_w"], 1, 0), params["bn1"]))
    out = jax.nn.relu(_ref_bn(_ref_conv(out, params["conv2_w"], stride, 1), params["bn2"]))
    out = _ref_bn(_ref_conv(out, params["conv3_w"], 1, 0), params["bn3"])
    sc = _ref_bn(_ref_conv(x, params["short_w"], stride, 0), params["short_bn"])
    return jax.nn.relu(out + sc)


# ----------------------------------- main ------------------------------------ #

if __name__ == "__main__":
    key = jax.random.PRNGKey(0)
    k_x, k_p = jax.random.split(key)

    batch, in_planes, planes, spatial, stride = 2, 8, 4, 8, 2
    x = jax.random.normal(k_x, (batch, in_planes, spatial, spatial), jnp.float32)
    params = init_params(k_p, in_planes, planes)

    fwd = jax.jit(bottleneck_forward, static_argnums=(2,))
    out = jax.block_until_ready(fwd(x, params, stride))

    ref = jax.block_until_ready(reference_forward(x, params, stride))
    assert out.shape == ref.shape == (batch, EXPANSION * planes,
                                      spatial // stride, spatial // stride)
    # bf16 MXU inputs (f32 accumulation) -> loosened tolerance vs the f32 reference.
    assert jnp.allclose(out, ref, rtol=5e-2, atol=5e-2), "mismatch vs JAX reference"

    print("KERNEL_OK")
</pallas_src>

<mosaic_0001>
module attributes {stable_mosaic.version = 11 : i64} {
  func.func @_mm_bias_kernel(%arg0: i32, %arg1: memref<128x128xbf16, #tpu.memory_space<vmem>>, %arg2: memref<128x128xbf16, #tpu.memory_space<vmem>>, %arg3: memref<1x128xf32, #tpu.memory_space<vmem>>, %arg4: memref<128x128xbf16, #tpu.memory_space<vmem>>) attributes {dimension_semantics = [#tpu.dimension_semantics<parallel>], iteration_bounds = array<i64: 1>, scalar_prefetch = 0 : i64, scratch_operands = 0 : i64, tpu.core_type = #tpu.core_type<tc>, window_params = [{transform_indices = @transform_0, window_bounds = array<i64: 128, 128>}, {pipeline_mode = #tpu.pipeline_mode<synchronous>, transform_indices = @transform_1, window_bounds = array<i64: 128, 128>}, {pipeline_mode = #tpu.pipeline_mode<synchronous>, transform_indices = @transform_2, window_bounds = array<i64: 1, 128>}, {transform_indices = @transform_3, window_bounds = array<i64: 128, 128>}]} {
    %c0 = arith.constant 0 : index
    %c0_0 = arith.constant 0 : index
    %0 = vector.load %arg1[%c0, %c0_0] : memref<128x128xbf16, #tpu.memory_space<vmem>>, vector<128x128xbf16>
    %c0_1 = arith.constant 0 : index
    %c0_2 = arith.constant 0 : index
    %1 = vector.load %arg2[%c0_1, %c0_2] : memref<128x128xbf16, #tpu.memory_space<vmem>>, vector<128x128xbf16>
    %cst = arith.constant dense<0.000000e+00> : vector<128x128xf32>
    %2 = tpu.matmul %0, %1, %cst {dimension_numbers = #tpu.dot_dimension_numbers<[1], [0], [0], [1], [0, 0, 1, 1], [], []>} : vector<128x128xbf16>, vector<128x128xbf16>, vector<128x128xf32> -> vector<128x128xf32>
    %c0_3 = arith.constant 0 : index
    %c0_4 = arith.constant 0 : index
    %3 = vector.load %arg3[%c0_3, %c0_4] : memref<1x128xf32, #tpu.memory_space<vmem>>, vector<1x128xf32>
    %4 = vector.broadcast %3 : vector<1x128xf32> to vector<128x128xf32>
    %5 = arith.addf %2, %4 : vector<128x128xf32>
    %cst_5 = arith.constant 0.000000e+00 : f32
    %6 = vector.broadcast %cst_5 : f32 to vector<128x128xf32>
    %7 = arith.maximumf %5, %6 : vector<128x128xf32>
    %8 = arith.truncf %7 : vector<128x128xf32> to vector<128x128xbf16>
    %c0_6 = arith.constant 0 : index
    %c0_7 = arith.constant 0 : index
    %9 = vector.load %arg4[%c0_6, %c0_7] : memref<128x128xbf16, #tpu.memory_space<vmem>>, vector<128x128xbf16>
    tpu.vector_store %arg4[%c0_6, %c0_7], %8 {strides = array<i32>} : memref<128x128xbf16, #tpu.memory_space<vmem>>, vector<128x128xbf16>,
    return
  }
  func.func @transform_0(%arg0: i32) -> (i32, i32) {
    %c0_i32 = arith.constant 0 : i32
    %c0_i32_0 = arith.constant 0 : i32
    return %arg0, %c0_i32 : i32, i32
  }
  func.func @transform_1(%arg0: i32) -> (i32, i32) {
    %c0_i32 = arith.constant 0 : i32
    %c0_i32_0 = arith.constant 0 : i32
    %c0_i32_1 = arith.constant 0 : i32
    return %c0_i32, %c0_i32_0 : i32, i32
  }
  func.func @transform_2(%arg0: i32) -> (i32, i32) {
    %c0_i32 = arith.constant 0 : i32
    %c0_i32_0 = arith.constant 0 : i32
    %c0_i32_1 = arith.constant 0 : i32
    return %c0_i32, %c0_i32_0 : i32, i32
  }
  func.func @transform_3(%arg0: i32) -> (i32, i32) {
    %c0_i32 = arith.constant 0 : i32
    %c0_i32_0 = arith.constant 0 : i32
    return %arg0, %c0_i32 : i32, i32
  }
}

module attributes {stable_mosaic.version = 11 : i64} {
  func.func @_conv3x3_bias_relu_kernel(%arg0: i32, %arg1: memref<4x5x5x128xbf16, #tpu.memory_space<vmem>>, %arg2: memref<9x128x128xbf16, #tpu.memory_space<vmem>>, %arg3: memref<1x128xf32, #tpu.memory_space<vmem>>, %arg4: memref<1x4x4x128xbf16, #tpu.memory_space<vmem>>) attributes {dimension_semantics = [#tpu.dimension_semantics<parallel>], iteration_bounds = array<i64: 2>, scalar_prefetch = 0 : i64, scratch_operands = 0 : i64, tpu.core_type = #tpu.core_type<tc>, window_params = [{transform_indices = @transform_0, window_bounds = array<i64: 4, 5, 5, 128>}, {pipeline_mode = #tpu.pipeline_mode<synchronous>, transform_indices = @transform_1, window_bounds = array<i64: 9, 128, 128>}, {pipeline_mode = #tpu.pipeline_mode<synchronous>, transform_indices = @transform_2, window_bounds = array<i64: 1, 128>}, {transform_indices = @transform_3, window_bounds = array<i64: 1, 4, 4, 128>}]} {
    %c0 = arith.constant 0 : index
    %c0_0 = arith.constant 0 : index
    %0 = vector.load %arg3[%c0, %c0_0] : memref<1x128xf32, #tpu.memory_space<vmem>>, vector<1x128xf32>
    %cst = arith.constant 0.000000e+00 : f32
    %1 = vector.broadcast %cst : f32 to vector<4x128xf32>
    %c0_1 = arith.constant 0 : index
    %c0_2 = arith.constant 0 : index
    %c0_3 = arith.constant 0 : index
    %c0_4 = arith.constant 0 : index
    %2 = vector.load %arg1[%c0_1, %c0_2, %c0_3, %c0_4] : memref<4x5x5x128xbf16, #tpu.memory_space<vmem>>, vector<1x1x4x128xbf16>
    %3 = vector.shape_cast %2 : vector<1x1x4x128xbf16> to vector<4x128xbf16>
    %c0_5 = arith.constant 0 : index
    %c0_6 = arith.constant 0 : index
    %c0_7 = arith.constant 0 : index
    %4 = vector.load %arg2[%c0_5, %c0_6, %c0_7] : memref<9x128x128xbf16, #tpu.memory_space<vmem>>, vector<1x128x128xbf16>
    %5 = vector.shape_cast %4 : vector<1x128x128xbf16> to vector<128x128xbf16>
    %cst_8 = arith.constant dense<0.000000e+00> : vector<4x128xf32>
    %6 = tpu.matmul %3, %5, %cst_8 {dimension_numbers = #tpu.dot_dimension_numbers<[1], [0], [0], [1], [0, 0, 1, 1], [], []>} : vector<4x128xbf16>, vector<128x128xbf16>, vector<4x128xf32> -> vector<4x128xf32>
    %7 = arith.addf %1, %6 : vector<4x128xf32>
    %c1 = arith.constant 1 : index
    %c0_9 = arith.constant 0 : index
    %c0_10 = arith.constant 0 : index
    %c0_11 = arith.constant 0 : index
    %8 = vector.load %arg1[%c1, %c0_9, %c0_10, %c0_11] : memref<4x5x5x128xbf16, #tpu.memory_space<vmem>>, vector<1x1x4x128xbf16>
    %9 = vector.shape_cast %8 : vector<1x1x4x128xbf16> to vector<4x128xbf16>
    %c1_12 = arith.constant 1 : index
    %c0_13 = arith.constant 0 : index
    %c0_14 = arith.constant 0 : index
    %10 = vector.load %arg2[%c1_12, %c0_13, %c0_14] : memref<9x128x128xbf16, #tpu.memory_space<vmem>>, vector<1x128x128xbf16>
    %11 = vector.shape_cast %10 : vector<1x128x128xbf16> to vector<128x128xbf16>
    %cst_15 = arith.constant dense<0.000000e+00> : vector<4x128xf32>
    %12 = tpu.matmul %9, %11, %cst_15 {dimension_numbers = #tpu.dot_dimension_numbers<[1], [0], [0], [1], [0, 0, 1, 1], [], []>} : vector<4x128xbf16>, vector<128x128xbf16>, vector<4x128xf32> -> vector<4x128xf32>
    %13 = arith.addf %7, %12 : vector<4x128xf32>
    %c0_16 = arith.constant 0 : index
    %c0_17 = arith.constant 0 : index
    %c1_18 = arith.constant 1 : index
    %c0_19 = arith.constant 0 : index
    %14 = vector.load %arg1[%c0_16, %c0_17, %c1_18, %c0_19] : memref<4x5x5x128xbf16, #tpu.memory_space<vmem>>, vector<1x1x4x128xbf16>
    %15 = vector.shape_cast %14 : vector<1x1x4x128xbf16> to vector<4x128xbf16>
    %c2 = arith.constant 2 : index
    %c0_20 = arith.constant 0 : index
    %c0_21 = arith.constant 0 : index
    %16 = vector.load %arg2[%c2, %c0_20, %c0_21] : memref<9x128x128xbf16, #tpu.memory_space<vmem>>, vector<1x128x128xbf16>
    %17 = vector.shape_cast %16 : vector<1x128x128xbf16> to vector<128x128xbf16>
    %cst_22 = arith.constant dense<0.000000e+00> : vector<4x128xf32>
    %18 = tpu.matmul %15, %17, %cst_22 {dimension_numbers = #tpu.dot_dimension_numbers<[1], [0], [0], [1], [0, 0, 1, 1], [], []>} : vector<4x128xbf16>, vector<128x128xbf16>, vector<4x128xf32> -> vector<4x128xf32>
    %19 = arith.addf %13, %18 : vector<4x128xf32>
    %c2_23 = arith.constant 2 : index
    %c0_24 = arith.constant 0 : index
    %c0_25 = arith.constant 0 : index
    %c0_26 = arith.constant 0 : index
    %20 = vector.load %arg1[%c2_23, %c0_24, %c0_25, %c0_26] : memref<4x5x5x128xbf16, #tpu.memory_space<vmem>>, vector<1x1x4x128xbf16>
    %21 = vector.shape_cast %20 : vector<1x1x4x128xbf16> to vector<4x128xbf16>
    %c3 = arith.constant 3 : index
    %c0_27 = arith.constant 0 : index
    %c0_28 = arith.constant 0 : index
    %22 = vector.load %arg2[%c3, %c0_27, %c0_28] : memref<9x128x128xbf16, #tpu.memory_space<vmem>>, vector<1x128x128xbf16>
    %23 = vector.shape_cast %22 : vector<1x128x128xbf16> to vector<128x128xbf16>
    %cst_29 = arith.constant dense<0.000000e+00> : vector<4x128xf32>
    %24 = tpu.matmul %21, %23, %cst_29 {dimension_numbers = #tpu.dot_dimension_numbers<[1], [0], [0], [1], [0, 0, 1, 1], [], []>} : vector<4x128xbf16>, vector<128x128xbf16>, vector<4x128xf32> -> vector<4x128xf32>
    %25 = arith.addf %19, %24 : vector<4x128xf32>
    %c3_30 = arith.constant 3 : index
    %c0_31 = arith.constant 0 : index
    %c0_32 = arith.constant 0 : index
    %c0_33 = arith.constant 0 : index
    %26 = vector.load %arg1[%c3_30, %c0_31, %c0_32, %c0_33] : memref<4x5x5x128xbf16, #tpu.memory_space<vmem>>, vector<1x1x4x128xbf16>
    %27 = vector.shape_cast %26 : vector<1x1x4x128xbf16> to vector<4x128xbf16>
    %c4 = arith.constant 4 : index
    %c0_34 = arith.constant 0 : index
    %c0_35 = arith.constant 0 : index
    %28 = vector.load %arg2[%c4, %c0_34, %c0_35] : memref<9x128x128xbf16, #tpu.memory_space<vmem>>, vector<1x128x128xbf16>
    %29 = vector.shape_cast %28 : vector<1x128x128xbf16> to vector<128x128xbf16>
    %cst_36 = arith.constant dense<0.000000e+00> : vector<4x128xf32>
    %30 = tpu.matmul %27, %29, %cst_36 {dimension_numbers = #tpu.dot_dimension_numbers<[1], [0], [0], [1], [0, 0, 1, 1], [], []>} : vector<4x128xbf16>, vector<128x128xbf16>, vector<4x128xf32> -> vector<4x128xf32>
    %31 = arith.addf %25, %30 : vector<4x128xf32>
    %c2_37 = arith.constant 2 : index
    %c0_38 = arith.constant 0 : index
    %c1_39 = arith.constant 1 : index
    %c0_40 = arith.constant 0 : index
    %32 = vector.load %arg1[%c2_37, %c0_38, %c1_39, %c0_40] : memref<4x5x5x128xbf16, #tpu.memory_space<vmem>>, vector<1x1x4x128xbf16>
    %33 = vector.shape_cast %32 : vector<1x1x4x128xbf16> to vector<4x128xbf16>
    %c5 = arith.constant 5 : index
    %c0_41 = arith.constant 0 : index
    %c0_42 = arith.constant 0 : index
    %34 = vector.load %arg2[%c5, %c0_41, %c0_42] : memref<9x128x128xbf16, #tpu.memory_space<vmem>>, vector<1x128x128xbf16>
    %35 = vector.shape_cast %34 : vector<1x128x128xbf16> to vector<128x128xbf16>
    %cst_43 = arith.constant dense<0.000000e+00> : vector<4x128xf32>
    %36 = tpu.matmul %33, %35, %cst_43 {dimension_numbers = #tpu.dot_dimension_numbers<[1], [0], [0], [1], [0, 0, 1, 1], [], []>} : vector<4x128xbf16>, vector<128x128xbf16>, vector<4x128xf32> -> vector<4x128xf32>
    %37 = arith.addf %31, %36 : vector<4x128xf32>
    %c0_44 = arith.constant 0 : index
    %c1_45 = arith.constant 1 : index
    %c0_46 = arith.constant 0 : index
    %c0_47 = arith.constant 0 : index
    %38 = vector.load %arg1[%c0_44, %c1_45, %c0_46, %c0_47] : memref<4x5x5x128xbf16, #tpu.memory_space<vmem>>, vector<1x1x4x128xbf16>
    %39 = vector.shape_cast %38 : vector<1x1x4x128xbf16> to vector<4x128xbf16>
    %c6 = arith.constant 6 : index
    %c0_48 = arith.constant 0 : index
    %c0_49 = arith.constant 0 : index
    %40 = vector.load %arg2[%c6, %c0_48, %c0_49] : memref<9x128x128xbf16, #tpu.memory_space<vmem>>, vector<1x128x128xbf16>
    %41 = vector.shape_cast %40 : vector<1x128x128xbf16> to vector<128x128xbf16>
    %cst_50 = arith.constant dense<0.000000e+00> : vector<4x128xf32>
    %42 = tpu.matmul %39, %41, %cst_50 {dimension_numbers = #tpu.dot_dimension_numbers<[1], [0], [0], [1], [0, 0, 1, 1], [], []>} : vector<4x128xbf16>, vector<128x128xbf16>, vector<4x128xf32> -> vector<4x128xf32>
    %43 = arith.addf %37, %42 : vector<4x128xf32>
    %c1_51 = arith.constant 1 : index
    %c1_52 = arith.constant 1 : index
    %c0_53 = arith.constant 0 : index
    %c0_54 = arith.constant 0 : index
    %44 = vector.load %arg1[%c1_51, %c1_52, %c0_53, %c0_54] : memref<4x5x5x128xbf16, #tpu.memory_space<vmem>>, vector<1x1x4x128xbf16>
    %45 = vector.shape_cast %44 : vector<1x1x4x128xbf16> to vector<4x128xbf16>
    %c7 = arith.constant 7 : index
    %c0_55 = arith.constant 0 : index
    %c0_56 = arith.constant 0 : index
    %46 = vector.load %arg2[%c7, %c0_55, %c0_56] : memref<9x128x128xbf16, #tpu.memory_space<vmem>>, vector<1x128x128xbf16>
    %47 = vector.shape_cast %46 : vector<1x128x128xbf16> to vector<128x128xbf16>
    %cst_57 = arith.constant dense<0.000000e+00> : vector<4x128xf32>
    %48 = tpu.matmul %45, %47, %cst_57 {dimension_numbers = #tpu.dot_dimension_numbers<[1], [0], [0], [1], [0, 0, 1, 1], [], []>} : vector<4x128xbf16>, vector<128x128xbf16>, vector<4x128xf32> -> vector<4x128xf32>
    %49 = arith.addf %43, %48 : vector<4x128xf32>
    %c0_58 = arith.constant 0 : index
    %c1_59 = arith.constant 1 : index
    %c1_60 = arith.constant 1 : index
    %c0_61 = arith.constant 0 : index
    %50 = vector.load %arg1[%c0_58, %c1_59, %c1_60, %c0_61] : memref<4x5x5x128xbf16, #tpu.memory_space<vmem>>, vector<1x1x4x128xbf16>
    %51 = vector.shape_cast %50 : vector<1x1x4x128xbf16> to vector<4x128xbf16>
    %c8 = arith.constant 8 : index
    %c0_62 = arith.constant 0 : index
    %c0_63 = arith.constant 0 : index
    %52 = vector.load %arg2[%c8, %c0_62, %c0_63] : memref<9x128x128xbf16, #tpu.memory_space<vmem>>, vector<1x128x128xbf16>
    %53 = vector.shape_cast %52 : vector<1x128x128xbf16> to vector<128x128xbf16>
    %cst_64 = arith.constant dense<0.000000e+00> : vector<4x128xf32>
    %54 = tpu.matmul %51, %53, %cst_64 {dimension_numbers = #tpu.dot_dimension_numbers<[1], [0], [0], [1], [0, 0, 1, 1], [], []>} : vector<4x128xbf16>, vector<128x128xbf16>, vector<4x128xf32> -> vector<4x128xf32>
    %55 = arith.addf %49, %54 : vector<4x128xf32>
    %56 = vector.broadcast %0 : vector<1x128xf32> to vector<4x128xf32>
    %57 = arith.addf %55, %56 : vector<4x128xf32>
    %cst_65 = arith.constant 0.000000e+00 : f32
    %58 = vector.broadcast %cst_65 : f32 to vector<4x128xf32>
    %59 = arith.maximumf %57, %58 : vector<4x128xf32>
    %60 = arith.truncf %59 : vector<4x128xf32> to vector<4x128xbf16>
    %c0_66 = arith.constant 0 : index
    %c0_67 = arith.constant 0 : index
    %c0_68 = arith.constant 0 : index
    %c0_69 = arith.constant 0 : index
    %61 = vector.load %arg4[%c0_66, %c0_67, %c0_68, %c0_69] : memref<1x4x4x128xbf16, #tpu.memory_space<vmem>>, vector<1x1x4x128xbf16>
    %62 = vector.shape_cast %61 : vector<1x1x4x128xbf16> to vector<4x128xbf16>
    %63 = vector.shape_cast %60 : vector<4x128xbf16> to vector<1x1x4x128xbf16>
    tpu.vector_store %arg4[%c0_66, %c0_67, %c0_68, %c0_69], %63 {strides = array<i32>} : memref<1x4x4x128xbf16, #tpu.memory_space<vmem>>, vector<1x1x4x128xbf16>,
    %cst_70 = arith.constant 0.000000e+00 : f32
    %64 = vector.broadcast %cst_70 : f32 to vector<4x128xf32>
    %c0_71 = arith.constant 0 : index
    %c1_72 = arith.constant 1 : index
    %c0_73 = arith.constant 0 : index
    %c0_74 = arith.constant 0 : index
    %65 = vector.load %arg1[%c0_71, %c1_72, %c0_73, %c0_74] : memref<4x5x5x128xbf16, #tpu.memory_space<vmem>>, vector<1x1x4x128xbf16>
    %66 = vector.shape_cast %65 : vector<1x1x4x128xbf16> to vector<4x128xbf16>
    %c0_75 = arith.constant 0 : index
    %c0_76 = arith.constant 0 : index
    %c0_77 = arith.constant 0 : index
    %67 = vector.load %arg2[%c0_75, %c0_76, %c0_77] : memref<9x128x128xbf16, #tpu.memory_space<vmem>>, vector<1x128x128xbf16>
    %68 = vector.shape_cast %67 : vector<1x128x128xbf16> to vector<128x128xbf16>
    %cst_78 = arith.constant dense<0.000000e+00> : vector<4x128xf32>
    %69 = tpu.matmul %66, %68, %cst_78 {dimension_numbers = #tpu.dot_dimension_numbers<[1], [0], [0], [1], [0, 0, 1, 1], [], []>} : vector<4x128xbf16>, vector<128x128xbf16>, vector<4x128xf32> -> vector<4x128xf32>
    %70 = arith.addf %64, %69 : vector<4x128xf32>
    %c1_79 = arith.constant 1 : index
    %c1_80 = arith.constant 1 : index
    %c0_81 = arith.constant 0 : index
    %c0_82 = arith.constant 0 : index
    %71 = vector.load %arg1[%c1_79, %c1_80, %c0_81, %c0_82] : memref<4x5x5x128xbf16, #tpu.memory_space<vmem>>, vector<1x1x4x128xbf16>
    %72 = vector.shape_cast %71 : vector<1x1x4x128xbf16> to vector<4x128xbf16>
    %c1_83 = arith.constant 1 : index
    %c0_84 = arith.constant 0 : index
    %c0_85 = arith.constant 0 : index
    %73 = vector.load %arg2[%c1_83, %c0_84, %c0_85] : memref<9x128x128xbf16, #tpu.memory_space<vmem>>, vector<1x128x128xbf16>
    %74 = vector.shape_cast %73 : vector<1x128x128xbf16> to vector<128x128xbf16>
    %cst_86 = arith.constant dense<0.000000e+00> : vector<4x128xf32>
    %75 = tpu.matmul %72, %74, %cst_86 {dimension_numbers = #tpu.dot_dimension_numbers<[1], [0], [0], [1], [0, 0, 1, 1], [], []>} : vector<4x128xbf16>, vector<128x128xbf16>, vector<4x128xf32> -> vector<4x128xf32>
    %76 = arith.addf %70, %75 : vector<4x128xf32>
    %c0_87 = arith.constant 0 : index
    %c1_88 = arith.constant 1 : index
    %c1_89 = arith.constant 1 : index
    %c0_90 = arith.constant 0 : index
    %77 = vector.load %arg1[%c0_87, %c1_88, %c1_89, %c0_90] : memref<4x5x5x128xbf16, #tpu.memory_space<vmem>>, vector<1x1x4x128xbf16>
    %78 = vector.shape_cast %77 : vector<1x1x4x128xbf16> to vector<4x128xbf16>
    %c2_91 = arith.constant 2 : index
    %c0_92 = arith.constant 0 : index
    %c0_93 = arith.constant 0 : index
    %79 = vector.load %arg2[%c2_91, %c0_92, %c0_93] : memref<9x128x128xbf16, #tpu.memory_space<vmem>>, vector<1x128x128xbf16>
    %80 = vector.shape_cast %79 : vector<1x128x128xbf16> to vector<128x128xbf16>
    %cst_94 = arith.constant dense<0.000000e+00> : vector<4x128xf32>
    %81 = tpu.matmul %78, %80, %cst_94 {dimension_numbers = #tpu.dot_dimension_numbers<[1], [0], [0], [1], [0, 0, 1, 1], [], []>} : vector<4x128xbf16>, vector<128x128xbf16>, vector<4x128xf32> -> vector<4x128xf32>
    %82 = arith.addf %76, %81 : vector<4x128xf32>
    %c2_95 = arith.constant 2 : index
    %c1_96 = arith.constant 1 : index
    %c0_97 = arith.constant 0 : index
    %c0_98 = arith.constant 0 : index
    %83 = vector.load %arg1[%c2_95, %c1_96, %c0_97, %c0_98] : memref<4x5x5x128xbf16, #tpu.memory_space<vmem>>, vector<1x1x4x128xbf16>
    %84 = vector.shape_cast %83 : vector<1x1x4x128xbf16> to vector<4x128xbf16>
    %c3_99 = arith.constant 3 : index
    %c0_100 = arith.constant 0 : index
    %c0_101 = arith.constant 0 : index
    %85 = vector.load %arg2[%c3_99, %c0_100, %c0_101] : memref<9x128x128xbf16, #tpu.memory_space<vmem>>, vector<1x128x128xbf16>
    %86 = vector.shape_cast %85 : vector<1x128x128xbf16> to vector<128x128xbf16>
    %cst_102 = arith.constant dense<0.000000e+00> : vector<4x128xf32>
    %87 = tpu.matmul %84, %86, %cst_102 {dimension_numbers = #tpu.dot_dimension_numbers<[1], [0], [0], [1], [0, 0, 1, 1], [], []>} : vector<4x128xbf16>, vector<128x128xbf16>, vector<4x128xf32> -> vector<4x128xf32>
    %88 = arith.addf %82, %87 : vector<4x128xf32>
    %c3_103 = arith.constant 3 : index
    %c1_104 = arith.constant 1 : index
    %c0_105 = arith.constant 0 : index
    %c0_106 = arith.constant 0 : index
    %89 = vector.load %arg1[%c3_103, %c1_104, %c0_105, %c0_106] : memref<4x5x5x128xbf16, #tpu.memory_space<vmem>>, vector<1x1x4x128xbf16>
    %90 = vector.shape_cast %89 : vector<1x1x4x128xbf16> to vector<4x128xbf16>
    %c4_107 = arith.constant 4 : index
    %c0_108 = arith.constant 0 : index
    %c0_109 = arith.constant 0 : index
    %91 = vector.load %arg2[%c4_107, %c0_108, %c0_109] : memref<9x128x128xbf16, #tpu.memory_space<vmem>>, vector<1x128x128xbf16>
    %92 = vector.shape_cast %91 : vector<1x128x128xbf16> to vector<128x128xbf16>
    %cst_110 = arith.constant dense<0.000000e+00> : vector<4x128xf32>
    %93 = tpu.matmul %90, %92, %cst_110 {dimension_numbers = #tpu.dot_dimension_numbers<[1], [0], [0], [1], [0, 0, 1, 1], [], []>} : vector<4x128xbf16>, vector<128x128xbf16>, vector<4x128xf32> -> vector<4x128xf32>
    %94 = arith.addf %88, %93 : vector<4x128xf32>
    %c2_111 = arith.constant 2 : index
    %c1_112 = arith.constant 1 : index
    %c1_113 = arith.constant 1 : index
    %c0_114 = arith.constant 0 : index
    %95 = vector.load %arg1[%c2_111, %c1_112, %c1_113, %c0_114] : memref<4x5x5x128xbf16, #tpu.memory_space<vmem>>, vector<1x1x4x128xbf16>
    %96 = vector.shape_cast %95 : vector<1x1x4x128xbf16> to vector<4x128xbf16>
    %c5_115 = arith.constant 5 : index
    %c0_116 = arith.constant 0 : index
    %c0_117 = arith.constant 0 : index
    %97 = vector.load %arg2[%c5_115, %c0_116, %c0_117] : memref<9x128x128xbf16, #tpu.memory_space<vmem>>, vector<1x128x128xbf16>
    %98 = vector.shape_cast %97 : vector<1x128x128xbf16> to vector<128x128xbf16>
    %cst_118 = arith.constant dense<0.000000e+00> : vector<4x128xf32>
    %99 = tpu.matmul %96, %98, %cst_118 {dimension_numbers = #tpu.dot_dimension_numbers<[1], [0], [0], [1], [0, 0, 1, 1], [], []>} : vector<4x128xbf16>, vector<128x128xbf16>, vector<4x128xf32> -> vector<4x128xf32>
    %100 = arith.addf %94, %99 : vector<4x128xf32>
    %c0_119 = arith.constant 0 : index
    %c2_120 = arith.constant 2 : index
    %c0_121 = arith.constant 0 : index
    %c0_122 = arith.constant 0 : index
    %101 = vector.load %arg1[%c0_119, %c2_120, %c0_121, %c0_122] : memref<4x5x5x128xbf16, #tpu.memory_space<vmem>>, vector<1x1x4x128xbf16>
    %102 = vector.shape_cast %101 : vector<1x1x4x128xbf16> to vector<4x128xbf16>
    %c6_123 = arith.constant 6 : index
    %c0_124 = arith.constant 0 : index
    %c0_125 = arith.constant 0 : index
    %103 = vector.load %arg2[%c6_123, %c0_124, %c0_125] : memref<9x128x128xbf16, #tpu.memory_space<vmem>>, vector<1x128x128xbf16>
    %104 = vector.shape_cast %103 : vector<1x128x128xbf16> to vector<128x128xbf16>
    %cst_126 = arith.constant dense<0.000000e+00> : vector<4x128xf32>
    %105 = tpu.matmul %102, %104, %cst_126 {dimension_numbers = #tpu.dot_dimension_numbers<[1], [0], [0], [1], [0, 0, 1, 1], [], []>} : vector<4x128xbf16>, vector<128x128xbf16>, vector<4x128xf32> -> vector<4x128xf32>
    %106 = arith.addf %100, %105 : vector<4x128xf32>
    %c1_127 = arith.constant 1 : index
    %c2_128 = arith.constant 2 : index
    %c0_129 = arith.constant 0 : index
    %c0_130 = arith.constant 0 : index
    %107 = vector.load %arg1[%c1_127, %c2_128, %c0_129, %c0_130] : memref<4x5x5x128xbf16, #tpu.memory_space<vmem>>, vector<1x1x4x128xbf16>
    %108 = vector.shape_cast %107 : vector<1x1x4x128xbf16> to vector<4x128xbf16>
    %c7_131 = arith.constant 7 : index
    %c0_132 = arith.constant 0 : index
    %c0_133 = arith.constant 0 : index
    %109 = vector.load %arg2[%c7_131, %c0_132, %c0_133] : memref<9x128x128xbf16, #tpu.memory_space<vmem>>, vector<1x128x128xbf16>
    %110 = vector.shape_cast %109 : vector<1x128x128xbf16> to vector<128x128xbf16>
    %cst_134 = arith.constant dense<0.000000e+00> : vector<4x128xf32>
    %111 = tpu.matmul %108, %110, %cst_134 {dimension_numbers = #tpu.dot_dimension_numbers<[1], [0], [0], [1], [0, 0, 1, 1], [], []>} : vector<4x128xbf16>, vector<128x128xbf16>, vector<4x128xf32> -> vector<4x128xf32>
    %112 = arith.addf %106, %111 : vector<4x128xf32>
    %c0_135 = arith.constant 0 : index
    %c2_136 = arith.constant 2 : index
    %c1_137 = arith.constant 1 : index
    %c0_138 = arith.constant 0 : index
    %113 = vector.load %arg1[%c0_135, %c2_136, %c1_137, %c0_138] : memref<4x5x5x128xbf16, #tpu.memory_space<vmem>>, vector<1x1x4x128xbf16>
    %114 = vector.shape_cast %113 : vector<1x1x4x128xbf16> to vector<4x128xbf16>
    %c8_139 = arith.constant 8 : index
    %c0_140 = arith.constant 0 : index
    %c0_141 = arith.constant 0 : index
    %115 = vector.load %arg2[%c8_139, %c0_140, %c0_141] : memref<9x128x128xbf16, #tpu.memory_space<vmem>>, vector<1x128x128xbf16>
    %116 = vector.shape_cast %115 : vector<1x128x128xbf16> to vector<128x128xbf16>
    %cst_142 = arith.constant dense<0.000000e+00> : vector<4x128xf32>
    %117 = tpu.matmul %114, %116, %cst_142 {dimension_numbers = #tpu.dot_dimension_numbers<[1], [0], [0], [1], [0, 0, 1, 1], [], []>} : vector<4x128xbf16>, vector<128x128xbf16>, vector<4x128xf32> -> vector<4x128xf32>
    %118 = arith.addf %112, %117 : vector<4x128xf32>
    %119 = vector.broadcast %0 : vector<1x128xf32> to vector<4x128xf32>
    %120 = arith.addf %118, %119 : vector<4x128xf32>
    %cst_143 = arith.constant 0.000000e+00 : f32
    %121 = vector.broadcast %cst_143 : f32 to vector<4x128xf32>
    %122 = arith.maximumf %120, %121 : vector<4x128xf32>
    %123 = arith.truncf %122 : vector<4x128xf32> to vector<4x128xbf16>
    %c0_144 = arith.constant 0 : index
    %c1_145 = arith.constant 1 : index
    %c0_146 = arith.constant 0 : index
    %c0_147 = arith.constant 0 : index
    %124 = vector.load %arg4[%c0_144, %c1_145, %c0_146, %c0_147] : memref<1x4x4x128xbf16, #tpu.memory_space<vmem>>, vector<1x1x4x128xbf16>
    %125 = vector.shape_cast %124 : vector<1x1x4x128xbf16> to vector<4x128xbf16>
    %126 = vector.shape_cast %123 : vector<4x128xbf16> to vector<1x1x4x128xbf16>
    tpu.vector_store %arg4[%c0_144, %c1_145, %c0_146, %c0_147], %126 {strides = array<i32>} : memref<1x4x4x128xbf16, #tpu.memory_space<vmem>>, vector<1x1x4x128xbf16>,
    %cst_148 = arith.constant 0.000000e+00 : f32
    %127 = vector.broadcast %cst_148 : f32 to vector<4x128xf32>
    %c0_149 = arith.constant 0 : index
    %c2_150 = arith.constant 2 : index
    %c0_151 = arith.constant 0 : index
    %c0_152 = arith.constant 0 : index
    %128 = vector.load %arg1[%c0_149, %c2_150, %c0_151, %c0_152] : memref<4x5x5x128xbf16, #tpu.memory_space<vmem>>, vector<1x1x4x128xbf16>
    %129 = vector.shape_cast %128 : vector<1x1x4x128xbf16> to vector<4x128xbf16>
    %c0_153 = arith.constant 0 : index
    %c0_154 = arith.constant 0 : index
    %c0_155 = arith.constant 0 : index
    %130 = vector.load %arg2[%c0_153, %c0_154, %c0_155] : memref<9x128x128xbf16, #tpu.memory_space<vmem>>, vector<1x128x128xbf16>
    %131 = vector.shape_cast %130 : vector<1x128x128xbf16> to vector<128x128xbf16>
    %cst_156 = arith.constant dense<0.000000e+00> : vector<4x128xf32>
    %132 = tpu.matmul %129, %131, %cst_156 {dimension_numbers = #tpu.dot_dimension_numbers<[1], [0], [0], [1], [0, 0, 1, 1], [], []>} : vector<4x128xbf16>, vector<128x128xbf16>, vector<4x128xf32> -> vector<4x128xf32>
    %133 = arith.addf %127, %132 : vector<4x128xf32>
    %c1_157 = arith.constant 1 : index
    %c2_158 = arith.constant 2 : index
    %c0_159 = arith.constant 0 : index
    %c0_160 = arith.constant 0 : index
    %134 = vector.load %arg1[%c1_157, %c2_158, %c0_159, %c0_160] : memref<4x5x5x128xbf16, #tpu.memory_space<vmem>>, vector<1x1x4x128xbf16>
    %135 = vector.shape_cast %134 : vector<1x1x4x128xbf16> to vector<4x128xbf16>
    %c1_161 = arith.constant 1 : index
    %c0_162 = arith.constant 0 : index
    %c0_163 = arith.constant 0 : index
    %136 = vector.load %arg2[%c1_161, %c0_162, %c0_163] : memref<9x128x128xbf16, #tpu.memory_space<vmem>>, vector<1x128x128xbf16>
    %137 = vector.shape_cast %136 : vector<1x128x128xbf16> to vector<128x128xbf16>
    %cst_164 = arith.constant dense<0.000000e+00> : vector<4x128xf32>
    %138 = tpu.matmul %135, %137, %cst_164 {dimension_numbers = #tpu.dot_dimension_numbers<[1], [0], [0], [1], [0, 0, 1, 1], [], []>} : vector<4x128xbf16>, vector<128x128xbf16>, vector<4x128xf32> -> vector<4x128xf32>
    %139 = arith.addf %133, %138 : vector<4x128xf32>
    %c0_165 = arith.constant 0 : index
    %c2_166 = arith.constant 2 : index
    %c1_167 = arith.constant 1 : index
    %c0_168 = arith.constant 0 : index
    %140 = vector.load %arg1[%c0_165, %c2_166, %c1_167, %c0_168] : memref<4x5x5x128xbf16, #tpu.memory_space<vmem>>, vector<1x1x4x128xbf16>
    %141 = vector.shape_cast %140 : vector<1x1x4x128xbf16> to vector<4x128xbf16>
    %c2_169 = arith.constant 2 : index
    %c0_170 = arith.constant 0 : index
    %c0_171 = arith.constant 0 : index
    %142 = vector.load %arg2[%c2_169, %c0_170, %c0_171] : memref<9x128x128xbf16, #tpu.memory_space<vmem>>, vector<1x128x128xbf16>
    %143 = vector.shape_cast %142 : vector<1x128x128xbf16> to vector<128x128xbf16>
    %cst_172 = arith.constant dense<0.000000e+00> : vector<4x128xf32>
    %144 = tpu.matmul %141, %143, %cst_172 {dimension_numbers = #tpu.dot_dimension_numbers<[1], [0], [0], [1], [0, 0, 1, 1], [], []>} : vector<4x128xbf16>, vector<128x128xbf16>, vector<4x128xf32> -> vector<4x128xf32>
    %145 = arith.addf %139, %144 : vector<4x128xf32>
    %c2_173 = arith.constant 2 : index
    %c2_174 = arith.constant 2 : index
    %c0_175 = arith.constant 0 : index
    %c0_176 = arith.constant 0 : index
    %146 = vector.load %arg1[%c2_173, %c2_174, %c0_175, %c0_176] : memref<4x5x5x128xbf16, #tpu.memory_space<vmem>>, vector<1x1x4x128xbf16>
    %147 = vector.shape_cast %146 : vector<1x1x4x128xbf16> to vector<4x128xbf16>
    %c3_177 = arith.constant 3 : index
    %c0_178 = arith.constant 0 : index
    %c0_179 = arith.constant 0 : index
    %148 = vector.load %arg2[%c3_177, %c0_178, %c0_179] : memref<9x128x128xbf16, #tpu.memory_space<vmem>>, vector<1x128x128xbf16>
    %149 = vector.shape_cast %148 : vector<1x128x128xbf16> to vector<128x128xbf16>
    %cst_180 = arith.constant dense<0.000000e+00> : vector<4x128xf32>
    %150 = tpu.matmul %147, %149, %cst_180 {dimension_numbers = #tpu.dot_dimension_numbers<[1], [0], [0], [1], [0, 0, 1, 1], [], []>} : vector<4x128xbf16>, vector<128x128xbf16>, vector<4x128xf32> -> vector<4x128xf32>
    %151 = arith.addf %145, %150 : vector<4x128xf32>
    %c3_181 = arith.constant 3 : index
    %c2_182 = arith.constant 2 : index
    %c0_183 = arith.constant 0 : index
    %c0_184 = arith.constant 0 : index
    %152 = vector.load %arg1[%c3_181, %c2_182, %c0_183, %c0_184] : memref<4x5x5x128xbf16, #tpu.memory_space<vmem>>, vector<1x1x4x128xbf16>
    %153 = vector.shape_cast %152 : vector<1x1x4x128xbf16> to vector<4x128xbf16>
    %c4_185 = arith.constant 4 : index
    %c0_186 = arith.constant 0 : index
    %c0_187 = arith.constant 0 : index
    %154 = vector.load %arg2[%c4_185, %c0_186, %c0_187] : memref<9x128x128xbf16, #tpu.memory_space<vmem>>, vector<1x128x128xbf16>
    %155 = vector.shape_cast %154 : vector<1x128x128xbf16> to vector<128x128xbf16>
    %cst_188 = arith.constant dense<0.000000e+00> : vector<4x128xf32>
    %156 = tpu.matmul %153, %155, %cst_188 {dimension_numbers = #tpu.dot_dimension_numbers<[1], [0], [0], [1], [0, 0, 1, 1], [], []>} : vector<4x128xbf16>, vector<128x128xbf16>, vector<4x128xf32> -> vector<4x128xf32>
    %157 = arith.addf %151, %156 : vector<4x128xf32>
    %c2_189 = arith.constant 2 : index
    %c2_190 = arith.constant 2 : index
    %c1_191 = arith.constant 1 : index
    %c0_192 = arith.constant 0 : index
    %158 = vector.load %arg1[%c2_189, %c2_190, %c1_191, %c0_192] : memref<4x5x5x128xbf16, #tpu.memory_space<vmem>>, vector<1x1x4x128xbf16>
    %159 = vector.shape_cast %158 : vector<1x1x4x128xbf16> to vector<4x128xbf16>
    %c5_193 = arith.constant 5 : index
    %c0_194 = arith.constant 0 : index
    %c0_195 = arith.constant 0 : index
    %160 = vector.load %arg2[%c5_193, %c0_194, %c0_195] : memref<9x128x128xbf16, #tpu.memory_space<vmem>>, vector<1x128x128xbf16>
    %161 = vector.shape_cast %160 : vector<1x128x128xbf16> to vector<128x128xbf16>
    %cst_196 = arith.constant dense<0.000000e+00> : vector<4x128xf32>
    %162 = tpu.matmul %159, %161, %cst_196 {dimension_numbers = #tpu.dot_dimension_numbers<[1], [0], [0], [1], [0, 0, 1, 1], [], []>} : vector<4x128xbf16>, vector<128x128xbf16>, vector<4x128xf32> -> vector<4x128xf32>
    %163 = arith.addf %157, %162 : vector<4x128xf32>
    %c0_197 = arith.constant 0 : index
    %c3_198 = arith.constant 3 : index
    %c0_199 = arith.constant 0 : index
    %c0_200 = arith.constant 0 : index
    %164 = vector.load %arg1[%c0_197, %c3_198, %c0_199, %c0_200] : memref<4x5x5x128xbf16, #tpu.memory_space<vmem>>, vector<1x1x4x128xbf16>
    %165 = vector.shape_cast %164 : vector<1x1x4x128xbf16> to vector<4x128xbf16>
    %c6_201 = arith.constant 6 : index
    %c0_202 = arith.constant 0 : index
    %c0_203 = arith.constant 0 : index
    %166 = vector.load %arg2[%c6_201, %c0_202, %c0_203] : memref<9x128x128xbf16, #tpu.memory_space<vmem>>, vector<1x128x128xbf16>
    %167 = vector.shape_cast %166 : vector<1x128x128xbf16> to vector<128x128xbf16>
    %cst_204 = arith.constant dense<0.000000e+00> : vector<4x128xf32>
    %168 = tpu.matmul %165, %167, %cst_204 {dimension_numbers = #tpu.dot_dimension_numbers<[1], [0], [0], [1], [0, 0, 1, 1], [], []>} : vector<4x128xbf16>, vector<128x128xbf16>, vector<4x128xf32> -> vector<4x128xf32>
    %169 = arith.addf %163, %168 : vector<4x128xf32>
    %c1_205 = arith.constant 1 : index
    %c3_206 = arith.constant 3 : index
    %c0_207 = arith.constant 0 : index
    %c0_208 = arith.constant 0 : index
    %170 = vector.load %arg1[%c1_205, %c3_206, %c0_207, %c0_208] : memref<4x5x5x128xbf16, #tpu.memory_space<vmem>>, vector<1x1x4x128xbf16>
    %171 = vector.shape_cast %170 : vector<1x1x4x128xbf16> to vector<4x128xbf16>
    %c7_209 = arith.constant 7 : index
    %c0_210 = arith.constant 0 : index
    %c0_211 = arith.constant 0 : index
    %172 = vector.load %arg2[%c7_209, %c0_210, %c0_211] : memref<9x128x128xbf16, #tpu.memory_space<vmem>>, vector<1x128x128xbf16>
    %173 = vector.shape_cast %172 : vector<1x128x128xbf16> to vector<128x128xbf16>
    %cst_212 = arith.constant dense<0.000000e+00> : vector<4x128xf32>
    %174 = tpu.matmul %171, %173, %cst_212 {dimension_numbers = #tpu.dot_dimension_numbers<[1], [0], [0], [1], [0, 0, 1, 1], [], []>} : vector<4x128xbf16>, vector<128x128xbf16>, vector<4x128xf32> -> vector<4x128xf32>
    %175 = arith.addf %169, %174 : vector<4x128xf32>
    %c0_213 = arith.constant 0 : index
    %c3_214 = arith.constant 3 : index
    %c1_215 = arith.constant 1 : index
    %c0_216 = arith.constant 0 : index
    %176 = vector.load %arg1[%c0_213, %c3_214, %c1_215, %c0_216] : memref<4x5x5x128xbf16, #tpu.memory_space<vmem>>, vector<1x1x4x128xbf16>
    %177 = vector.shape_cast %176 : vector<1x1x4x128xbf16> to vector<4x128xbf16>
    %c8_217 = arith.constant 8 : index
    %c0_218 = arith.constant 0 : index
    %c0_219 = arith.constant 0 : index
    %178 = vector.load %arg2[%c8_217, %c0_218, %c0_219] : memref<9x128x128xbf16, #tpu.memory_space<vmem>>, vector<1x128x128xbf16>
    %179 = vector.shape_cast %178 : vector<1x128x128xbf16> to vector<128x128xbf16>
    %cst_220 = arith.constant dense<0.000000e+00> : vector<4x128xf32>
    %180 = tpu.matmul %177, %179, %cst_220 {dimension_numbers = #tpu.dot_dimension_numbers<[1], [0], [0], [1], [0, 0, 1, 1], [], []>} : vector<4x128xbf16>, vector<128x128xbf16>, vector<4x128xf32> -> vector<4x128xf32>
    %181 = arith.addf %175, %180 : vector<4x128xf32>
    %182 = vector.broadcast %0 : vector<1x128xf32> to vector<4x128xf32>
    %183 = arith.addf %181, %182 : vector<4x128xf32>
    %cst_221 = arith.constant 0.000000e+00 : f32
    %184 = vector.broadcast %cst_221 : f32 to vector<4x128xf32>
    %185 = arith.maximumf %183, %184 : vector<4x128xf32>
    %186 = arith.truncf %185 : vector<4x128xf32> to vector<4x128xbf16>
    %c0_222 = arith.constant 0 : index
    %c2_223 = arith.constant 2 : index
    %c0_224 = arith.constant 0 : index
    %c0_225 = arith.constant 0 : index
    %187 = vector.load %arg4[%c0_222, %c2_223, %c0_224, %c0_225] : memref<1x4x4x128xbf16, #tpu.memory_space<vmem>>, vector<1x1x4x128xbf16>
    %188 = vector.shape_cast %187 : vector<1x1x4x128xbf16> to vector<4x128xbf16>
    %189 = vector.shape_cast %186 : vector<4x128xbf16> to vector<1x1x4x128xbf16>
    tpu.vector_store %arg4[%c0_222, %c2_223, %c0_224, %c0_225], %189 {strides = array<i32>} : memref<1x4x4x128xbf16, #tpu.memory_space<vmem>>, vector<1x1x4x128xbf16>,
    %cst_226 = arith.constant 0.000000e+00 : f32
    %190 = vector.broadcast %cst_226 : f32 to vector<4x128xf32>
    %c0_227 = arith.constant 0 : index
    %c3_228 = arith.constant 3 : index
    %c0_229 = arith.constant 0 : index
    %c0_230 = arith.constant 0 : index
    %191 = vector.load %arg1[%c0_227, %c3_228, %c0_229, %c0_230] : memref<4x5x5x128xbf16, #tpu.memory_space<vmem>>, vector<1x1x4x128xbf16>
    %192 = vector.shape_cast %191 : vector<1x1x4x128xbf16> to vector<4x128xbf16>
    %c0_231 = arith.constant 0 : index
    %c0_232 = arith.constant 0 : index
    %c0_233 = arith.constant 0 : index
    %193 = vector.load %arg2[%c0_231, %c0_232, %c0_233] : memref<9x128x128xbf16, #tpu.memory_space<vmem>>, vector<1x128x128xbf16>
    %194 = vector.shape_cast %193 : vector<1x128x128xbf16> to vector<128x128xbf16>
    %cst_234 = arith.constant dense<0.000000e+00> : vector<4x128xf32>
    %195 = tpu.matmul %192, %194, %cst_234 {dimension_numbers = #tpu.dot_dimension_numbers<[1], [0], [0], [1], [0, 0, 1, 1], [], []>} : vector<4x128xbf16>, vector<128x128xbf16>, vector<4x128xf32> -> vector<4x128xf32>
    %196 = arith.addf %190, %195 : vector<4x128xf32>
    %c1_235 = arith.constant 1 : index
    %c3_236 = arith.constant 3 : index
    %c0_237 = arith.constant 0 : index
    %c0_238 = arith.constant 0 : index
    %197 = vector.load %arg1[%c1_235, %c3_236, %c0_237, %c0_238] : memref<4x5x5x128xbf16, #tpu.memory_space<vmem>>, vector<1x1x4x128xbf16>
    %198 = vector.shape_cast %197 : vector<1x1x4x128xbf16> to vector<4x128xbf16>
    %c1_239 = arith.constant 1 : index
    %c0_240 = arith.constant 0 : index
    %c0_241 = arith.constant 0 : index
    %199 = vector.load %arg2[%c1_239, %c0_240, %c0_241] : memref<9x128x128xbf16, #tpu.memory_space<vmem>>, vector<1x128x128xbf16>
    %200 = vector.shape_cast %199 : vector<1x128x128xbf16> to vector<128x128xbf16>
    %cst_242 = arith.constant dense<0.000000e+00> : vector<4x128xf32>
    %201 = tpu.matmul %198, %200, %cst_242 {dimension_numbers = #tpu.dot_dimension_numbers<[1], [0], [0], [1], [0, 0, 1, 1], [], []>} : vector<4x128xbf16>, vector<128x128xbf16>, vector<4x128xf32> -> vector<4x128xf32>
    %202 = arith.addf %196, %201 : vector<4x128xf32>
    %c0_243 = arith.constant 0 : index
    %c3_244 = arith.constant 3 : index
    %c1_245 = arith.constant 1 : index
    %c0_246 = arith.constant 0 : index
    %203 = vector.load %arg1[%c0_243, %c3_244, %c1_245, %c0_246] : memref<4x5x5x128xbf16, #tpu.memory_space<vmem>>, vector<1x1x4x128xbf16>
    %204 = vector.shape_cast %203 : vector<1x1x4x128xbf16> to vector<4x128xbf16>
    %c2_247 = arith.constant 2 : index
    %c0_248 = arith.constant 0 : index
    %c0_249 = arith.constant 0 : index
    %205 = vector.load %arg2[%c2_247, %c0_248, %c0_249] : memref<9x128x128xbf16, #tpu.memory_space<vmem>>, vector<1x128x128xbf16>
    %206 = vector.shape_cast %205 : vector<1x128x128xbf16> to vector<128x128xbf16>
    %cst_250 = arith.constant dense<0.000000e+00> : vector<4x128xf32>
    %207 = tpu.matmul %204, %206, %cst_250 {dimension_numbers = #tpu.dot_dimension_numbers<[1], [0], [0], [1], [0, 0, 1, 1], [], []>} : vector<4x128xbf16>, vector<128x128xbf16>, vector<4x128xf32> -> vector<4x128xf32>
    %208 = arith.addf %202, %207 : vector<4x128xf32>
    %c2_251 = arith.constant 2 : index
    %c3_252 = arith.constant 3 : index
    %c0_253 = arith.constant 0 : index
    %c0_254 = arith.constant 0 : index
    %209 = vector.load %arg1[%c2_251, %c3_252, %c0_253, %c0_254] : memref<4x5x5x128xbf16, #tpu.memory_space<vmem>>, vector<1x1x4x128xbf16>
    %210 = vector.shape_cast %209 : vector<1x1x4x128xbf16> to vector<4x128xbf16>
    %c3_255 = arith.constant 3 : index
    %c0_256 = arith.constant 0 : index
    %c0_257 = arith.constant 0 : index
    %211 = vector.load %arg2[%c3_255, %c0_256, %c0_257] : memref<9x128x128xbf16, #tpu.memory_space<vmem>>, vector<1x128x128xbf16>
    %212 = vector.shape_cast %211 : vector<1x128x128xbf16> to vector<128x128xbf16>
    %cst_258 = arith.constant dense<0.000000e+00> : vector<4x128xf32>
    %213 = tpu.matmul %210, %212, %cst_258 {dimension_numbers = #tpu.dot_dimension_numbers<[1], [0], [0], [1], [0, 0, 1, 1], [], []>} : vector<4x128xbf16>, vector<128x128xbf16>, vector<4x128xf32> -> vector<4x128xf32>
    %214 = arith.addf %208, %213 : vector<4x128xf32>
    %c3_259 = arith.constant 3 : index
    %c3_260 = arith.constant 3 : index
    %c0_261 = arith.constant 0 : index
    %c0_262 = arith.constant 0 : index
    %215 = vector.load %arg1[%c3_259, %c3_260, %c0_261, %c0_262] : memref<4x5x5x128xbf16, #tpu.memory_space<vmem>>, vector<1x1x4x128xbf16>
    %216 = vector.shape_cast %215 : vector<1x1x4x128xbf16> to vector<4x128xbf16>
    %c4_263 = arith.constant 4 : index
    %c0_264 = arith.constant 0 : index
    %c0_265 = arith.constant 0 : index
    %217 = vector.load %arg2[%c4_263, %c0_264, %c0_265] : memref<9x128x128xbf16, #tpu.memory_space<vmem>>, vector<1x128x128xbf16>
    %218 = vector.shape_cast %217 : vector<1x128x128xbf16> to vector<128x128xbf16>
    %cst_266 = arith.constant dense<0.000000e+00> : vector<4x128xf32>
    %219 = tpu.matmul %216, %218, %cst_266 {dimension_numbers = #tpu.dot_dimension_numbers<[1], [0], [0], [1], [0, 0, 1, 1], [], []>} : vector<4x128xbf16>, vector<128x128xbf16>, vector<4x128xf32> -> vector<4x128xf32>
    %220 = arith.addf %214, %219 : vector<4x128xf32>
    %c2_267 = arith.constant 2 : index
    %c3_268 = arith.constant 3 : index
    %c1_269 = arith.constant 1 : index
    %c0_270 = arith.constant 0 : index
    %221 = vector.load %arg1[%c2_267, %c3_268, %c1_269, %c0_270] : memref<4x5x5x128xbf16, #tpu.memory_space<vmem>>, vector<1x1x4x128xbf16>
    %222 = vector.shape_cast %221 : vector<1x1x4x128xbf16> to vector<4x128xbf16>
    %c5_271 = arith.constant 5 : index
    %c0_272 = arith.constant 0 : index
    %c0_273 = arith.constant 0 : index
    %223 = vector.load %arg2[%c5_271, %c0_272, %c0_273] : memref<9x128x128xbf16, #tpu.memory_space<vmem>>, vector<1x128x128xbf16>
    %224 = vector.shape_cast %223 : vector<1x128x128xbf16> to vector<128x128xbf16>
    %cst_274 = arith.constant dense<0.000000e+00> : vector<4x128xf32>
    %225 = tpu.matmul %222, %224, %cst_274 {dimension_numbers = #tpu.dot_dimension_numbers<[1], [0], [0], [1], [0, 0, 1, 1], [], []>} : vector<4x128xbf16>, vector<128x128xbf16>, vector<4x128xf32> -> vector<4x128xf32>
    %226 = arith.addf %220, %225 : vector<4x128xf32>
    %c0_275 = arith.constant 0 : index
    %c4_276 = arith.constant 4 : index
    %c0_277 = arith.constant 0 : index
    %c0_278 = arith.constant 0 : index
    %227 = vector.load %arg1[%c0_275, %c4_276, %c0_277, %c0_278] : memref<4x5x5x128xbf16, #tpu.memory_space<vmem>>, vector<1x1x4x128xbf16>
    %228 = vector.shape_cast %227 : vector<1x1x4x128xbf16> to vector<4x128xbf16>
    %c6_279 = arith.constant 6 : index
    %c0_280 = arith.constant 0 : index
    %c0_281 = arith.constant 0 : index
    %229 = vector.load %arg2[%c6_279, %c0_280, %c0_281] : memref<9x128x128xbf16, #tpu.memory_space<vmem>>, vector<1x128x128xbf16>
    %230 = vector.shape_cast %229 : vector<1x128x128xbf16> to vector<128x128xbf16>
    %cst_282 = arith.constant dense<0.000000e+00> : vector<4x128xf32>
    %231 = tpu.matmul %228, %230, %cst_282 {dimension_numbers = #tpu.dot_dimension_numbers<[1], [0], [0], [1], [0, 0, 1, 1], [], []>} : vector<4x128xbf16>, vector<128x128xbf16>, vector<4x128xf32> -> vector<4x128xf32>
    %232 = arith.addf %226, %231 : vector<4x128xf32>
    %c1_283 = arith.constant 1 : index
    %c4_284 = arith.constant 4 : index
    %c0_285 = arith.constant 0 : index
    %c0_286 = arith.constant 0 : index
    %233 = vector.load %arg1[%c1_283, %c4_284, %c0_285, %c0_286] : memref<4x5x5x128xbf16, #tpu.memory_space<vmem>>, vector<1x1x4x128xbf16>
    %234 = vector.shape_cast %233 : vector<1x1x4x128xbf16> to vector<4x128xbf16>
    %c7_287 = arith.constant 7 : index
    %c0_288 = arith.constant 0 : index
    %c0_289 = arith.constant 0 : index
    %235 = vector.load %arg2[%c7_287, %c0_288, %c0_289] : memref<9x128x128xbf16, #tpu.memory_space<vmem>>, vector<1x128x128xbf16>
    %236 = vector.shape_cast %235 : vector<1x128x128xbf16> to vector<128x128xbf16>
    %cst_290 = arith.constant dense<0.000000e+00> : vector<4x128xf32>
    %237 = tpu.matmul %234, %236, %cst_290 {dimension_numbers = #tpu.dot_dimension_numbers<[1], [0], [0], [1], [0, 0, 1, 1], [], []>} : vector<4x128xbf16>, vector<128x128xbf16>, vector<4x128xf32> -> vector<4x128xf32>
    %238 = arith.addf %232, %237 : vector<4x128xf32>
    %c0_291 = arith.constant 0 : index
    %c4_292 = arith.constant 4 : index
    %c1_293 = arith.constant 1 : index
    %c0_294 = arith.constant 0 : index
    %239 = vector.load %arg1[%c0_291, %c4_292, %c1_293, %c0_294] : memref<4x5x5x128xbf16, #tpu.memory_space<vmem>>, vector<1x1x4x128xbf16>
    %240 = vector.shape_cast %239 : vector<1x1x4x128xbf16> to vector<4x128xbf16>
    %c8_295 = arith.constant 8 : index
    %c0_296 = arith.constant 0 : index
    %c0_297 = arith.constant 0 : index
    %241 = vector.load %arg2[%c8_295, %c0_296, %c0_297] : memref<9x128x128xbf16, #tpu.memory_space<vmem>>, vector<1x128x128xbf16>
    %242 = vector.shape_cast %241 : vector<1x128x128xbf16> to vector<128x128xbf16>
    %cst_298 = arith.constant dense<0.000000e+00> : vector<4x128xf32>
    %243 = tpu.matmul %240, %242, %cst_298 {dimension_numbers = #tpu.dot_dimension_numbers<[1], [0], [0], [1], [0, 0, 1, 1], [], []>} : vector<4x128xbf16>, vector<128x128xbf16>, vector<4x128xf32> -> vector<4x128xf32>
    %244 = arith.addf %238, %243 : vector<4x128xf32>
    %245 = vector.broadcast %0 : vector<1x128xf32> to vector<4x128xf32>
    %246 = arith.addf %244, %245 : vector<4x128xf32>
    %cst_299 = arith.constant 0.000000e+00 : f32
    %247 = vector.broadcast %cst_299 : f32 to vector<4x128xf32>
    %248 = arith.maximumf %246, %247 : vector<4x128xf32>
    %249 = arith.truncf %248 : vector<4x128xf32> to vector<4x128xbf16>
    %c0_300 = arith.constant 0 : index
    %c3_301 = arith.constant 3 : index
    %c0_302 = arith.constant 0 : index
    %c0_303 = arith.constant 0 : index
    %250 = vector.load %arg4[%c0_300, %c3_301, %c0_302, %c0_303] : memref<1x4x4x128xbf16, #tpu.memory_space<vmem>>, vector<1x1x4x128xbf16>
    %251 = vector.shape_cast %250 : vector<1x1x4x128xbf16> to vector<4x128xbf16>
    %252 = vector.shape_cast %249 : vector<4x128xbf16> to vector<1x1x4x128xbf16>
    tpu.vector_store %arg4[%c0_300, %c3_301, %c0_302, %c0_303], %252 {strides = array<i32>} : memref<1x4x4x128xbf16, #tpu.memory_space<vmem>>, vector<1x1x4x128xbf16>,
    return
  }
  func.func @transform_0(%arg0: i32) -> (i32, i32, i32, i32) {
    %c0_i32 = arith.constant 0 : i32
    %c0_i32_0 = arith.constant 0 : i32
    %c0_i32_1 = arith.constant 0 : i32
    %c0_i32_2 = arith.constant 0 : i32
    return %arg0, %c0_i32, %c0_i32_0, %c0_i32_1 : i32, i32, i32, i32
  }
  func.func @transform_1(%arg0: i32) -> (i32, i32, i32) {
    %c0_i32 = arith.constant 0 : i32
    %c0_i32_0 = arith.constant 0 : i32
    %c0_i32_1 = arith.constant 0 : i32
    %c0_i32_2 = arith.constant 0 : i32
    return %c0_i32, %c0_i32_0, %c0_i32_1 : i32, i32, i32
  }
  func.func @transform_2(%arg0: i32) -> (i32, i32) {
    %c0_i32 = arith.constant 0 : i32
    %c0_i32_0 = arith.constant 0 : i32
    %c0_i32_1 = arith.constant 0 : i32
    return %c0_i32, %c0_i32_0 : i32, i32
  }
  func.func @transform_3(%arg0: i32) -> (i32, i32, i32, i32) {
    %c0_i32 = arith.constant 0 : i32
    %c0_i32_0 = arith.constant 0 : i32
    %c0_i32_1 = arith.constant 0 : i32
    %c0_i32_2 = arith.constant 0 : i32
    return %arg0, %c0_i32, %c0_i32_0, %c0_i32_1 : i32, i32, i32, i32
  }
}

module attributes {stable_mosaic.version = 11 : i64} {
  func.func @_mm_bias_proj_add_relu_kernel(%arg0: i32, %arg1: memref<32x128xbf16, #tpu.memory_space<vmem>>, %arg2: memref<128x128xbf16, #tpu.memory_space<vmem>>, %arg3: memref<1x128xf32, #tpu.memory_space<vmem>>, %arg4: memref<32x128xbf16, #tpu.memory_space<vmem>>, %arg5: memref<128x128xbf16, #tpu.memory_space<vmem>>, %arg6: memref<1x128xf32, #tpu.memory_space<vmem>>, %arg7: memref<32x128xf32, #tpu.memory_space<vmem>>) attributes {dimension_semantics = [#tpu.dimension_semantics<parallel>], iteration_bounds = array<i64: 1>, scalar_prefetch = 0 : i64, scratch_operands = 0 : i64, tpu.core_type = #tpu.core_type<tc>, window_params = [{transform_indices = @transform_0, window_bounds = array<i64: 32, 128>}, {pipeline_mode = #tpu.pipeline_mode<synchronous>, transform_indices = @transform_1, window_bounds = array<i64: 128, 128>}, {pipeline_mode = #tpu.pipeline_mode<synchronous>, transform_indices = @transform_2, window_bounds = array<i64: 1, 128>}, {transform_indices = @transform_3, window_bounds = array<i64: 32, 128>}, {pipeline_mode = #tpu.pipeline_mode<synchronous>, transform_indices = @transform_4, window_bounds = array<i64: 128, 128>}, {pipeline_mode = #tpu.pipeline_mode<synchronous>, transform_indices = @transform_5, window_bounds = array<i64: 1, 128>}, {transform_indices = @transform_6, window_bounds = array<i64: 32, 128>}]} {
    %c0 = arith.constant 0 : index
    %c0_0 = arith.constant 0 : index
    %0 = vector.load %arg1[%c0, %c0_0] : memref<32x128xbf16, #tpu.memory_space<vmem>>, vector<32x128xbf16>
    %c0_1 = arith.constant 0 : index
    %c0_2 = arith.constant 0 : index
    %1 = vector.load %arg2[%c0_1, %c0_2] : memref<128x128xbf16, #tpu.memory_space<vmem>>, vector<128x128xbf16>
    %cst = arith.constant dense<0.000000e+00> : vector<32x128xf32>
    %2 = tpu.matmul %0, %1, %cst {dimension_numbers = #tpu.dot_dimension_numbers<[1], [0], [0], [1], [0, 0, 1, 1], [], []>} : vector<32x128xbf16>, vector<128x128xbf16>, vector<32x128xf32> -> vector<32x128xf32>
    %c0_3 = arith.constant 0 : index
    %c0_4 = arith.constant 0 : index
    %3 = vector.load %arg3[%c0_3, %c0_4] : memref<1x128xf32, #tpu.memory_space<vmem>>, vector<1x128xf32>
    %4 = vector.broadcast %3 : vector<1x128xf32> to vector<32x128xf32>
    %5 = arith.addf %2, %4 : vector<32x128xf32>
    %c0_5 = arith.constant 0 : index
    %c0_6 = arith.constant 0 : index
    %6 = vector.load %arg4[%c0_5, %c0_6] : memref<32x128xbf16, #tpu.memory_space<vmem>>, vector<32x128xbf16>
    %c0_7 = arith.constant 0 : index
    %c0_8 = arith.constant 0 : index
    %7 = vector.load %arg5[%c0_7, %c0_8] : memref<128x128xbf16, #tpu.memory_space<vmem>>, vector<128x128xbf16>
    %cst_9 = arith.constant dense<0.000000e+00> : vector<32x128xf32>
    %8 = tpu.matmul %6, %7, %cst_9 {dimension_numbers = #tpu.dot_dimension_numbers<[1], [0], [0], [1], [0, 0, 1, 1], [], []>} : vector<32x128xbf16>, vector<128x128xbf16>, vector<32x128xf32> -> vector<32x128xf32>
    %c0_10 = arith.constant 0 : index
    %c0_11 = arith.constant 0 : index
    %9 = vector.load %arg6[%c0_10, %c0_11] : memref<1x128xf32, #tpu.memory_space<vmem>>, vector<1x128xf32>
    %10 = vector.broadcast %9 : vector<1x128xf32> to vector<32x128xf32>
    %11 = arith.addf %8, %10 : vector<32x128xf32>
    %12 = arith.addf %5, %11 : vector<32x128xf32>
    %cst_12 = arith.constant 0.000000e+00 : f32
    %13 = vector.broadcast %cst_12 : f32 to vector<32x128xf32>
    %14 = arith.maximumf %12, %13 : vector<32x128xf32>
    %c0_13 = arith.constant 0 : index
    %c0_14 = arith.constant 0 : index
    %15 = vector.load %arg7[%c0_13, %c0_14] : memref<32x128xf32, #tpu.memory_space<vmem>>, vector<32x128xf32>
    tpu.vector_store %arg7[%c0_13, %c0_14], %14 {strides = array<i32>} : memref<32x128xf32, #tpu.memory_space<vmem>>, vector<32x128xf32>,
    return
  }
  func.func @transform_0(%arg0: i32) -> (i32, i32) {
    %c0_i32 = arith.constant 0 : i32
    %c0_i32_0 = arith.constant 0 : i32
    return %arg0, %c0_i32 : i32, i32
  }
  func.func @transform_1(%arg0: i32) -> (i32, i32) {
    %c0_i32 = arith.constant 0 : i32
    %c0_i32_0 = arith.constant 0 : i32
    %c0_i32_1 = arith.constant 0 : i32
    return %c0_i32, %c0_i32_0 : i32, i32
  }
  func.func @transform_2(%arg0: i32) -> (i32, i32) {
    %c0_i32 = arith.constant 0 : i32
    %c0_i32_0 = arith.constant 0 : i32
    %c0_i32_1 = arith.constant 0 : i32
    return %c0_i32, %c0_i32_0 : i32, i32
  }
  func.func @transform_3(%arg0: i32) -> (i32, i32) {
    %c0_i32 = arith.constant 0 : i32
    %c0_i32_0 = arith.constant 0 : i32
    return %arg0, %c0_i32 : i32, i32
  }
  func.func @transform_4(%arg0: i32) -> (i32, i32) {
    %c0_i32 = arith.constant 0 : i32
    %c0_i32_0 = arith.constant 0 : i32
    %c0_i32_1 = arith.constant 0 : i32
    return %c0_i32, %c0_i32_0 : i32, i32
  }
  func.func @transform_5(%arg0: i32) -> (i32, i32) {
    %c0_i32 = arith.constant 0 : i32
    %c0_i32_0 = arith.constant 0 : i32
    %c0_i32_1 = arith.constant 0 : i32
    return %c0_i32, %c0_i32_0 : i32, i32
  }
  func.func @transform_6(%arg0: i32) -> (i32, i32) {
    %c0_i32 = arith.constant 0 : i32
    %c0_i32_0 = arith.constant 0 : i32
    return %arg0, %c0_i32 : i32, i32
  }
}

</mosaic_0001>

<bundles_post_ra>
// kernel: bottleneck_forward.3
= control target key start
LH: loop header
LB: loop body
LE: loop exit
PB: predicated region body
PF: predicated region fallthrough
CT: control target
= control target key end

     0   :  { %s618_s1 = inlined_call_operand.vmem [shape: bf16[128,128], index: 1, kind: input, shape index: {}]   ;;  %s619_s0 = inlined_call_operand.vmem [shape: bf16[128,128], index: 0, kind: input, shape index: {}]   ;;  %s620_s2 = inlined_call_operand.vmem [shape: f32[1,128], index: 2, kind: input, shape index: {}]   ;;  %s621_s3 = inlined_call_operand.vmem [shape: bf16[128,128], index: 3, kind: output, shape index: {}]  }
   0x1   :  { %v507_v0 = vld [vmem:[%s618_s1] sm:$0xff]   ;;  %v508_v1 = vld [vmem:[%s618_s1 + $0x8] sm:$0xff]   ;;  %v509_v2 = vld [vmem:[%s618_s1 + $0x10] sm:$0xff]  }
   0x2   :  { %459 = vmatprep.subr.bf16.mxu0 %v507_v0  ;;  %491 = vmatprep.subr.bf16.mxu1 %v507_v0  ;;  %v510_v3 = vld [vmem:[%s618_s1 + $0x18] sm:$0xff]   ;;  %v515_v4 = vld [vmem:[%s619_s0] sm:$0xff]   ;;  %v512_v7 = vld [vmem:[%s618_s1 + $0x28] sm:$0xff]  }
   0x3   :  { %460 = vmatpush3.bf16.msra.mxu0 %v507_v0  ;;  %499 = vmatpush3.bf16.msra.mxu1 %v507_v0  ;;  %v516_v5 = vld [vmem:[%s619_s0 + $0x20] sm:$0xff]   ;;  %v513_v8 = vld [vmem:[%s618_s1 + $0x30] sm:$0xff]   ;;  %v514_v9 = vld [vmem:[%s618_s1 + $0x38] sm:$0xff]  }
   0x4   :  { %461 = vmatprep.subr.bf16.mxu0 %v508_v1  ;;  %492 = vmatprep.subr.bf16.mxu1 %v508_v1  ;;  %v511_v6 = vld [vmem:[%s618_s1 + $0x20] sm:$0xff]   ;;  %v517_v10 = vld [vmem:[%s619_s0 + $0x8] sm:$0xff]   ;;  %v519_v12 = vld [vmem:[%s619_s0 + $0x10] sm:$0xff]  }
   0x5   :  { %475 = vmatprep.mubr.bf16.mxu0 %v515_v4  ;;  %483 = vmatprep.mubr.bf16.mxu1 %v516_v5  ;;  %v518_v11 = vld [vmem:[%s619_s0 + $0x28] sm:$0xff]   ;;  %v520_v13 = vld [vmem:[%s619_s0 + $0x30] sm:$0xff]   ;;  %v521_v14 = vld [vmem:[%s619_s0 + $0x18] sm:$0xff]  }
   0x6   :  { %v522_v15 = vld [vmem:[%s619_s0 + $0x38] sm:$0xff]   ;;  %v347_v16 = vld [vmem:[%s620_s2] ss:$0 sm:$0xff] }
   0x7   :  { %462 = vmatpush3.bf16.msra.mxu0 %v508_v1  ;;  %500 = vmatpush3.bf16.msra.mxu1 %v508_v1 }
   0x8   :  { %463 = vmatprep.subr.bf16.mxu0 %v509_v2  ;;  %493 = vmatprep.subr.bf16.mxu1 %v509_v2 }
   0xb   :  { %464 = vmatpush3.bf16.msra.mxu0 %v509_v2  ;;  %501 = vmatpush3.bf16.msra.mxu1 %v509_v2 }
   0xc   :  { %465 = vmatprep.subr.bf16.mxu0 %v510_v3  ;;  %494 = vmatprep.subr.bf16.mxu1 %v510_v3 }
   0xf   :  { %466 = vmatpush3.bf16.msra.mxu0 %v510_v3  ;;  %502 = vmatpush3.bf16.msra.mxu1 %v510_v3 }
  0x10   :  { %467 = vmatprep.subr.bf16.mxu0 %v511_v6  ;;  %495 = vmatprep.subr.bf16.mxu1 %v511_v6 }
  0x13   :  { %468 = vmatpush3.bf16.msra.mxu0 %v511_v6  ;;  %503 = vmatpush3.bf16.msra.mxu1 %v511_v6 }
  0x14   :  { %469 = vmatprep.subr.bf16.mxu0 %v512_v7  ;;  %496 = vmatprep.subr.bf16.mxu1 %v512_v7 }
  0x17   :  { %470 = vmatpush3.bf16.msra.mxu0 %v512_v7  ;;  %504 = vmatpush3.bf16.msra.mxu1 %v512_v7 }
  0x18   :  { %471 = vmatprep.subr.bf16.mxu0 %v513_v8  ;;  %497 = vmatprep.subr.bf16.mxu1 %v513_v8 }
  0x1b   :  { %472 = vmatpush3.bf16.msra.mxu0 %v513_v8  ;;  %505 = vmatpush3.bf16.msra.mxu1 %v513_v8 }
  0x1c   :  { %473 = vmatprep.subr.bf16.mxu0 %v514_v9  ;;  %498 = vmatprep.subr.bf16.mxu1 %v514_v9 }
  0x1f   :  { %474 = vmatpush3.bf16.msra.mxu0 %v514_v9  ;;  %506 = vmatpush3.bf16.msra.mxu1 %v514_v9 }
  0x22   :  { %476 = vmatmul.mubr.bf16.vlgmr.msra.gmra.mrb[0].mxu0 %v517_v10  ;;  %484 = vmatmul.mubr.bf16.vlgmr.msra.gmra.mrb[0].mxu1 %v518_v11 }
  0x23   :  { %479 = vmatprep.mubr.bf16.mxu0 %v519_v12  ;;  %487 = vmatprep.mubr.bf16.mxu1 %v520_v13 }
  0x2a   :  { %480 = vmatmul.mubr.bf16.gmra.mrb[4].mxu0 %v521_v14  ;;  %488 = vmatmul.mubr.bf16.gmra.mrb[4].mxu1 %v522_v15 }
  0xf5   :  { %v477_v17 = vpop.f32.mrb[0].mxu0  ;;  %v485_v18 = vpop.f32.mrb[0].mxu1 }
  0xf6   :  { %v193_v19 = vadd.f32 %v477_v17, %v347_v16  ;;  %v225_v20 = vadd.f32 %v485_v18, %v347_v16  ;;  %v184_v21 = vpop.f32.mrb[1].mxu0  ;;  %v216_v22 = vpop.f32.mrb[1].mxu1 }
  0xf7   :  { %v185_v23 = vadd.f32 %v347_v16, %v184_v21  ;;  %v217_v24 = vadd.f32 %v347_v16, %v216_v22  ;;  %v478_v25 = vpop.f32.mrb[2].mxu0  ;;  %v486_v26 = vpop.f32.mrb[2].mxu1 }
  0xf8   :  { %v196_v27 = vadd.f32 %v478_v25, %v347_v16  ;;  %v228_v28 = vadd.f32 %v486_v26, %v347_v16  ;;  %v187_v29 = vpop.f32.mrb[3].mxu0  ;;  %v219_v30 = vpop.f32.mrb[3].mxu1  ;;  %v249_v33 = vmax.f32 %v193_v19, 0.0  ;;  %v257_v34 = vmax.f32 %v225_v20, 0.0 }
  0xf9   :  { %v188_v31 = vadd.f32 %v347_v16, %v187_v29  ;;  %v220_v32 = vadd.f32 %v347_v16, %v219_v30  ;;  %v247_v37 = vmax.f32 %v185_v23, 0.0  ;;  %v255_v38 = vmax.f32 %v217_v24, 0.0 }
  0xfa   :  { %v250_v35 = vmax.f32 %v196_v27, 0.0  ;;  %v258_v36 = vmax.f32 %v228_v28, 0.0 }
  0xfb   :  { %v248_v39 = vmax.f32 %v188_v31, 0.0  ;;  %v256_v40 = vmax.f32 %v220_v32, 0.0 }
  0xfc   :  { %v404_v41 = vpack.c.bf16 %v250_v35, %v249_v33  ;;  %v424_v42 = vpack.c.bf16 %v258_v36, %v257_v34 }
  0xfd   :  { %v399_v43 = vpack.c.bf16 %v248_v39, %v247_v37  ;;  %v419_v44 = vpack.c.bf16 %v256_v40, %v255_v38  ;;  %v481_v45 = vpop.f32.mrb[4].mxu0  ;;  %v489_v46 = vpop.f32.mrb[4].mxu1 }
  0xfe   :  { %436 = vst [vmem:[%s621_s3 + $0x8] sm:$0xff] %v404_v41   ;;  %440 = vst [vmem:[%s621_s3 + $0x28] sm:$0xff] %v424_v42   ;;  %v209_v47 = vadd.f32 %v481_v45, %v347_v16  ;;  %v241_v48 = vadd.f32 %v489_v46, %v347_v16  ;;  %v200_v49 = vpop.f32.mrb[5].mxu0  ;;  %v232_v50 = vpop.f32.mrb[5].mxu1 }
  0xff   :  { %400 = vst [vmem:[%s621_s3] sm:$0xff] %v399_v43   ;;  %439 = vst [vmem:[%s621_s3 + $0x20] sm:$0xff] %v419_v44   ;;  %v201_v51 = vadd.f32 %v347_v16, %v200_v49  ;;  %v233_v52 = vadd.f32 %v347_v16, %v232_v50  ;;  %v482_v53 = vpop.f32.mrb[6].mxu0  ;;  %v490_v54 = vpop.f32.mrb[6].mxu1 }
 0x100   :  { %v212_v55 = vadd.f32 %v482_v53, %v347_v16  ;;  %v244_v56 = vadd.f32 %v490_v54, %v347_v16  ;;  %v203_v57 = vpop.f32.mrb[7].mxu0  ;;  %v235_v58 = vpop.f32.mrb[7].mxu1  ;;  %v253_v61 = vmax.f32 %v209_v47, 0.0  ;;  %v261_v62 = vmax.f32 %v241_v48, 0.0 }
 0x101   :  { %v204_v59 = vadd.f32 %v347_v16, %v203_v57  ;;  %v236_v60 = vadd.f32 %v347_v16, %v235_v58  ;;  %v251_v1 = vmax.f32 %v201_v51, 0.0  ;;  %v259_v2 = vmax.f32 %v233_v52, 0.0 }
 0x102   :  { %v254_v63 = vmax.f32 %v212_v55, 0.0  ;;  %v262_v0 = vmax.f32 %v244_v56, 0.0 }
 0x103   :  { %v252_v3 = vmax.f32 %v204_v59, 0.0  ;;  %v260_v4 = vmax.f32 %v236_v60, 0.0 }
 0x104   :  { %v414_v5 = vpack.c.bf16 %v254_v63, %v253_v61  ;;  %v434_v6 = vpack.c.bf16 %v262_v0, %v261_v62 }
 0x105   :  { %v409_v7 = vpack.c.bf16 %v252_v3, %v251_v1  ;;  %v429_v8 = vpack.c.bf16 %v260_v4, %v259_v2 }
 0x106   :  { %438 = vst [vmem:[%s621_s3 + $0x18] sm:$0xff] %v414_v5   ;;  %442 = vst [vmem:[%s621_s3 + $0x38] sm:$0xff] %v434_v6  }
 0x107   :  { %437 = vst [vmem:[%s621_s3 + $0x10] sm:$0xff] %v409_v7   ;;  %441 = vst [vmem:[%s621_s3 + $0x30] sm:$0xff] %v429_v8  }

// kernel: bottleneck_forward.5
= control target key start
LH: loop header
LB: loop body
LE: loop exit
PB: predicated region body
PF: predicated region fallthrough
CT: control target
= control target key end

     0   :  { %s582_s0 = inlined_call_operand.vmem [shape: bf16[32,128], index: 0, kind: input, shape index: {}]   ;;  %s583_s1 = inlined_call_operand.vmem [shape: bf16[128,128], index: 1, kind: input, shape index: {}]   ;;  %s584_s2 = inlined_call_operand.vmem [shape: f32[1,128], index: 2, kind: input, shape index: {}]   ;;  %s585_s3 = inlined_call_operand.vmem [shape: bf16[32,128], index: 3, kind: input, shape index: {}]   ;;  %s586_s4 = inlined_call_operand.vmem [shape: bf16[128,128], index: 4, kind: input, shape index: {}]   ;;  %s587_s5 = inlined_call_operand.vmem [shape: f32[1,128], index: 5, kind: input, shape index: {}]   ;;  %s588_s6 = inlined_call_operand.hbm [shape: f32[32,128], index: 6, kind: output, shape index: {}]  }
   0x1   :  { %v422_v0 = vld [vmem:[%s583_s1] sm:$0xff]   ;;  %v424_v2 = vld [vmem:[%s583_s1 + $0x8] sm:$0xff]   ;;  %v426_v4 = vld [vmem:[%s583_s1 + $0x10] sm:$0xff]  }
   0x2   :  { %v423_v1 = vld [vmem:[%s586_s4] sm:$0xff]   ;;  %367 = vmatprep.subr.bf16.mxu1 %v422_v0  ;;  %v425_v3 = vld [vmem:[%s586_s4 + $0x8] sm:$0xff]   ;;  %v427_v5 = vld [vmem:[%s586_s4 + $0x10] sm:$0xff]  }
   0x3   :  { %368 = vmatpush3.bf16.msra.mxu1 %v422_v0  ;;  %387 = vmatprep.subr.bf16.mxu0 %v423_v1  ;;  %v428_v6 = vld [vmem:[%s583_s1 + $0x18] sm:$0xff]   ;;  %v430_v8 = vld [vmem:[%s583_s1 + $0x20] sm:$0xff]   ;;  %v432_v10 = vld [vmem:[%s583_s1 + $0x28] sm:$0xff]  }
   0x4   :  { %388 = vmatpush3.bf16.msra.mxu0 %v423_v1  ;;  %369 = vmatprep.subr.bf16.mxu1 %v424_v2  ;;  %v429_v7 = vld [vmem:[%s586_s4 + $0x18] sm:$0xff]   ;;  %v431_v9 = vld [vmem:[%s586_s4 + $0x20] sm:$0xff]   ;;  %v433_v12 = vld [vmem:[%s586_s4 + $0x28] sm:$0xff]  }
   0x5   :  { %389 = vmatprep.subr.bf16.mxu0 %v425_v3  ;;  %v438_v11 = vld [vmem:[%s582_s0] sm:$0xff]   ;;  %v434_v14 = vld [vmem:[%s583_s1 + $0x30] sm:$0xff]  }
   0x6   :  { %383 = vmatprep.mubr.bf16.mxu1 %v438_v11  ;;  %v440_v13 = vld [vmem:[%s585_s3] sm:$0xff]  }
   0x7   :  { %370 = vmatpush3.bf16.msra.mxu1 %v424_v2 }
   0x8   :  { %390 = vmatpush3.bf16.msra.mxu0 %v425_v3  ;;  %371 = vmatprep.subr.bf16.mxu1 %v426_v4 }
   0x9   :  { %391 = vmatprep.subr.bf16.mxu0 %v427_v5 }
   0xb   :  { %372 = vmatpush3.bf16.msra.mxu1 %v426_v4 }
   0xc   :  { %392 = vmatpush3.bf16.msra.mxu0 %v427_v5  ;;  %373 = vmatprep.subr.bf16.mxu1 %v428_v6 }
   0xd   :  { %393 = vmatprep.subr.bf16.mxu0 %v429_v7 }
   0xf   :  { %374 = vmatpush3.bf16.msra.mxu1 %v428_v6 }
  0x10   :  { %394 = vmatpush3.bf16.msra.mxu0 %v429_v7  ;;  %375 = vmatprep.subr.bf16.mxu1 %v430_v8 }
  0x11   :  { %395 = vmatprep.subr.bf16.mxu0 %v431_v9 }
  0x13   :  { %376 = vmatpush3.bf16.msra.mxu1 %v430_v8 }
  0x14   :  { %396 = vmatpush3.bf16.msra.mxu0 %v431_v9  ;;  %377 = vmatprep.subr.bf16.mxu1 %v432_v10 }
  0x15   :  { %11 = vsyncpa [#allocation3], 0  ;;  %397 = vmatprep.subr.bf16.mxu0 %v433_v12  ;;  %v435_v15 = vld [vmem:[%s586_s4 + $0x30] sm:$0xff]   ;;  %403 = vmatprep.mubr.bf16.mxu0 %v440_v13  ;;  %v436_v16 = vld [vmem:[%s583_s1 + $0x38] sm:$0xff]  }
  0x16   :  { %v437_v17 = vld [vmem:[%s586_s4 + $0x38] sm:$0xff]   ;;  %v439_v18 = vld [vmem:[%s582_s0 + $0x8] sm:$0xff]   ;;  %v325_v20 = vld [vmem:[%s584_s2] ss:$0 sm:$0xff]  ;;  %s466_s0 = smov [#allocation2]  }
  0x17   :  { %378 = vmatpush3.bf16.msra.mxu1 %v432_v10  ;;  %v441_v19 = vld [vmem:[%s585_s3 + $0x8] sm:$0xff]   ;;  %v336_v26 = vld [vmem:[%s587_s5] ss:$0 sm:$0xff]  ;;  %s314_s2 = sshll.u32 %s466_s0, 4  ;;  %s315_s2 = int_to_ptr.vmem [resolvable:$true] %s314_s2 }
  0x18   :  { %398 = vmatpush3.bf16.msra.mxu0 %v433_v12  ;;  %379 = vmatprep.subr.bf16.mxu1 %v434_v14  ;;  %s442_s3 = scalar_lea.vmem %s315_s2, 512  ;;  %p447_p1 = scmp.lt.s32.totalorder %s315_s2, %s315_s2 }
  0x19   :  { %399 = vmatprep.subr.bf16.mxu0 %v435_v15  ;;  %p443_p0 = scmp.ne.s32.totalorder %s315_s2, %s442_s3  ;;  %p448_p2 = scmp.lt.s32.totalorder %s442_s3, %s442_s3 }
  0x1b   :  { %380 = vmatpush3.bf16.msra.mxu1 %v434_v14  ;;  %p449_p3 = por %p448_p2, %p447_p1 }
  0x1c   :  { %400 = vmatpush3.bf16.msra.mxu0 %v435_v15  ;;  %381 = vmatprep.subr.bf16.mxu1 %v436_v16 }
  0x1d   :  { %401 = vmatprep.subr.bf16.mxu0 %v437_v17  ;;  %p450_p4 = pnand %p449_p3, %p443_p0 }
  0x1f   :  { %382 = vmatpush3.bf16.msra.mxu1 %v436_v16 }
  0x20   :  { %402 = vmatpush3.bf16.msra.mxu0 %v437_v17 }
  0x22   :  { %384 = vmatmul.mubr.bf16.vlgmr.msra.gmra.mrb[0].mxu1 %v439_v18 }
  0x23   :  { %404 = vmatmul.mubr.bf16.vlgmr.msra.gmra.mrb[0].mxu0 %v441_v19 }
  0xf5   :  { %v385_v21 = vpop.f32.mrb[0].mxu1 }
  0xf6   :  { %v155_v22 = vadd.f32 %v385_v21, %v325_v20  ;;  %v146_v23 = vpop.f32.mrb[1].mxu1  ;;  %v405_v24 = vpop.f32.mrb[0].mxu0 }
  0xf7   :  { %v147_v25 = vadd.f32 %v325_v20, %v146_v23  ;;  %v386_v27 = vpop.f32.mrb[2].mxu1  ;;  %v282_v28 = vpop.f32.mrb[1].mxu0 }
  0xf8   :  { %v408_v29 = vadd.f32 %v405_v24, %v155_v22  ;;  %v158_v30 = vadd.f32 %v386_v27, %v325_v20  ;;  %v149_v31 = vpop.f32.mrb[3].mxu1  ;;  %v406_v32 = vpop.f32.mrb[2].mxu0 }
  0xf9   :  { %v411_v33 = vadd.f32 %v282_v28, %v147_v25  ;;  %v150_v34 = vadd.f32 %v325_v20, %v149_v31  ;;  %v285_v35 = vpop.f32.mrb[3].mxu0 }
  0xfa   :  { %v409_v36 = vadd.f32 %v408_v29, %v336_v26  ;;  %v414_v37 = vadd.f32 %v336_v26, %v158_v30 }
  0xfb   :  { %v412_v38 = vadd.f32 %v411_v33, %v336_v26  ;;  %v417_v39 = vadd.f32 %v336_v26, %v150_v34 }
  0xfc   :  { %v303_v40 = vmax.f32 %v409_v36, 0.0  ;;  %v415_v41 = vadd.f32 %v414_v37, %v406_v32 }
  0xfd   :  { %v301_v42 = vmax.f32 %v412_v38, 0.0  ;;  %v418_v43 = vadd.f32 %v417_v39, %v285_v35 }
  0xfe   :  { %307 = vst [vmem:[#allocation2 + $0x10] sm:$0xff] %v303_v40  ;;  %v304_v44 = vmax.f32 %v415_v41, 0.0 }
  0xff   :  { %305 = vst [vmem:[#allocation2] sm:$0xff] %v301_v42  ;;  %v302_v45 = vmax.f32 %v418_v43, 0.0 }
 0x100   :  { %308 = vst [vmem:[#allocation2 + $0x18] sm:$0xff] %v304_v44 }
 0x101   :  { %306 = vst [vmem:[#allocation2 + $0x8] sm:$0xff] %v302_v45 }
 0x102   :  { %453 = shalt.err (!%p450_p4)
}
 0x103   :  { %s454_s16 = scalar_lea.hbm %s588_s6, 512 }
 0x104   :  { %p455_p5 = scmp.ne.s32.totalorder %s588_s6, %s454_s16  ;;  %p458_p6 = scmp.lt.u32.totalorder %s454_s16, %s588_s6 }
 0x106   :  { %p460_p7 = pnand %p458_p6, %p455_p5 }
 0x108   :  { %463 = shalt.err (!%p460_p7)
}
 0x109   :  { %s467_s21 = smov 128   ;;  %s468_s22 = smov 8  }
 0x10a   :  { %320 = dma.vmem_to_hbm [thread:$0]  %s315_s2, 512, %s588_s6, [#allocation3], %s467_s21, %s467_s21, %s468_s22  }
 0x10b   :  { %464 = dma.done.wait [#allocation3], 512  }
 0x10c   :  { %465 = vsyncadd [#allocation3], 4294966784 }
 0x10d   :  { %324 = vsyncpa [#allocation3], 1 }

// kernel: bottleneck_forward.4
= control target key start
LH: loop header
LB: loop body
LE: loop exit
PB: predicated region body
PF: predicated region fallthrough
CT: control target
= control target key end

     0   :  { %s6471_s12 = smov 0   ;;  %s7784_s0 = inlined_call_operand.vmem [shape: bf16[8,5,5,128], index: 0, kind: input, shape index: {}]   ;;  %s7785_s1 = inlined_call_operand.vmem [shape: bf16[9,128,128], index: 1, kind: input, shape index: {}]   ;;  %s7786_s2 = inlined_call_operand.vmem [shape: f32[1,128], index: 2, kind: input, shape index: {}]   ;;  %s7787_s3 = inlined_call_operand.vmem [shape: bf16[2,4,4,128], index: 3, kind: output, shape index: {}]  }
   0x1 LB: > { %s6477_s13 = sadd.s32 4294967295, %s6447_s12   ;;  %p4227_p0 = scmp.ge.s32.totalorder %s6447_s12, 1  ;;  %s6447_s12 = sphi %s6471_s12, %s13_s12  }
   0x2   : > { %p139_p1 = scmp.lt.s32.totalorder %s6447_s12, 3 }
   0x4   : > { %p140_p2 = pnand %p4227_p0, %p139_p1 }
   0x5   : > { %v6140_v0 = vld [vmem:[%s7785_s1 + $0x40] sm:$0xff] (!%p140_p2)   ;;  %v6449_v1 = vmov (!%p140_p2), 0.0   ;;  %v6142_v3 = vld [vmem:[%s7785_s1 + $0x48] sm:$0xff] (!%p140_p2)   ;;  %vm6450_vm0 = vmmov (!%p140_p2), 0   ;;  %v6144_v5 = vld [vmem:[%s7785_s1 + $0x50] sm:$0xff] (!%p140_p2)   ;;  %s4228_s28 = sshll.u32 (!%p140_p2), %s6477_s13, 2 }
   0x6   : > { %143 = sbr.rel (%p140_p2) target bundleno = 805 (0x325), region = 32  ;;  %5409 = vmatprep.subr.bf16.mxu0 (!%p140_p2), %v6449_v1  ;;  %5429 = vmatprep.subr.bf16.mxu1 (!%p140_p2), %v6449_v1  ;;  %v6141_v2 = vld [vmem:[%s7785_s1] sm:$0xff] (!%p140_p2)   ;;  %v6143_v4 = vld [vmem:[%s7785_s1 + $0x8] sm:$0xff] (!%p140_p2)   ;;  %v6145_v6 = vld [vmem:[%s7785_s1 + $0x10] sm:$0xff] (!%p140_p2)   ;;  %p165_p3 = scmp.lt.s32.totalorder (!%p140_p2), %s4228_s28, 7 }
   0x7   : > { %5410 = vmatpush3.bf16.msra.mxu0 (!%p140_p2), %v6140_v0  ;;  %5425 = vmatprep.mubr.msk.bf16.mxu0 (!%p140_p2), %vm6450_vm0, %v6449_v1  ;;  %v6146_v7 = vld [vmem:[%s7785_s1 + $0x58] sm:$0xff] (!%p140_p2)   ;;  %v6148_v9 = vld [vmem:[%s7785_s1 + $0x60] sm:$0xff] (!%p140_p2)   ;;  %v6150_v11 = vld [vmem:[%s7785_s1 + $0x68] sm:$0xff] (!%p140_p2)   ;;  %p171_p4 = scmp.lt.s32.totalorder (!%p140_p2), %s6477_s13, 1 }
   0x8   : > { %5430 = vmatpush3.bf16.msra.mxu1 (!%p140_p2), %v6141_v2  ;;  %5411 = vmatprep.subr.bf16.mxu0 (!%p140_p2), %v6449_v1  ;;  %v6147_v8 = vld [vmem:[%s7785_s1 + $0x18] sm:$0xff] (!%p140_p2)   ;;  %v6149_v10 = vld [vmem:[%s7785_s1 + $0x20] sm:$0xff] (!%p140_p2)   ;;  %v6151_v12 = vld [vmem:[%s7785_s1 + $0x28] sm:$0xff] (!%p140_p2)  }
   0x9   : > { %5431 = vmatprep.subr.bf16.mxu1 (!%p140_p2), %v6449_v1  ;;  %5445 = vmatprep.mubr.msk.bf16.mxu1 (!%p140_p2), %vm6450_vm0, %v6449_v1  ;;  %v6152_v13 = vld [vmem:[%s7785_s1 + $0x70] sm:$0xff] (!%p140_p2)   ;;  %v6154_v15 = vld [vmem:[%s7785_s1 + $0x78] sm:$0xff] (!%p140_p2)   ;;  %v6156_v19 = vld [vmem:[%s7785_s1 + $0x80] sm:$0xff] (!%p140_p2)  }
   0xa   : > { %v6153_v14 = vld [vmem:[%s7785_s1 + $0x30] sm:$0xff] (!%p140_p2)   ;;  %v6155_v16 = vld [vmem:[%s7785_s1 + $0x38] sm:$0xff] (!%p140_p2)   ;;  %v6157_v20 = vld [vmem:[%s7785_s1 + $0xc0] sm:$0xff] (!%p140_p2)  }
   0xb   : > { %5412 = vmatpush3.bf16.msra.mxu0 (!%p140_p2), %v6142_v3  ;;  %v6158_v21 = vld [vmem:[%s7785_s1 + $0x88] sm:$0xff] (!%p140_p2)   ;;  %v6160_v23 = vld [vmem:[%s7785_s1 + $0x90] sm:$0xff] (!%p140_p2)   ;;  %v6162_v25 = vld [vmem:[%s7785_s1 + $0x98] sm:$0xff] (!%p140_p2)  }
   0xc   : > { %5432 = vmatpush3.bf16.msra.mxu1 (!%p140_p2), %v6143_v4  ;;  %5413 = vmatprep.subr.bf16.mxu0 (!%p140_p2), %v6449_v1  ;;  %v6159_v22 = vld [vmem:[%s7785_s1 + $0xc8] sm:$0xff] (!%p140_p2)   ;;  %v6161_v24 = vld [vmem:[%s7785_s1 + $0xd0] sm:$0xff] (!%p140_p2)   ;;  %v6163_v26 = vld [vmem:[%s7785_s1 + $0xd8] sm:$0xff] (!%p140_p2)  }
   0xd   : > { %5433 = vmatprep.subr.bf16.mxu1 %v6449_v1  ;;  %s7789_s28 = smov (!%p165_p3, %s4228_s28), 7  ;;  %v6164_v27 = vld [vmem:[%s7785_s1 + $0xa0] sm:$0xff]   ;;  %v6166_v30 = vld [vmem:[%s7785_s1 + $0xa8] sm:$0xff]   ;;  %v6168_v33 = vld [vmem:[%s7785_s1 + $0xb0] sm:$0xff]   ;;  %s7791_s13 = smov (!%p171_p4, %s6477_s13), 1 }
   0xe   : > { %s6129_s14 = smul.u32 20, %s7789_s28  ;;  %v6165_v29 = vld [vmem:[%s7785_s1 + $0xe0] sm:$0xff]   ;;  %v6167_v31 = vld [vmem:[%s7785_s1 + $0xe8] sm:$0xff]   ;;  %v6169_v34 = vld [vmem:[%s7785_s1 + $0xf0] sm:$0xff]   ;;  %s5084_s11 = sshll.u32 %s7791_s13, 3 }
   0xf   : > { %5414 = vmatpush3.bf16.msra.mxu0 %v6144_v5  ;;  %v6170_v37 = vld [vmem:[%s7785_s1 + $0xb8] sm:$0xff]   ;;  %v6173_v41 = vld [vmem:[%s7785_s1 + $0x100] sm:$0xff]   ;;  %v6175_v43 = vld [vmem:[%s7785_s1 + $0x108] sm:$0xff]   ;;  %s7337_s13 = scalar_lea.vmem %s7787_s3, %s5084_s11 }
  0x10   : > { %5434 = vmatpush3.bf16.msra.mxu1 %v6145_v6  ;;  %5415 = vmatprep.subr.bf16.mxu0 %v6449_v1  ;;  %s6545_s21 = scalar_lea.vmem %s7784_s0, %s6129_s14  ;;  %v6171_v38 = vld [vmem:[%s7785_s1 + $0xf8] sm:$0xff]   ;;  %v6174_v42 = vld [vmem:[%s7785_s1 + $0x140] sm:$0xff]   ;;  %v6176_v44 = vld [vmem:[%s7785_s1 + $0x148] sm:$0xff]  }
  0x11   : > { %5435 = vmatprep.subr.bf16.mxu1 %v6449_v1  ;;  %v4232_v17 = vld [vmem:[%s6545_s21 + $0x14] sm:$0x3]  ;;  %v178_v18 = vld [vmem:[%s6545_s21] sm:$0x3]  ;;  %v4290_v40 = vld [vmem:[%s6545_s21 + $0x28] sm:$0x3] }
  0x12   : > { %v6172_v28 = vld [vmem:[%s6545_s21] ss:$0 sps:$4 sm:$0x77]   ;;  %v6177_v45 = vld [vmem:[%s7785_s1 + $0x110] sm:$0xff]   ;;  %v6179_v47 = vld [vmem:[%s7785_s1 + $0x118] sm:$0xff]  }
  0x13   : > { %5416 = vmatpush3.bf16.msra.mxu0 %v6146_v7  ;;  %v414_v32 = vshll.u32 %v6172_v28, 16  ;;  %v412_v35 = vshrl.u32 %v6172_v28, 16  ;;  %v6178_v46 = vld [vmem:[%s7785_s1 + $0x150] sm:$0xff]   ;;  %v6180_v48 = vld [vmem:[%s7785_s1 + $0x158] sm:$0xff]   ;;  %v6181_v49 = vld [vmem:[%s7785_s1 + $0x120] sm:$0xff]  }
  0x14   : > { %5436 = vmatpush3.bf16.msra.mxu1 %v6147_v8  ;;  %5417 = vmatprep.subr.bf16.mxu0 %v6449_v1  ;;  %v6182_v50 = vld [vmem:[%s7785_s1 + $0x160] sm:$0xff]   ;;  %v6189_v51 = vld [vmem:[%s6545_s21 + $0x28] ss:$0 sps:$4 sm:$0x77]   ;;  %v6185_v54 = vld [vmem:[%s7785_s1 + $0x130] sm:$0xff]  }
  0x15   : > { %5437 = vmatprep.subr.bf16.mxu1 %v6449_v1  ;;  %v416_v36 = vrot.slane %v414_v32, 1  ;;  %v6183_v52 = vld [vmem:[%s7785_s1 + $0x128] sm:$0xff]   ;;  %v748_v55 = vshll.u32 %v6189_v51, 16  ;;  %v6186_v56 = vld [vmem:[%s7785_s1 + $0x170] sm:$0xff]   ;;  %v6187_v57 = vld [vmem:[%s7785_s1 + $0x138] sm:$0xff]   ;;  %v746_v58 = vshrl.u32 %v6189_v51, 16 }
  0x16   : > { %v6184_v53 = vld [vmem:[%s7785_s1 + $0x168] sm:$0xff]   ;;  %v6188_v60 = vld [vmem:[%s7785_s1 + $0x178] sm:$0xff]   ;;  %v6190_v63 = vld [vmem:[%s7785_s1 + $0x180] sm:$0xff]  }
  0x17   : > { %5418 = vmatpush3.bf16.msra.mxu0 %v6148_v9  ;;  %v417_v39 = vor.u32 %v416_v36, %v412_v35  ;;  %v750_v59 = vrot.slane %v748_v55, 1  ;;  %v4315_v61 = vld [vmem:[%s6545_s21 + $0x3c] sm:$0x3]  ;;  %v6191_v0 = vld [vmem:[%s7785_s1 + $0x1c0] sm:$0xff]   ;;  %v6192_v2 = vld [vmem:[%s7785_s1 + $0x188] sm:$0xff]  }
  0x18   : > { %5438 = vmatpush3.bf16.msra.mxu1 %v6149_v10  ;;  %5419 = vmatprep.subr.bf16.mxu0 %v6449_v1  ;;  %v6193_v3 = vld [vmem:[%s7785_s1 + $0x1c8] sm:$0xff]   ;;  %v6194_v4 = vld [vmem:[%s7785_s1 + $0x190] sm:$0xff]   ;;  %v6196_v6 = vld [vmem:[%s7785_s1 + $0x198] sm:$0xff]  }
  0x19   : > { %5439 = vmatprep.subr.bf16.mxu1 %v6449_v1  ;;  %v751_v62 = vor.u32 %v750_v59, %v746_v58  ;;  %v6195_v5 = vld [vmem:[%s7785_s1 + $0x1d0] sm:$0xff]   ;;  %v6197_v7 = vld [vmem:[%s7785_s1 + $0x1d8] sm:$0xff]   ;;  %v6198_v8 = vld [vmem:[%s7785_s1 + $0x1a0] sm:$0xff]  }
  0x1a   : > { %v6199_v9 = vld [vmem:[%s7785_s1 + $0x1e0] sm:$0xff]   ;;  %v6200_v10 = vld [vmem:[%s7785_s1 + $0x1a8] sm:$0xff]   ;;  %v6219_v32 = vld [vmem:[%s7785_s1 + $0x70] sm:$0xff]  }
  0x1b   : > { %5420 = vmatpush3.bf16.msra.mxu0 %v6150_v11  ;;  %v6201_v11 = vld [vmem:[%s7785_s1 + $0x1e8] sm:$0xff]   ;;  %v6222_v28 = vld [vmem:[%s6545_s21 + $0x4] ss:$0 sps:$4 sm:$0x77]   ;;  %v6220_v36 = vld [vmem:[%s7785_s1 + $0x238] sm:$0xff]  }
  0x1c   : > { %5440 = vmatpush3.bf16.msra.mxu1 %v6151_v12  ;;  %5421 = vmatprep.subr.bf16.mxu0 %v6449_v1  ;;  %v6202_v12 = vld [vmem:[%s7785_s1 + $0x1b0] sm:$0xff]   ;;  %v6233_v51 = vld [vmem:[%s7785_s1 + $0x28] sm:$0xff]  }
  0x1d   : > { %5441 = vmatprep.subr.bf16.mxu1 %v6449_v1 }
  0x1f   : > { %5422 = vmatpush3.bf16.msra.mxu0 %v6152_v13  ;;  %v6203_v13 = vld [vmem:[%s7785_s1 + $0x1f0] sm:$0xff]  }
  0x20   : > { %5442 = vmatpush3.bf16.msra.mxu1 %v6153_v14  ;;  %5423 = vmatprep.subr.bf16.mxu0 %v6449_v1  ;;  %v6204_v14 = vld [vmem:[%s7785_s1 + $0x1b8] sm:$0xff]  }
  0x21   : > { %5443 = vmatprep.subr.bf16.mxu1 %v6449_v1 }
  0x23   : > { %5424 = vmatpush3.bf16.msra.mxu0 %v6154_v15  ;;  %v6205_v15 = vld [vmem:[%s7785_s1 + $0x1f8] sm:$0xff]  }
  0x24   : > { %5444 = vmatpush3.bf16.msra.mxu1 %v6155_v16  ;;  %5449 = vmatprep.subr.bf16.mxu0 %v6449_v1  ;;  %v4366_v16 = vld [vmem:[%s6545_s21 + $0x4] sm:$0x3] }
  0x25   : > { %5469 = vmatprep.subr.bf16.mxu1 %v6449_v1 }
  0x26   : > { %5426 = vmatmul.mubr.bf16.vlgmr.msra.gmra.mrb[0].mxu0 %v4232_v17  ;;  %v4391_v17 = vld [vmem:[%s6545_s21 + $0x18] sm:$0x3] }
  0x27   : > { %5446 = vmatmul.mubr.bf16.vlgmr.msra.gmra.mrb[0].mxu1 %v178_v18  ;;  %5450 = vmatpush3.bf16.msra.mxu0 %v6156_v19  ;;  %v6206_v18 = vld [vmem:[%s7785_s1 + $0x200] sm:$0xff]  }
  0x28   : > { %5470 = vmatpush3.bf16.msra.mxu1 %v6157_v20  ;;  %5451 = vmatprep.subr.bf16.mxu0 %v6449_v1  ;;  %v6207_v19 = vld [vmem:[%s7785_s1 + $0x40] sm:$0xff]   ;;  %v6208_v20 = vld [vmem:[%s7785_s1 + $0x208] sm:$0xff]  }
  0x29   : > { %5471 = vmatprep.subr.bf16.mxu1 %v6449_v1  ;;  %5465 = vmatprep.mubr.msk.bf16.mxu0 %vm6450_vm0, %v6449_v1 }
  0x2a   : > { %5485 = vmatprep.mubr.msk.bf16.mxu1 %vm6450_vm0, %v6449_v1 }
  0x2b   : > { %5452 = vmatpush3.bf16.msra.mxu0 %v6158_v21  ;;  %v6209_v21 = vld [vmem:[%s7785_s1 + $0x48] sm:$0xff]  }
  0x2c   : > { %5472 = vmatpush3.bf16.msra.mxu1 %v6159_v22  ;;  %5453 = vmatprep.subr.bf16.mxu0 %v6449_v1  ;;  %v6210_v22 = vld [vmem:[%s7785_s1 + $0x210] sm:$0xff]  }
  0x2d   : > { %5473 = vmatprep.subr.bf16.mxu1 %v6449_v1 }
  0x2f   : > { %5454 = vmatpush3.bf16.msra.mxu0 %v6160_v23  ;;  %v6211_v23 = vld [vmem:[%s7785_s1 + $0x50] sm:$0xff]  }
  0x30   : > { %5474 = vmatpush3.bf16.msra.mxu1 %v6161_v24  ;;  %5455 = vmatprep.subr.bf16.mxu0 %v6449_v1  ;;  %v6212_v24 = vld [vmem:[%s7785_s1 + $0x218] sm:$0xff]  }
  0x31   : > { %5475 = vmatprep.subr.bf16.mxu1 %v6449_v1 }
  0x33   : > { %5456 = vmatpush3.bf16.msra.mxu0 %v6162_v25  ;;  %v6213_v25 = vld [vmem:[%s7785_s1 + $0x58] sm:$0xff]  }
  0x34   : > { %5476 = vmatpush3.bf16.msra.mxu1 %v6163_v26  ;;  %5457 = vmatprep.subr.bf16.mxu0 %v6449_v1  ;;  %v6214_v26 = vld [vmem:[%s7785_s1 + $0x220] sm:$0xff]  }
  0x35   : > { %5477 = vmatprep.subr.bf16.mxu1 %v6449_v1 }
  0x37   : > { %5458 = vmatpush3.bf16.msra.mxu0 %v6164_v27  ;;  %v6215_v27 = vld [vmem:[%s7785_s1 + $0x60] sm:$0xff]  }
  0x38   : > { %5478 = vmatpush3.bf16.msra.mxu1 %v6165_v29  ;;  %5459 = vmatprep.subr.bf16.mxu0 %v6449_v1  ;;  %v6216_v29 = vld [vmem:[%s7785_s1 + $0x228] sm:$0xff]  }
  0x39   : > { %5479 = vmatprep.subr.bf16.mxu1 %v6449_v1 }
  0x3b   : > { %5460 = vmatpush3.bf16.msra.mxu0 %v6166_v30  ;;  %v6217_v30 = vld [vmem:[%s7785_s1 + $0x68] sm:$0xff]  }
  0x3c   : > { %5480 = vmatpush3.bf16.msra.mxu1 %v6167_v31  ;;  %5461 = vmatprep.subr.bf16.mxu0 %v6449_v1  ;;  %v6218_v31 = vld [vmem:[%s7785_s1 + $0x230] sm:$0xff]  }
  0x3d   : > { %5481 = vmatprep.subr.bf16.mxu1 %v6449_v1 }
  0x3f   : > { %5462 = vmatpush3.bf16.msra.mxu0 %v6168_v33  ;;  %v1082_v33 = vshll.u32 %v6222_v28, 16 }
  0x40   : > { %5482 = vmatpush3.bf16.msra.mxu1 %v6169_v34  ;;  %5463 = vmatprep.subr.bf16.mxu0 %v6449_v1  ;;  %v1080_v34 = vshrl.u32 %v6222_v28, 16  ;;  %v6266_v28 = vld [vmem:[%s7785_s1 + $0x168] sm:$0xff]  }
  0x41   : > { %5483 = vmatprep.subr.bf16.mxu1 %v6449_v1  ;;  %v1084_v35 = vrot.slane %v1082_v33, 1  ;;  %v6268_v33 = vld [vmem:[%s7785_s1 + $0x170] sm:$0xff]  }
  0x43   : > { %5464 = vmatpush3.bf16.msra.mxu0 %v6170_v37  ;;  %v6221_v37 = vld [vmem:[%s7785_s1 + $0x78] sm:$0xff]  }
  0x44   : > { %5484 = vmatpush3.bf16.msra.mxu1 %v6171_v38  ;;  %5489 = vmatprep.subr.bf16.mxu0 %v6449_v1  ;;  %v1085_v38 = vor.u32 %v1084_v35, %v1080_v34 }
  0x45   : > { %5509 = vmatprep.subr.bf16.mxu1 %v6449_v1 }
  0x46   : > { %5466 = vmatmul.mubr.bf16.vlgmr.msra.gmra.mrb[4].mxu0 %v417_v39  ;;  %v4444_v39 = vld [vmem:[%s6545_s21 + $0x18] sm:$0x3] }
  0x47   : > { %5486 = vmatmul.mubr.bf16.vlgmr.msra.gmra.mrb[4].mxu1 %v4290_v40  ;;  %5490 = vmatpush3.bf16.msra.mxu0 %v6173_v41  ;;  %v6223_v40 = vld [vmem:[%s7785_s1] sm:$0xff]  }
  0x48   : > { %5510 = vmatpush3.bf16.msra.mxu1 %v6174_v42  ;;  %5491 = vmatprep.subr.bf16.mxu0 %v6449_v1  ;;  %v6224_v41 = vld [vmem:[%s7785_s1 + $0x80] sm:$0xff]   ;;  %v6225_v42 = vld [vmem:[%s7785_s1 + $0x8] sm:$0xff]  }
  0x49   : > { %5511 = vmatprep.subr.bf16.mxu1 %v6449_v1  ;;  %5505 = vmatprep.mubr.msk.bf16.mxu0 %vm6450_vm0, %v6449_v1 }
  0x4a   : > { %5525 = vmatprep.mubr.msk.bf16.mxu1 %vm6450_vm0, %v6449_v1 }
  0x4b   : > { %5492 = vmatpush3.bf16.msra.mxu0 %v6175_v43  ;;  %v6226_v43 = vld [vmem:[%s7785_s1 + $0x88] sm:$0xff]  }
  0x4c   : > { %5512 = vmatpush3.bf16.msra.mxu1 %v6176_v44  ;;  %5493 = vmatprep.subr.bf16.mxu0 %v6449_v1  ;;  %v6227_v44 = vld [vmem:[%s7785_s1 + $0x10] sm:$0xff]  }
  0x4d   : > { %5513 = vmatprep.subr.bf16.mxu1 %v6449_v1 }
  0x4f   : > { %5494 = vmatpush3.bf16.msra.mxu0 %v6177_v45  ;;  %v6228_v45 = vld [vmem:[%s7785_s1 + $0x90] sm:$0xff]  }
  0x50   : > { %5514 = vmatpush3.bf16.msra.mxu1 %v6178_v46  ;;  %5495 = vmatprep.subr.bf16.mxu0 %v6449_v1  ;;  %v6229_v46 = vld [vmem:[%s7785_s1 + $0x18] sm:$0xff]  }
  0x51   : > { %5515 = vmatprep.subr.bf16.mxu1 %v6449_v1 }
  0x53   : > { %5496 = vmatpush3.bf16.msra.mxu0 %v6179_v47  ;;  %v6230_v47 = vld [vmem:[%s7785_s1 + $0x98] sm:$0xff]  }
  0x54   : > { %5516 = vmatpush3.bf16.msra.mxu1 %v6180_v48  ;;  %5497 = vmatprep.subr.bf16.mxu0 %v6449_v1  ;;  %v6231_v48 = vld [vmem:[%s7785_s1 + $0x20] sm:$0xff]  }
  0x55   : > { %5517 = vmatprep.subr.bf16.mxu1 %v6449_v1 }
  0x57   : > { %5498 = vmatpush3.bf16.msra.mxu0 %v6181_v49  ;;  %v6232_v49 = vld [vmem:[%s7785_s1 + $0xa0] sm:$0xff]  }
  0x58   : > { %5518 = vmatpush3.bf16.msra.mxu1 %v6182_v50  ;;  %5499 = vmatprep.subr.bf16.mxu0 %v6449_v1  ;;  %v6239_v50 = vld [vmem:[%s6545_s21 + $0x4] ss:$0 sps:$4 sm:$0x77]  }
  0x59   : > { %5519 = vmatprep.subr.bf16.mxu1 %v6449_v1  ;;  %v1419_v55 = vshll.u32 %v6239_v50, 16  ;;  %v1417_v58 = vshrl.u32 %v6239_v50, 16  ;;  %v6275_v50 = vld [vmem:[%s7785_s1 + $0x1c8] sm:$0xff]  }
  0x5b   : > { %5500 = vmatpush3.bf16.msra.mxu0 %v6183_v52  ;;  %v6234_v52 = vld [vmem:[%s7785_s1 + $0xa8] sm:$0xff]   ;;  %v1421_v59 = vrot.slane %v1419_v55, 1  ;;  %v6280_v55 = vld [vmem:[%s7785_s1 + $0x218] sm:$0xff]  }
  0x5c   : > { %5520 = vmatpush3.bf16.msra.mxu1 %v6184_v53  ;;  %5501 = vmatprep.subr.bf16.mxu0 %v6449_v1  ;;  %v6235_v53 = vld [vmem:[%s7785_s1 + $0x30] sm:$0xff]  }
  0x5d   : > { %5521 = vmatprep.subr.bf16.mxu1 %v6449_v1 }
  0x5f   : > { %5502 = vmatpush3.bf16.msra.mxu0 %v6185_v54  ;;  %v6236_v54 = vld [vmem:[%s7785_s1 + $0xb0] sm:$0xff]  }
  0x60   : > { %5522 = vmatpush3.bf16.msra.mxu1 %v6186_v56  ;;  %5503 = vmatprep.subr.bf16.mxu0 %v6449_v1  ;;  %v6237_v56 = vld [vmem:[%s7785_s1 + $0x38] sm:$0xff]  }
  0x61   : > { %5523 = vmatprep.subr.bf16.mxu1 %v6449_v1 }
  0x63   : > { %5504 = vmatpush3.bf16.msra.mxu0 %v6187_v57  ;;  %v6238_v57 = vld [vmem:[%s7785_s1 + $0xb8] sm:$0xff]  }
  0x64   : > { %5524 = vmatpush3.bf16.msra.mxu1 %v6188_v60  ;;  %5529 = vmatprep.subr.bf16.mxu0 %v6449_v1  ;;  %v4443_v60 = vld [vmem:[%s6545_s21 + $0x4] sm:$0x3] }
  0x65   : > { %5549 = vmatprep.subr.bf16.mxu1 %v6449_v1 }
  0x66   : > { %5506 = vmatmul.mubr.bf16.vlgmr.msra.gmra.mrb[8].mxu0 %v4315_v61  ;;  %v6240_v61 = vld [vmem:[%s7785_s1 + $0xc0] sm:$0xff]  }
  0x67   : > { %5526 = vmatmul.mubr.bf16.vlgmr.msra.gmra.mrb[8].mxu1 %v751_v62  ;;  %5530 = vmatpush3.bf16.msra.mxu0 %v6190_v63  ;;  %v1422_v62 = vor.u32 %v1421_v59, %v1417_v58  ;;  %v6241_v63 = vld [vmem:[%s7785_s1 + $0x100] sm:$0xff]   ;;  %v6283_v58 = vld [vmem:[%s7785_s1 + $0x1e8] sm:$0xff]  }
  0x68   : > { %5550 = vmatpush3.bf16.msra.mxu1 %v6191_v0  ;;  %5531 = vmatprep.subr.bf16.mxu0 %v6449_v1  ;;  %v6242_v0 = vld [vmem:[%s7785_s1 + $0xc8] sm:$0xff]  }
  0x69   : > { %5551 = vmatprep.subr.bf16.mxu1 %v6449_v1  ;;  %5545 = vmatprep.mubr.msk.bf16.mxu0 %vm6450_vm0, %v6449_v1  ;;  %v6289_v59 = vld [vmem:[%s6545_s21 + $0x8] ss:$0 sps:$4 sm:$0x77]  }
  0x6a   : > { %5565 = vmatprep.mubr.msk.bf16.mxu1 %vm6450_vm0, %v6449_v1 }
  0x6b   : > { %5532 = vmatpush3.bf16.msra.mxu0 %v6192_v2  ;;  %v6243_v2 = vld [vmem:[%s7785_s1 + $0x108] sm:$0xff]  }
  0x6c   : > { %5552 = vmatpush3.bf16.msra.mxu1 %v6193_v3  ;;  %5533 = vmatprep.subr.bf16.mxu0 %v6449_v1  ;;  %v6244_v3 = vld [vmem:[%s7785_s1 + $0xd0] sm:$0xff]  }
  0x6d   : > { %5553 = vmatprep.subr.bf16.mxu1 %v6449_v1 }
  0x6f   : > { %5534 = vmatpush3.bf16.msra.mxu0 %v6194_v4  ;;  %v6245_v4 = vld [vmem:[%s7785_s1 + $0x110] sm:$0xff]  }
  0x70   : > { %5554 = vmatpush3.bf16.msra.mxu1 %v6195_v5  ;;  %5535 = vmatprep.subr.bf16.mxu0 %v6449_v1  ;;  %v6246_v5 = vld [vmem:[%s7785_s1 + $0xd8] sm:$0xff]  }
  0x71   : > { %5555 = vmatprep.subr.bf16.mxu1 %v6449_v1 }
  0x73   : > { %5536 = vmatpush3.bf16.msra.mxu0 %v6196_v6  ;;  %v6247_v6 = vld [vmem:[%s7785_s1 + $0x118] sm:$0xff]  }
  0x74   : > { %5556 = vmatpush3.bf16.msra.mxu1 %v6197_v7  ;;  %5537 = vmatprep.subr.bf16.mxu0 %v6449_v1  ;;  %v6248_v7 = vld [vmem:[%s7785_s1 + $0xe0] sm:$0xff]  }
  0x75   : > { %5557 = vmatprep.subr.bf16.mxu1 %v6449_v1 }
  0x77   : > { %5538 = vmatpush3.bf16.msra.mxu0 %v6198_v8  ;;  %v6249_v8 = vld [vmem:[%s7785_s1 + $0x120] sm:$0xff]  }
  0x78   : > { %5558 = vmatpush3.bf16.msra.mxu1 %v6199_v9  ;;  %5539 = vmatprep.subr.bf16.mxu0 %v6449_v1  ;;  %v6250_v9 = vld [vmem:[%s7785_s1 + $0xe8] sm:$0xff]  }
  0x79   : > { %5559 = vmatprep.subr.bf16.mxu1 %v6449_v1 }
  0x7b   : > { %5540 = vmatpush3.bf16.msra.mxu0 %v6200_v10  ;;  %v6251_v10 = vld [vmem:[%s7785_s1 + $0x128] sm:$0xff]  }
  0x7c   : > { %5560 = vmatpush3.bf16.msra.mxu1 %v6201_v11  ;;  %5541 = vmatprep.subr.bf16.mxu0 %v6449_v1  ;;  %v6252_v11 = vld [vmem:[%s7785_s1 + $0xf0] sm:$0xff]  }
  0x7d   : > { %5561 = vmatprep.subr.bf16.mxu1 %v6449_v1 }
  0x7f   : > { %5542 = vmatpush3.bf16.msra.mxu0 %v6202_v12  ;;  %v6253_v12 = vld [vmem:[%s7785_s1 + $0x130] sm:$0xff]  }
  0x80   : > { %5562 = vmatpush3.bf16.msra.mxu1 %v6203_v13  ;;  %5543 = vmatprep.subr.bf16.mxu0 %v6449_v1  ;;  %v6254_v13 = vld [vmem:[%s7785_s1 + $0xf8] sm:$0xff]  }
  0x81   : > { %5563 = vmatprep.subr.bf16.mxu1 %v6449_v1 }
  0x83   : > { %5544 = vmatpush3.bf16.msra.mxu0 %v6204_v14  ;;  %v6255_v14 = vld [vmem:[%s7785_s1 + $0x138] sm:$0xff]  }
  0x84   : > { %5564 = vmatpush3.bf16.msra.mxu1 %v6205_v15  ;;  %5569 = vmatprep.subr.bf16.mxu0 %v6449_v1  ;;  %v4503_v15 = vld [vmem:[%s6545_s21 + $0x2c] sm:$0x3] }
  0x85   : > { %5589 = vmatprep.subr.bf16.mxu1 %v6449_v1 }
  0x86   : > { %5546 = vmatmul.mubr.bf16.vlgmr.msra.gmra.mrb[12].mxu0 %v4366_v16  ;;  %v4528_v16 = vld [vmem:[%s6545_s21 + $0x40] sm:$0x3] }
  0x87   : > { %5566 = vmatmul.mubr.bf16.vlgmr.msra.gmra.mrb[12].mxu1 %v4391_v17  ;;  %5570 = vmatpush3.bf16.msra.mxu0 %v6206_v18  ;;  %v6256_v17 = vld [vmem:[%s7785_s1 + $0x140] sm:$0xff]  }
  0x88   : > { %5590 = vmatpush3.bf16.msra.mxu1 %v6207_v19  ;;  %5571 = vmatprep.subr.bf16.mxu0 %v6449_v1  ;;  %v6257_v18 = vld [vmem:[%s7785_s1 + $0x180] sm:$0xff]   ;;  %v6258_v19 = vld [vmem:[%s7785_s1 + $0x148] sm:$0xff]  }
  0x89   : > { %5591 = vmatprep.subr.bf16.mxu1 %v6449_v1  ;;  %5585 = vmatprep.mubr.msk.bf16.mxu0 %vm6450_vm0, %v6449_v1 }
  0x8a   : > { %5605 = vmatprep.mubr.msk.bf16.mxu1 %vm6450_vm0, %v6449_v1 }
  0x8b   : > { %5572 = vmatpush3.bf16.msra.mxu0 %v6208_v20  ;;  %v6259_v20 = vld [vmem:[%s7785_s1 + $0x188] sm:$0xff]  }
  0x8c   : > { %5592 = vmatpush3.bf16.msra.mxu1 %v6209_v21  ;;  %5573 = vmatprep.subr.bf16.mxu0 %v6449_v1  ;;  %v6260_v21 = vld [vmem:[%s7785_s1 + $0x150] sm:$0xff]  }
  0x8d   : > { %5593 = vmatprep.subr.bf16.mxu1 %v6449_v1 }
  0x8f   : > { %5574 = vmatpush3.bf16.msra.mxu0 %v6210_v22  ;;  %v6261_v22 = vld [vmem:[%s7785_s1 + $0x190] sm:$0xff]  }
  0x90   : > { %5594 = vmatpush3.bf16.msra.mxu1 %v6211_v23  ;;  %5575 = vmatprep.subr.bf16.mxu0 %v6449_v1  ;;  %v6262_v23 = vld [vmem:[%s7785_s1 + $0x158] sm:$0xff]  }
  0x91   : > { %5595 = vmatprep.subr.bf16.mxu1 %v6449_v1 }
  0x93   : > { %5576 = vmatpush3.bf16.msra.mxu0 %v6212_v24  ;;  %v6263_v24 = vld [vmem:[%s7785_s1 + $0x198] sm:$0xff]  }
  0x94   : > { %5596 = vmatpush3.bf16.msra.mxu1 %v6213_v25  ;;  %5577 = vmatprep.subr.bf16.mxu0 %v6449_v1  ;;  %v6264_v25 = vld [vmem:[%s7785_s1 + $0x160] sm:$0xff]  }
  0x95   : > { %5597 = vmatprep.subr.bf16.mxu1 %v6449_v1 }
  0x97   : > { %5578 = vmatpush3.bf16.msra.mxu0 %v6214_v26  ;;  %v6265_v26 = vld [vmem:[%s7785_s1 + $0x1a0] sm:$0xff]  }
  0x98   : > { %5598 = vmatpush3.bf16.msra.mxu1 %v6215_v27  ;;  %5579 = vmatprep.subr.bf16.mxu0 %v6449_v1  ;;  %v6272_v27 = vld [vmem:[%s6545_s21 + $0x2c] ss:$0 sps:$4 sm:$0x77]  }
  0x99   : > { %5599 = vmatprep.subr.bf16.mxu1 %v6449_v1  ;;  %v1750_v34 = vshll.u32 %v6272_v27, 16 }
  0x9b   : > { %5580 = vmatpush3.bf16.msra.mxu0 %v6216_v29  ;;  %v6267_v29 = vld [vmem:[%s7785_s1 + $0x1a8] sm:$0xff]  }
  0x9c   : > { %5600 = vmatpush3.bf16.msra.mxu1 %v6217_v30  ;;  %5581 = vmatprep.subr.bf16.mxu0 %v6449_v1 }
  0x9d   : > { %5601 = vmatprep.subr.bf16.mxu1 %v6449_v1 }
  0x9f   : > { %5582 = vmatpush3.bf16.msra.mxu0 %v6218_v31 }
  0xa0   : > { %5602 = vmatpush3.bf16.msra.mxu1 %v6219_v32  ;;  %5583 = vmatprep.subr.bf16.mxu0 %v6449_v1 }
  0xa1   : > { %5603 = vmatprep.subr.bf16.mxu1 %v6449_v1 }
  0xa3   : > { %5584 = vmatpush3.bf16.msra.mxu0 %v6220_v36 }
  0xa4   : > { %5604 = vmatpush3.bf16.msra.mxu1 %v6221_v37  ;;  %5609 = vmatprep.subr.bf16.mxu0 %v6449_v1 }
  0xa5   : > { %5629 = vmatprep.subr.bf16.mxu1 %v6449_v1 }
  0xa6   : > { %5586 = vmatmul.mubr.bf16.vlgmr.msra.gmra.mrb[16].mxu0 %v1085_v38 }
  0xa7   : > { %5606 = vmatmul.mubr.bf16.vlgmr.msra.gmra.mrb[16].mxu1 %v4444_v39  ;;  %5610 = vmatpush3.bf16.msra.mxu0 %v6223_v40  ;;  %v6269_v40 = vld [vmem:[%s7785_s1 + $0x1b0] sm:$0xff]  }
  0xa8   : > { %5630 = vmatpush3.bf16.msra.mxu1 %v6224_v41  ;;  %5611 = vmatprep.subr.bf16.mxu0 %v6449_v1 }
  0xa9   : > { %5631 = vmatprep.subr.bf16.mxu1 %v6449_v1  ;;  %5625 = vmatprep.mubr.msk.bf16.mxu0 %vm6450_vm0, %v6449_v1 }
  0xaa   : > { %5645 = vmatprep.mubr.msk.bf16.mxu1 %vm6450_vm0, %v6449_v1 }
  0xab   : > { %5612 = vmatpush3.bf16.msra.mxu0 %v6225_v42  ;;  %v1748_v42 = vshrl.u32 %v6272_v27, 16  ;;  %v6300_v27 = vld [vmem:[%s7785_s1 + $0x68] sm:$0xff]  }
  0xac   : > { %5632 = vmatpush3.bf16.msra.mxu1 %v6226_v43  ;;  %5613 = vmatprep.subr.bf16.mxu0 %v6449_v1  ;;  %v1752_v43 = vrot.slane %v1750_v34, 1 }
  0xad   : > { %5633 = vmatprep.subr.bf16.mxu1 %v6449_v1 }
  0xaf   : > { %5614 = vmatpush3.bf16.msra.mxu0 %v6227_v44  ;;  %v6270_v44 = vld [vmem:[%s7785_s1 + $0x178] sm:$0xff]  }
  0xb0   : > { %5634 = vmatpush3.bf16.msra.mxu1 %v6228_v45  ;;  %5615 = vmatprep.subr.bf16.mxu0 %v6449_v1  ;;  %v6271_v45 = vld [vmem:[%s7785_s1 + $0x1b8] sm:$0xff]  }
  0xb1   : > { %5635 = vmatprep.subr.bf16.mxu1 %v6449_v1 }
  0xb3   : > { %5616 = vmatpush3.bf16.msra.mxu0 %v6229_v46  ;;  %v1753_v46 = vor.u32 %v1752_v43, %v1748_v42  ;;  %v6305_v42 = vld [vmem:[%s7785_s1 + $0x38] sm:$0xff]  }
  0xb4   : > { %5636 = vmatpush3.bf16.msra.mxu1 %v6230_v47  ;;  %5617 = vmatprep.subr.bf16.mxu0 %v6449_v1  ;;  %v6273_v47 = vld [vmem:[%s7785_s1 + $0x1c0] sm:$0xff]   ;;  %v4657_v43 = vld [vmem:[%s6545_s21 + $0x1c] sm:$0x3] }
  0xb5   : > { %5637 = vmatprep.subr.bf16.mxu1 %v6449_v1 }
  0xb7   : > { %5618 = vmatpush3.bf16.msra.mxu0 %v6231_v48  ;;  %v4579_v48 = vld [vmem:[%s6545_s21 + $0x8] sm:$0x3] }
  0xb8   : > { %5638 = vmatpush3.bf16.msra.mxu1 %v6232_v49  ;;  %5619 = vmatprep.subr.bf16.mxu0 %v6449_v1  ;;  %v6274_v49 = vld [vmem:[%s7785_s1 + $0x200] sm:$0xff]  }
  0xb9   : > { %5639 = vmatprep.subr.bf16.mxu1 %v6449_v1 }
  0xbb   : > { %5620 = vmatpush3.bf16.msra.mxu0 %v6233_v51  ;;  %v6276_v51 = vld [vmem:[%s7785_s1 + $0x208] sm:$0xff]  }
  0xbc   : > { %5640 = vmatpush3.bf16.msra.mxu1 %v6234_v52  ;;  %5621 = vmatprep.subr.bf16.mxu0 %v6449_v1  ;;  %v6277_v52 = vld [vmem:[%s7785_s1 + $0x1d0] sm:$0xff]  }
  0xbd   : > { %5641 = vmatprep.subr.bf16.mxu1 %v6449_v1 }
  0xbf   : > { %5622 = vmatpush3.bf16.msra.mxu0 %v6235_v53  ;;  %v6278_v53 = vld [vmem:[%s7785_s1 + $0x210] sm:$0xff]  }
  0xc0   : > { %5642 = vmatpush3.bf16.msra.mxu1 %v6236_v54  ;;  %5623 = vmatprep.subr.bf16.mxu0 %v6449_v1  ;;  %v6279_v54 = vld [vmem:[%s7785_s1 + $0x1d8] sm:$0xff]  }
  0xc1   : > { %5643 = vmatprep.subr.bf16.mxu1 %v6449_v1 }
  0xc3   : > { %5624 = vmatpush3.bf16.msra.mxu0 %v6237_v56  ;;  %v6281_v56 = vld [vmem:[%s7785_s1 + $0x1e0] sm:$0xff]  }
  0xc4   : > { %5644 = vmatpush3.bf16.msra.mxu1 %v6238_v57  ;;  %5649 = vmatprep.subr.bf16.mxu0 %v6449_v1  ;;  %v6282_v57 = vld [vmem:[%s7785_s1 + $0x220] sm:$0xff]  }
  0xc5   : > { %5669 = vmatprep.subr.bf16.mxu1 %v6449_v1 }
  0xc6   : > { %5626 = vmatmul.mubr.bf16.vlgmr.msra.gmra.mrb[20].mxu0 %v4443_v60  ;;  %v6284_v60 = vld [vmem:[%s7785_s1 + $0x228] sm:$0xff]  }
  0xc7   : > { %5646 = vmatmul.mubr.bf16.vlgmr.msra.gmra.mrb[20].mxu1 %v1422_v62  ;;  %5650 = vmatpush3.bf16.msra.mxu0 %v6240_v61 }
  0xc8   : > { %5670 = vmatpush3.bf16.msra.mxu1 %v6241_v63  ;;  %5651 = vmatprep.subr.bf16.mxu0 %v6449_v1 }
  0xc9   : > { %5671 = vmatprep.subr.bf16.mxu1 %v6449_v1  ;;  %5665 = vmatprep.mubr.msk.bf16.mxu0 %vm6450_vm0, %v6449_v1 }
  0xca   : > { %5685 = vmatprep.mubr.msk.bf16.mxu1 %vm6450_vm0, %v6449_v1 }
  0xcb   : > { %5652 = vmatpush3.bf16.msra.mxu0 %v6242_v0 }
  0xcc   : > { %5672 = vmatpush3.bf16.msra.mxu1 %v6243_v2  ;;  %5653 = vmatprep.subr.bf16.mxu0 %v6449_v1 }
  0xcd   : > { %5673 = vmatprep.subr.bf16.mxu1 %v6449_v1 }
  0xcf   : > { %5654 = vmatpush3.bf16.msra.mxu0 %v6244_v3 }
  0xd0   : > { %5674 = vmatpush3.bf16.msra.mxu1 %v6245_v4  ;;  %5655 = vmatprep.subr.bf16.mxu0 %v6449_v1  ;;  %v6285_v4 = vld [vmem:[%s7785_s1 + $0x1f0] sm:$0xff]  }
  0xd1   : > { %5675 = vmatprep.subr.bf16.mxu1 %v6449_v1 }
  0xd3   : > { %5656 = vmatpush3.bf16.msra.mxu0 %v6246_v5  ;;  %v2081_v5 = vshll.u32 %v6289_v59, 16 }
  0xd4   : > { %5676 = vmatpush3.bf16.msra.mxu1 %v6247_v6  ;;  %5657 = vmatprep.subr.bf16.mxu0 %v6449_v1 }
  0xd5   : > { %5677 = vmatprep.subr.bf16.mxu1 %v6449_v1 }
  0xd7   : > { %5658 = vmatpush3.bf16.msra.mxu0 %v6248_v7 }
  0xd8   : > { %5678 = vmatpush3.bf16.msra.mxu1 %v6249_v8  ;;  %5659 = vmatprep.subr.bf16.mxu0 %v6449_v1 }
  0xd9   : > { %5679 = vmatprep.subr.bf16.mxu1 %v6449_v1 }
  0xdb   : > { %5660 = vmatpush3.bf16.msra.mxu0 %v6250_v9  ;;  %v6286_v9 = vld [vmem:[%s7785_s1 + $0x230] sm:$0xff]  }
  0xdc   : > { %5680 = vmatpush3.bf16.msra.mxu1 %v6251_v10  ;;  %5661 = vmatprep.subr.bf16.mxu0 %v6449_v1 }
  0xdd   : > { %5681 = vmatprep.subr.bf16.mxu1 %v6449_v1 }
  0xdf   : > { %5662 = vmatpush3.bf16.msra.mxu0 %v6252_v11  ;;  %v6287_v11 = vld [vmem:[%s7785_s1 + $0x1f8] sm:$0xff]  }
  0xe0   : > { %5682 = vmatpush3.bf16.msra.mxu1 %v6253_v12  ;;  %5663 = vmatprep.subr.bf16.mxu0 %v6449_v1  ;;  %v2079_v12 = vshrl.u32 %v6289_v59, 16 }
  0xe1   : > { %5683 = vmatprep.subr.bf16.mxu1 %v6449_v1 }
  0xe3   : > { %5664 = vmatpush3.bf16.msra.mxu0 %v6254_v13  ;;  %v2083_v13 = vrot.slane %v2081_v5, 1 }
  0xe4   : > { %5684 = vmatpush3.bf16.msra.mxu1 %v6255_v14  ;;  %5689 = vmatprep.subr.bf16.mxu0 %v6449_v1  ;;  %v6288_v14 = vld [vmem:[%s7785_s1 + $0x238] sm:$0xff]  }
  0xe5   : > { %5709 = vmatprep.subr.bf16.mxu1 %v6449_v1 }
  0xe6   : > { %5666 = vmatmul.mubr.bf16.vlgmr.msra.gmra.mrb[24].mxu0 %v4503_v15  ;;  %v4604_v15 = vld [vmem:[%s6545_s21 + $0x1c] sm:$0x3] }
  0xe7   : > { %5686 = vmatmul.mubr.bf16.vlgmr.msra.gmra.mrb[24].mxu1 %v4528_v16  ;;  %5690 = vmatpush3.bf16.msra.mxu0 %v6256_v17  ;;  %v2084_v16 = vor.u32 %v2083_v13, %v2079_v12  ;;  %v6290_v17 = vld [vmem:[%s7785_s1 + $0x40] sm:$0xff]  }
  0xe8   : > { %5710 = vmatpush3.bf16.msra.mxu1 %v6257_v18  ;;  %5691 = vmatprep.subr.bf16.mxu0 %v6449_v1  ;;  %v6291_v18 = vld [vmem:[%s7785_s1] sm:$0xff]  }
  0xe9   : > { %5711 = vmatprep.subr.bf16.mxu1 %v6449_v1  ;;  %5705 = vmatprep.mubr.msk.bf16.mxu0 %vm6450_vm0, %v6449_v1  ;;  %v6323_v13 = vld [vmem:[%s7785_s1 + $0x100] sm:$0xff]  }
  0xea   : > { %5725 = vmatprep.mubr.msk.bf16.mxu1 %vm6450_vm0, %v6449_v1 }
  0xeb   : > { %5692 = vmatpush3.bf16.msra.mxu0 %v6258_v19  ;;  %v6292_v19 = vld [vmem:[%s7785_s1 + $0x48] sm:$0xff]  }
  0xec   : > { %5712 = vmatpush3.bf16.msra.mxu1 %v6259_v20  ;;  %5693 = vmatprep.subr.bf16.mxu0 %v6449_v1  ;;  %v6293_v20 = vld [vmem:[%s7785_s1 + $0x8] sm:$0xff]  }
  0xed   : > { %5713 = vmatprep.subr.bf16.mxu1 %v6449_v1 }
  0xef   : > { %5694 = vmatpush3.bf16.msra.mxu0 %v6260_v21  ;;  %v6294_v21 = vld [vmem:[%s7785_s1 + $0x50] sm:$0xff]  }
  0xf0   : > { %5714 = vmatpush3.bf16.msra.mxu1 %v6261_v22  ;;  %5695 = vmatprep.subr.bf16.mxu0 %v6449_v1  ;;  %v6295_v22 = vld [vmem:[%s7785_s1 + $0x10] sm:$0xff]  }
  0xf1   : > { %5715 = vmatprep.subr.bf16.mxu1 %v6449_v1 }
  0xf3   : > { %5696 = vmatpush3.bf16.msra.mxu0 %v6262_v23  ;;  %v6296_v23 = vld [vmem:[%s7785_s1 + $0x58] sm:$0xff]  }
  0xf4   : > { %5716 = vmatpush3.bf16.msra.mxu1 %v6263_v24  ;;  %5697 = vmatprep.subr.bf16.mxu0 %v6449_v1  ;;  %v6297_v24 = vld [vmem:[%s7785_s1 + $0x18] sm:$0xff]  }
  0xf5   : > { %5717 = vmatprep.subr.bf16.mxu1 %v6449_v1 }
  0xf7   : > { %5698 = vmatpush3.bf16.msra.mxu0 %v6264_v25  ;;  %v6298_v25 = vld [vmem:[%s7785_s1 + $0x60] sm:$0xff]  }
  0xf8   : > { %5718 = vmatpush3.bf16.msra.mxu1 %v6265_v26  ;;  %5699 = vmatprep.subr.bf16.mxu0 %v6449_v1  ;;  %v6299_v26 = vld [vmem:[%s7785_s1 + $0x20] sm:$0xff]  }
  0xf9   : > { %v296_v30 = vpop.f32.mrb[0].mxu0  ;;  %5719 = vmatprep.subr.bf16.mxu1 %v6449_v1 }
  0xfa   : > { %v384_v31 = vpop.f32.mrb[0].mxu1  ;;  %v5427_v32 = vpop.f32.mrb[1].mxu0 }
  0xfb   : > { %v7033_v35 = vadd.f32 %v384_v31, %v296_v30  ;;  %v5447_v36 = vpop.f32.mrb[1].mxu1  ;;  %v299_v37 = vpop.f32.mrb[2].mxu0  ;;  %5700 = vmatpush3.bf16.msra.mxu0 %v6266_v28  ;;  %v6301_v28 = vld [vmem:[%s7785_s1 + $0x28] sm:$0xff]  }
  0xfc   : > { %v387_v38 = vpop.f32.mrb[2].mxu1  ;;  %5720 = vmatpush3.bf16.msra.mxu1 %v6267_v29  ;;  %v5428_v39 = vpop.f32.mrb[3].mxu0  ;;  %5701 = vmatprep.subr.bf16.mxu0 %v6449_v1 }
  0xfd   : > { %v5448_v41 = vpop.f32.mrb[3].mxu1  ;;  %5721 = vmatprep.subr.bf16.mxu1 %v6449_v1  ;;  %v6303_v39 = vld [vmem:[%s7785_s1 + $0x30] sm:$0xff]  }
  0xfe   : > { %v6304_v41 = vld [vmem:[%s7785_s1 + $0x78] sm:$0xff]  }
  0xff   : > { %5702 = vmatpush3.bf16.msra.mxu0 %v6268_v33 }
 0x100   : > { %5722 = vmatpush3.bf16.msra.mxu1 %v6269_v40  ;;  %5703 = vmatprep.subr.bf16.mxu0 %v6449_v1 }
 0x101   : > { %5723 = vmatprep.subr.bf16.mxu1 %v6449_v1 }
 0x103   : > { %5704 = vmatpush3.bf16.msra.mxu0 %v6270_v44  ;;  %v6306_v44 = vld [vmem:[%s7785_s1 + $0x80] sm:$0xff]  }
 0x104   : > { %5724 = vmatpush3.bf16.msra.mxu1 %v6271_v45  ;;  %5729 = vmatprep.subr.bf16.mxu0 %v6449_v1  ;;  %v4656_v45 = vld [vmem:[%s6545_s21 + $0x8] sm:$0x3] }
 0x105   : > { %5749 = vmatprep.subr.bf16.mxu1 %v6449_v1 }
 0x106   : > { %5706 = vmatmul.mubr.bf16.vlgmr.msra.gmra.mrb[28].mxu0 %v1753_v46  ;;  %v6307_v46 = vld [vmem:[%s7785_s1 + $0xc0] sm:$0xff]  }
 0x107   : > { %5726 = vmatmul.mubr.bf16.vlgmr.msra.gmra.mrb[28].mxu1 %v4579_v48  ;;  %5730 = vmatpush3.bf16.msra.mxu0 %v6273_v47  ;;  %v6308_v47 = vld [vmem:[%s7785_s1 + $0x88] sm:$0xff]  }
 0x108   : > { %5750 = vmatpush3.bf16.msra.mxu1 %v6274_v49  ;;  %5731 = vmatprep.subr.bf16.mxu0 %v6449_v1  ;;  %v6309_v48 = vld [vmem:[%s7785_s1 + $0xc8] sm:$0xff]   ;;  %v6310_v49 = vld [vmem:[%s7785_s1 + $0x90] sm:$0xff]  }
 0x109   : > { %5751 = vmatprep.subr.bf16.mxu1 %v6449_v1  ;;  %5745 = vmatprep.mubr.msk.bf16.mxu0 %vm6450_vm0, %v6449_v1 }
 0x10a   : > { %5765 = vmatprep.mubr.msk.bf16.mxu1 %vm6450_vm0, %v6449_v1 }
 0x10b   : > { %5732 = vmatpush3.bf16.msra.mxu0 %v6275_v50  ;;  %v6311_v50 = vld [vmem:[%s7785_s1 + $0xd0] sm:$0xff]  }
 0x10c   : > { %5752 = vmatpush3.bf16.msra.mxu1 %v6276_v51  ;;  %5733 = vmatprep.subr.bf16.mxu0 %v6449_v1  ;;  %v6312_v51 = vld [vmem:[%s7785_s1 + $0x98] sm:$0xff]  }
 0x10d   : > { %5753 = vmatprep.subr.bf16.mxu1 %v6449_v1 }
 0x10f   : > { %5734 = vmatpush3.bf16.msra.mxu0 %v6277_v52  ;;  %v6313_v52 = vld [vmem:[%s7785_s1 + $0xd8] sm:$0xff]  }
 0x110   : > { %5754 = vmatpush3.bf16.msra.mxu1 %v6278_v53  ;;  %5735 = vmatprep.subr.bf16.mxu0 %v6449_v1  ;;  %v6314_v53 = vld [vmem:[%s7785_s1 + $0xa0] sm:$0xff]  }
 0x111   : > { %5755 = vmatprep.subr.bf16.mxu1 %v6449_v1 }
 0x113   : > { %5736 = vmatpush3.bf16.msra.mxu0 %v6279_v54  ;;  %v6315_v54 = vld [vmem:[%s7785_s1 + $0xe0] sm:$0xff]  }
 0x114   : > { %5756 = vmatpush3.bf16.msra.mxu1 %v6280_v55  ;;  %5737 = vmatprep.subr.bf16.mxu0 %v6449_v1  ;;  %v6322_v55 = vld [vmem:[%s6545_s21 + $0x8] ss:$0 sps:$4 sm:$0x77]  }
 0x115   : > { %5757 = vmatprep.subr.bf16.mxu1 %v6449_v1 }
 0x117   : > { %5738 = vmatpush3.bf16.msra.mxu0 %v6281_v56  ;;  %v6316_v56 = vld [vmem:[%s7785_s1 + $0xa8] sm:$0xff]  }
 0x118   : > { %5758 = vmatpush3.bf16.msra.mxu1 %v6282_v57  ;;  %5739 = vmatprep.subr.bf16.mxu0 %v6449_v1  ;;  %v6317_v57 = vld [vmem:[%s7785_s1 + $0xe8] sm:$0xff]  }
 0x119   : > { %v501_v61 = vpop.f32.mrb[4].mxu0  ;;  %5759 = vmatprep.subr.bf16.mxu1 %v6449_v1 }
 0x11a   : > { %v507_v62 = vadd.f32 %v501_v61, %v7033_v35  ;;  %v609_v63 = vpop.f32.mrb[4].mxu1  ;;  %v5467_v0 = vpop.f32.mrb[5].mxu0  ;;  %v6302_v35 = vld [vmem:[%s7785_s1 + $0x70] sm:$0xff]  }
 0x11b   : > { %v5487_v2 = vpop.f32.mrb[5].mxu1  ;;  %v504_v3 = vpop.f32.mrb[6].mxu0  ;;  %5740 = vmatpush3.bf16.msra.mxu0 %v6283_v58 }
 0x11c   : > { %v615_v6 = vadd.f32 %v609_v63, %v507_v62  ;;  %v612_v7 = vpop.f32.mrb[6].mxu1  ;;  %5760 = vmatpush3.bf16.msra.mxu1 %v6284_v60  ;;  %v5468_v8 = vpop.f32.mrb[7].mxu0  ;;  %5741 = vmatprep.subr.bf16.mxu0 %v6449_v1  ;;  %v2413_v62 = vshll.u32 %v6322_v55, 16  ;;  %v6318_v2 = vld [vmem:[%s7785_s1 + $0xb0] sm:$0xff]  }
 0x11d   : > { %v5488_v10 = vpop.f32.mrb[7].mxu1  ;;  %5761 = vmatprep.subr.bf16.mxu1 %v6449_v1  ;;  %v2411_v8 = vshrl.u32 %v6322_v55, 16  ;;  %v6346_v55 = vld [vmem:[%s7785_s1 + $0x198] sm:$0xff]  }
 0x11e   : > { %v6320_v10 = vld [vmem:[%s7785_s1 + $0xb8] sm:$0xff]  }
 0x11f   : > { %5742 = vmatpush3.bf16.msra.mxu0 %v6285_v4 }
 0x120   : > { %5762 = vmatpush3.bf16.msra.mxu1 %v6286_v9  ;;  %5743 = vmatprep.subr.bf16.mxu0 %v6449_v1  ;;  %v2415_v9 = vrot.slane %v2413_v62, 1 }
 0x121   : > { %5763 = vmatprep.subr.bf16.mxu1 %v6449_v1 }
 0x122   : > { %v2416_v12 = vor.u32 %v2415_v9, %v2411_v8  ;;  %v6353_v8 = vld [vmem:[%s7785_s1 + $0x1f0] sm:$0xff]  }
 0x123   : > { %5744 = vmatpush3.bf16.msra.mxu0 %v6287_v11  ;;  %v6321_v11 = vld [vmem:[%s7785_s1 + $0xf8] sm:$0xff]  }
 0x124   : > { %5764 = vmatpush3.bf16.msra.mxu1 %v6288_v14  ;;  %5769 = vmatprep.subr.bf16.mxu0 %v6449_v1  ;;  %v4716_v14 = vld [vmem:[%s6545_s21 + $0x30] sm:$0x3] }
 0x125   : > { %5789 = vmatprep.subr.bf16.mxu1 %v6449_v1 }
 0x126   : > { %5746 = vmatmul.mubr.bf16.vlgmr.msra.gmra.mrb[32].mxu0 %v4604_v15  ;;  %v6324_v15 = vld [vmem:[%s7785_s1 + $0x140] sm:$0xff]  }
 0x127   : > { %5766 = vmatmul.mubr.bf16.vlgmr.msra.gmra.mrb[32].mxu1 %v2084_v16  ;;  %5770 = vmatpush3.bf16.msra.mxu0 %v6290_v17  ;;  %v6325_v16 = vld [vmem:[%s7785_s1 + $0x108] sm:$0xff]  }
 0x128   : > { %5790 = vmatpush3.bf16.msra.mxu1 %v6291_v18  ;;  %5771 = vmatprep.subr.bf16.mxu0 %v6449_v1  ;;  %v6326_v17 = vld [vmem:[%s7785_s1 + $0x148] sm:$0xff]   ;;  %v6327_v18 = vld [vmem:[%s7785_s1 + $0x110] sm:$0xff]  }
 0x129   : > { %5791 = vmatprep.subr.bf16.mxu1 %v6449_v1  ;;  %5785 = vmatprep.mubr.msk.bf16.mxu0 %vm6450_vm0, %v6449_v1 }
 0x12a   : > { %5805 = vmatprep.mubr.msk.bf16.mxu1 %vm6450_vm0, %v6449_v1 }
 0x12b   : > { %5772 = vmatpush3.bf16.msra.mxu0 %v6292_v19  ;;  %v6328_v19 = vld [vmem:[%s7785_s1 + $0x150] sm:$0xff]  }
 0x12c   : > { %5792 = vmatpush3.bf16.msra.mxu1 %v6293_v20  ;;  %5773 = vmatprep.subr.bf16.mxu0 %v6449_v1  ;;  %v6329_v20 = vld [vmem:[%s7785_s1 + $0x118] sm:$0xff]  }
 0x12d   : > { %5793 = vmatprep.subr.bf16.mxu1 %v6449_v1 }
 0x12f   : > { %5774 = vmatpush3.bf16.msra.mxu0 %v6294_v21  ;;  %v6330_v21 = vld [vmem:[%s7785_s1 + $0x158] sm:$0xff]  }
 0x130   : > { %5794 = vmatpush3.bf16.msra.mxu1 %v6295_v22  ;;  %5775 = vmatprep.subr.bf16.mxu0 %v6449_v1  ;;  %v6331_v22 = vld [vmem:[%s7785_s1 + $0x120] sm:$0xff]  }
 0x131   : > { %5795 = vmatprep.subr.bf16.mxu1 %v6449_v1 }
 0x133   : > { %5776 = vmatpush3.bf16.msra.mxu0 %v6296_v23  ;;  %v6332_v23 = vld [vmem:[%s7785_s1 + $0x160] sm:$0xff]  }
 0x134   : > { %5796 = vmatpush3.bf16.msra.mxu1 %v6297_v24  ;;  %5777 = vmatprep.subr.bf16.mxu0 %v6449_v1  ;;  %v6333_v24 = vld [vmem:[%s7785_s1 + $0x128] sm:$0xff]  }
 0x135   : > { %5797 = vmatprep.subr.bf16.mxu1 %v6449_v1 }
 0x137   : > { %5778 = vmatpush3.bf16.msra.mxu0 %v6298_v25  ;;  %v6339_v25 = vld [vmem:[%s6545_s21 + $0x30] ss:$0 sps:$4 sm:$0x77]  }
 0x138   : > { %5798 = vmatpush3.bf16.msra.mxu1 %v6299_v26  ;;  %5779 = vmatprep.subr.bf16.mxu0 %v6449_v1  ;;  %v6334_v26 = vld [vmem:[%s7785_s1 + $0x168] sm:$0xff]  }
 0x139   : > { %v717_v29 = vpop.f32.mrb[8].mxu0  ;;  %5799 = vmatprep.subr.bf16.mxu1 %v6449_v1 }
 0x13a   : > { %v723_v30 = vadd.f32 %v717_v29, %v615_v6  ;;  %v835_v31 = vpop.f32.mrb[8].mxu1  ;;  %v5507_v32 = vpop.f32.mrb[9].mxu0  ;;  %v6319_v6 = vld [vmem:[%s7785_s1 + $0xf0] sm:$0xff]  }
 0x13b   : > { %v5527_v33 = vpop.f32.mrb[9].mxu1  ;;  %v720_v34 = vpop.f32.mrb[10].mxu0  ;;  %5780 = vmatpush3.bf16.msra.mxu0 %v6300_v27  ;;  %v7319_v27 = vld [vmem:[%s7786_s2] ss:$0 sm:$0xff] }
 0x13c   : > { %v841_v36 = vadd.f32 %v835_v31, %v723_v30  ;;  %v838_v37 = vpop.f32.mrb[10].mxu1  ;;  %5800 = vmatpush3.bf16.msra.mxu1 %v6301_v28  ;;  %v5508_v38 = vpop.f32.mrb[11].mxu0  ;;  %5781 = vmatprep.subr.bf16.mxu0 %v6449_v1  ;;  %v6335_v34 = vld [vmem:[%s7785_s1 + $0x130] sm:$0xff]  }
 0x13d   : > { %v5528_v40 = vpop.f32.mrb[11].mxu1  ;;  %5801 = vmatprep.subr.bf16.mxu1 %v6449_v1 }
 0x13f   : > { %5782 = vmatpush3.bf16.msra.mxu0 %v6302_v35  ;;  %v2744_v35 = vshll.u32 %v6339_v25, 16 }
 0x140   : > { %5802 = vmatpush3.bf16.msra.mxu1 %v6303_v39  ;;  %5783 = vmatprep.subr.bf16.mxu0 %v6449_v1  ;;  %v6336_v39 = vld [vmem:[%s7785_s1 + $0x170] sm:$0xff]  }
 0x141   : > { %5803 = vmatprep.subr.bf16.mxu1 %v6449_v1 }
 0x143   : > { %5784 = vmatpush3.bf16.msra.mxu0 %v6304_v41 }
 0x144   : > { %5804 = vmatpush3.bf16.msra.mxu1 %v6305_v42  ;;  %5809 = vmatprep.subr.bf16.mxu0 %v6449_v1  ;;  %v6337_v42 = vld [vmem:[%s7785_s1 + $0x138] sm:$0xff]  }
 0x145   : > { %5829 = vmatprep.subr.bf16.mxu1 %v6449_v1 }
 0x146   : > { %5786 = vmatmul.mubr.bf16.vlgmr.msra.gmra.mrb[36].mxu0 %v4657_v43  ;;  %v2742_v43 = vshrl.u32 %v6339_v25, 16  ;;  %v6366_v25 = vld [vmem:[%s7785_s1 + $0x228] sm:$0xff]  }
 0x147   : > { %5806 = vmatmul.mubr.bf16.vlgmr.msra.gmra.mrb[36].mxu1 %v4656_v45  ;;  %5810 = vmatpush3.bf16.msra.mxu0 %v6306_v44  ;;  %v2746_v44 = vrot.slane %v2744_v35, 1  ;;  %v6368_v35 = vld [vmem:[%s7785_s1 + $0x230] sm:$0xff]  }
 0x148   : > { %5830 = vmatpush3.bf16.msra.mxu1 %v6307_v46  ;;  %5811 = vmatprep.subr.bf16.mxu0 %v6449_v1  ;;  %v6338_v46 = vld [vmem:[%s7785_s1 + $0x178] sm:$0xff]  }
 0x149   : > { %5831 = vmatprep.subr.bf16.mxu1 %v6449_v1  ;;  %5825 = vmatprep.mubr.msk.bf16.mxu0 %vm6450_vm0, %v6449_v1 }
 0x14a   : > { %5845 = vmatprep.mubr.msk.bf16.mxu1 %vm6450_vm0, %v6449_v1 }
 0x14b   : > { %5812 = vmatpush3.bf16.msra.mxu0 %v6308_v47  ;;  %v4741_v47 = vld [vmem:[%s6545_s21 + $0x44] sm:$0x3] }
 0x14c   : > { %5832 = vmatpush3.bf16.msra.mxu1 %v6309_v48  ;;  %5813 = vmatprep.subr.bf16.mxu0 %v6449_v1  ;;  %v2747_v48 = vor.u32 %v2746_v44, %v2742_v43  ;;  %v6370_v43 = vld [vmem:[%s7785_s1 + $0x238] sm:$0xff]  }
 0x14d   : > { %5833 = vmatprep.subr.bf16.mxu1 %v6449_v1  ;;  %v6371_v44 = vld [vmem:[%s7785_s1 + $0x78] sm:$0xff]  }
 0x14f   : > { %5814 = vmatpush3.bf16.msra.mxu0 %v6310_v49  ;;  %v6340_v49 = vld [vmem:[%s7785_s1 + $0x180] sm:$0xff]  }
 0x150   : > { %5834 = vmatpush3.bf16.msra.mxu1 %v6311_v50  ;;  %5815 = vmatprep.subr.bf16.mxu0 %v6449_v1  ;;  %v6341_v50 = vld [vmem:[%s7785_s1 + $0x1c0] sm:$0xff]  }
 0x151   : > { %5835 = vmatprep.subr.bf16.mxu1 %v6449_v1 }
 0x153   : > { %5816 = vmatpush3.bf16.msra.mxu0 %v6312_v51  ;;  %v6342_v51 = vld [vmem:[%s7785_s1 + $0x188] sm:$0xff]  }
 0x154   : > { %5836 = vmatpush3.bf16.msra.mxu1 %v6313_v52  ;;  %5817 = vmatprep.subr.bf16.mxu0 %v6449_v1  ;;  %v6343_v52 = vld [vmem:[%s7785_s1 + $0x1c8] sm:$0xff]  }
 0x155   : > { %5837 = vmatprep.subr.bf16.mxu1 %v6449_v1 }
 0x157   : > { %5818 = vmatpush3.bf16.msra.mxu0 %v6314_v53  ;;  %v6344_v53 = vld [vmem:[%s7785_s1 + $0x190] sm:$0xff]  }
 0x158   : > { %5838 = vmatpush3.bf16.msra.mxu1 %v6315_v54  ;;  %5819 = vmatprep.subr.bf16.mxu0 %v6449_v1  ;;  %v6345_v54 = vld [vmem:[%s7785_s1 + $0x1d0] sm:$0xff]  }
 0x159   : > { %v943_v58 = vpop.f32.mrb[12].mxu0  ;;  %5839 = vmatprep.subr.bf16.mxu1 %v6449_v1 }
 0x15a   : > { %v949_v59 = vadd.f32 %v943_v58, %v841_v36  ;;  %v1051_v60 = vpop.f32.mrb[12].mxu1  ;;  %v5547_v61 = vpop.f32.mrb[13].mxu0  ;;  %v6349_v58 = vld [vmem:[%s7785_s1 + $0x1e0] sm:$0xff]  }
 0x15b   : > { %v5567_v63 = vpop.f32.mrb[13].mxu1  ;;  %v946_v0 = vpop.f32.mrb[14].mxu0  ;;  %5820 = vmatpush3.bf16.msra.mxu0 %v6316_v56  ;;  %v6347_v56 = vld [vmem:[%s7785_s1 + $0x1d8] sm:$0xff]  }
 0x15c   : > { %v7246_v3 = vadd.f32 %v1051_v60, %v949_v59  ;;  %v1054_v4 = vpop.f32.mrb[14].mxu1  ;;  %5840 = vmatpush3.bf16.msra.mxu1 %v6317_v57  ;;  %v5548_v5 = vpop.f32.mrb[15].mxu0  ;;  %5821 = vmatprep.subr.bf16.mxu0 %v6449_v1  ;;  %v6348_v57 = vld [vmem:[%s7785_s1 + $0x1a0] sm:$0xff]   ;;  %v6350_v59 = vld [vmem:[%s7785_s1 + $0x1a8] sm:$0xff]  }
 0x15d   : > { %v5568_v7 = vpop.f32.mrb[15].mxu1  ;;  %5841 = vmatprep.subr.bf16.mxu1 %v6449_v1  ;;  %v6351_v60 = vld [vmem:[%s7785_s1 + $0x1e8] sm:$0xff]   ;;  %v6352_v4 = vld [vmem:[%s7785_s1 + $0x1b0] sm:$0xff]  }
 0x15f   : > { %5822 = vmatpush3.bf16.msra.mxu0 %v6318_v2 }
 0x160   : > { %5842 = vmatpush3.bf16.msra.mxu1 %v6319_v6  ;;  %5823 = vmatprep.subr.bf16.mxu0 %v6449_v1 }
 0x161   : > { %5843 = vmatprep.subr.bf16.mxu1 %v6449_v1 }
 0x163   : > { %5824 = vmatpush3.bf16.msra.mxu0 %v6320_v10  ;;  %v6354_v10 = vld [vmem:[%s7785_s1 + $0x1b8] sm:$0xff]  }
 0x164   : > { %5844 = vmatpush3.bf16.msra.mxu1 %v6321_v11  ;;  %5849 = vmatprep.subr.bf16.mxu0 %v6449_v1  ;;  %v6355_v11 = vld [vmem:[%s7785_s1 + $0x1f8] sm:$0xff]  }
 0x165   : > { %5869 = vmatprep.subr.bf16.mxu1 %v6449_v1 }
 0x166   : > { %5826 = vmatmul.mubr.bf16.vlgmr.msra.gmra.mrb[40].mxu0 %v2416_v12  ;;  %v4792_v12 = vld [vmem:[%s6545_s21 + $0xc] sm:$0x3] }
 0x167   : > { %5846 = vmatmul.mubr.bf16.vlgmr.msra.gmra.mrb[40].mxu1 %v4716_v14  ;;  %5850 = vmatpush3.bf16.msra.mxu0 %v6323_v13  ;;  %v6356_v13 = vld [vmem:[%s7785_s1 + $0x200] sm:$0xff]  }
 0x168   : > { %5870 = vmatpush3.bf16.msra.mxu1 %v6324_v15  ;;  %5851 = vmatprep.subr.bf16.mxu0 %v6449_v1  ;;  %v4817_v14 = vld [vmem:[%s6545_s21 + $0x20] sm:$0x3] }
 0x169   : > { %5871 = vmatprep.subr.bf16.mxu1 %v6449_v1  ;;  %5865 = vmatprep.mubr.msk.bf16.mxu0 %vm6450_vm0, %v6449_v1  ;;  %v6357_v15 = vld [vmem:[%s7785_s1 + $0x40] sm:$0xff]  }
 0x16a   : > { %5885 = vmatprep.mubr.msk.bf16.mxu1 %vm6450_vm0, %v6449_v1 }
 0x16b   : > { %5852 = vmatpush3.bf16.msra.mxu0 %v6325_v16  ;;  %v6358_v16 = vld [vmem:[%s7785_s1 + $0x208] sm:$0xff]  }
 0x16c   : > { %5872 = vmatpush3.bf16.msra.mxu1 %v6326_v17  ;;  %5853 = vmatprep.subr.bf16.mxu0 %v6449_v1  ;;  %v6359_v17 = vld [vmem:[%s7785_s1 + $0x48] sm:$0xff]  }
 0x16d   : > { %5873 = vmatprep.subr.bf16.mxu1 %v6449_v1 }
 0x16f   : > { %5854 = vmatpush3.bf16.msra.mxu0 %v6327_v18  ;;  %v6360_v18 = vld [vmem:[%s7785_s1 + $0x210] sm:$0xff]  }
 0x170   : > { %5874 = vmatpush3.bf16.msra.mxu1 %v6328_v19  ;;  %5855 = vmatprep.subr.bf16.mxu0 %v6449_v1  ;;  %v6361_v19 = vld [vmem:[%s7785_s1 + $0x50] sm:$0xff]  }
 0x171   : > { %5875 = vmatprep.subr.bf16.mxu1 %v6449_v1 }
 0x173   : > { %5856 = vmatpush3.bf16.msra.mxu0 %v6329_v20  ;;  %v6362_v20 = vld [vmem:[%s7785_s1 + $0x218] sm:$0xff]  }
 0x174   : > { %5876 = vmatpush3.bf16.msra.mxu1 %v6330_v21  ;;  %5857 = vmatprep.subr.bf16.mxu0 %v6449_v1  ;;  %v6363_v21 = vld [vmem:[%s7785_s1 + $0x58] sm:$0xff]  }
 0x175   : > { %5877 = vmatprep.subr.bf16.mxu1 %v6449_v1 }
 0x177   : > { %5858 = vmatpush3.bf16.msra.mxu0 %v6331_v22  ;;  %v6364_v22 = vld [vmem:[%s7785_s1 + $0x220] sm:$0xff]  }
 0x178   : > { %5878 = vmatpush3.bf16.msra.mxu1 %v6332_v23  ;;  %5859 = vmatprep.subr.bf16.mxu0 %v6449_v1  ;;  %v6365_v23 = vld [vmem:[%s7785_s1 + $0x60] sm:$0xff]  }
 0x179   : > { %v1169_v28 = vpop.f32.mrb[16].mxu0  ;;  %5879 = vmatprep.subr.bf16.mxu1 %v6449_v1 }
 0x17a   : > { %v1175_v29 = vadd.f32 %v1169_v28, %v7246_v3  ;;  %v7323_v30 = vpop.f32.mrb[16].mxu1  ;;  %v5587_v31 = vpop.f32.mrb[17].mxu0 }
 0x17b   : > { %v5607_v32 = vpop.f32.mrb[17].mxu1  ;;  %v1172_v33 = vpop.f32.mrb[18].mxu0  ;;  %5860 = vmatpush3.bf16.msra.mxu0 %v6333_v24  ;;  %v6372_v24 = vld [vmem:[%s6545_s21 + $0xc] ss:$0 sps:$4 sm:$0x77]  }
 0x17c   : > { %v1182_v36 = vadd.f32 %v7319_v27, %v1175_v29  ;;  %v1305_v37 = vpop.f32.mrb[18].mxu1  ;;  %5880 = vmatpush3.bf16.msra.mxu1 %v6334_v26  ;;  %v5588_v38 = vpop.f32.mrb[19].mxu0  ;;  %5861 = vmatprep.subr.bf16.mxu0 %v6449_v1  ;;  %v6367_v26 = vld [vmem:[%s7785_s1 + $0x68] sm:$0xff]   ;;  %v3075_v32 = vshll.u32 %v6372_v24, 16 }
 0x17d   : > { %v5608_v40 = vpop.f32.mrb[19].mxu1  ;;  %5881 = vmatprep.subr.bf16.mxu1 %v6449_v1 }
 0x17e   : > { %v1183_v41 = vmax.f32 %v1182_v36, 0.0 }
 0x17f   : > { %5862 = vmatpush3.bf16.msra.mxu0 %v6335_v34 }
 0x180   : > { %v1184_v45 = vpack.c.bf16 %v1183_v41, %v1183_v41  ;;  %5882 = vmatpush3.bf16.msra.mxu1 %v6336_v39  ;;  %5863 = vmatprep.subr.bf16.mxu0 %v6449_v1  ;;  %v6369_v39 = vld [vmem:[%s7785_s1 + $0x70] sm:$0xff]   ;;  %v3073_v41 = vshrl.u32 %v6372_v24, 16  ;;  %v6398_v24 = vld [vmem:[%s7785_s1 + $0xe0] sm:$0xff]  }
 0x181   : > { %5883 = vmatprep.subr.bf16.mxu1 %v6449_v1 }
 0x182   : > { %1185 = vst [vmem:[%s7337_s13] sm:$0x3] %v1184_v45 }
 0x183   : > { %5864 = vmatpush3.bf16.msra.mxu0 %v6337_v42  ;;  %v3077_v42 = vrot.slane %v3075_v32, 1 }
 0x184   : > { %5884 = vmatpush3.bf16.msra.mxu1 %v6338_v46  ;;  %5889 = vmatprep.subr.bf16.mxu0 %v6449_v1  ;;  %v6373_v46 = vld [vmem:[%s7785_s1] sm:$0xff]  }
 0x185   : > { %5909 = vmatprep.subr.bf16.mxu1 %v6449_v1  ;;  %v3078_v45 = vor.u32 %v3077_v42, %v3073_v41  ;;  %v6404_v42 = vld [vmem:[%s7785_s1 + $0xf8] sm:$0xff]  }
 0x186   : > { %5866 = vmatmul.mubr.bf16.vlgmr.msra.gmra.mrb[44].mxu0 %v4741_v47  ;;  %v4870_v47 = vld [vmem:[%s6545_s21 + $0x20] sm:$0x3] }
 0x187   : > { %5886 = vmatmul.mubr.bf16.vlgmr.msra.gmra.mrb[44].mxu1 %v2747_v48  ;;  %5890 = vmatpush3.bf16.msra.mxu0 %v6340_v49  ;;  %v6374_v48 = vld [vmem:[%s7785_s1 + $0x80] sm:$0xff]   ;;  %v6375_v49 = vld [vmem:[%s7785_s1 + $0x8] sm:$0xff]  }
 0x188   : > { %5910 = vmatpush3.bf16.msra.mxu1 %v6341_v50  ;;  %5891 = vmatprep.subr.bf16.mxu0 %v6449_v1  ;;  %v6376_v50 = vld [vmem:[%s7785_s1 + $0x88] sm:$0xff]  }
 0x189   : > { %5911 = vmatprep.subr.bf16.mxu1 %v6449_v1  ;;  %5905 = vmatprep.mubr.msk.bf16.mxu0 %vm6450_vm0, %v6449_v1 }
 0x18a   : > { %5925 = vmatprep.mubr.msk.bf16.mxu1 %vm6450_vm0, %v6449_v1 }
 0x18b   : > { %5892 = vmatpush3.bf16.msra.mxu0 %v6342_v51  ;;  %v6377_v51 = vld [vmem:[%s7785_s1 + $0x10] sm:$0xff]  }
 0x18c   : > { %5912 = vmatpush3.bf16.msra.mxu1 %v6343_v52  ;;  %5893 = vmatprep.subr.bf16.mxu0 %v6449_v1  ;;  %v6378_v52 = vld [vmem:[%s7785_s1 + $0x90] sm:$0xff]  }
 0x18d   : > { %5913 = vmatprep.subr.bf16.mxu1 %v6449_v1 }
 0x18f   : > { %5894 = vmatpush3.bf16.msra.mxu0 %v6344_v53  ;;  %v6379_v53 = vld [vmem:[%s7785_s1 + $0x18] sm:$0xff]  }
 0x190   : > { %5914 = vmatpush3.bf16.msra.mxu1 %v6345_v54  ;;  %5895 = vmatprep.subr.bf16.mxu0 %v6449_v1  ;;  %v6380_v54 = vld [vmem:[%s7785_s1 + $0x98] sm:$0xff]  }
 0x191   : > { %5915 = vmatprep.subr.bf16.mxu1 %v6449_v1 }
 0x193   : > { %5896 = vmatpush3.bf16.msra.mxu0 %v6346_v55  ;;  %v6381_v55 = vld [vmem:[%s7785_s1 + $0x20] sm:$0xff]  }
 0x194   : > { %5916 = vmatpush3.bf16.msra.mxu1 %v6347_v56  ;;  %5897 = vmatprep.subr.bf16.mxu0 %v6449_v1  ;;  %v6382_v56 = vld [vmem:[%s7785_s1 + $0xa0] sm:$0xff]  }
 0x195   : > { %5917 = vmatprep.subr.bf16.mxu1 %v6449_v1 }
 0x197   : > { %5898 = vmatpush3.bf16.msra.mxu0 %v6348_v57  ;;  %v6383_v57 = vld [vmem:[%s7785_s1 + $0x28] sm:$0xff]  }
 0x198   : > { %5918 = vmatpush3.bf16.msra.mxu1 %v6349_v58  ;;  %5899 = vmatprep.subr.bf16.mxu0 %v6449_v1  ;;  %v6389_v58 = vld [vmem:[%s6545_s21 + $0xc] ss:$0 sps:$4 sm:$0x77]  }
 0x199   : > { %v1390_v61 = vpop.f32.mrb[20].mxu0  ;;  %5919 = vmatprep.subr.bf16.mxu1 %v6449_v1 }
 0x19a   : > { %v1391_v62 = vadd.f32 %v1390_v61, %v7323_v30  ;;  %v1506_v63 = vpop.f32.mrb[20].mxu1  ;;  %v5627_v0 = vpop.f32.mrb[21].mxu0 }
 0x19b   : > { %v5647_v2 = vpop.f32.mrb[21].mxu1  ;;  %v1393_v3 = vpop.f32.mrb[22].mxu0  ;;  %5900 = vmatpush3.bf16.msra.mxu0 %v6350_v59  ;;  %v6384_v59 = vld [vmem:[%s7785_s1 + $0xa8] sm:$0xff]  }
 0x19c   : > { %v1512_v5 = vadd.f32 %v1506_v63, %v1391_v62  ;;  %v1509_v6 = vpop.f32.mrb[22].mxu1  ;;  %5920 = vmatpush3.bf16.msra.mxu1 %v6351_v60  ;;  %v5628_v7 = vpop.f32.mrb[23].mxu0  ;;  %5901 = vmatprep.subr.bf16.mxu0 %v6449_v1  ;;  %v6385_v3 = vld [vmem:[%s7785_s1 + $0x30] sm:$0xff]  }
 0x19d   : > { %v5648_v9 = vpop.f32.mrb[23].mxu1  ;;  %5921 = vmatprep.subr.bf16.mxu1 %v6449_v1 }
 0x19f   : > { %5902 = vmatpush3.bf16.msra.mxu0 %v6352_v4  ;;  %v3407_v4 = vshll.u32 %v6389_v58, 16 }
 0x1a0   : > { %5922 = vmatpush3.bf16.msra.mxu1 %v6353_v8  ;;  %5903 = vmatprep.subr.bf16.mxu0 %v6449_v1  ;;  %v6386_v8 = vld [vmem:[%s7785_s1 + $0xb0] sm:$0xff]  }
 0x1a1   : > { %5923 = vmatprep.subr.bf16.mxu1 %v6449_v1 }
 0x1a3   : > { %5904 = vmatpush3.bf16.msra.mxu0 %v6354_v10  ;;  %v6387_v10 = vld [vmem:[%s7785_s1 + $0x38] sm:$0xff]  }
 0x1a4   : > { %5924 = vmatpush3.bf16.msra.mxu1 %v6355_v11  ;;  %5929 = vmatprep.subr.bf16.mxu0 %v6449_v1  ;;  %v3405_v11 = vshrl.u32 %v6389_v58, 16  ;;  %v6422_v58 = vld [vmem:[%s6545_s21 + $0x34] ss:$0 sps:$4 sm:$0x77]  }
 0x1a5   : > { %5949 = vmatprep.subr.bf16.mxu1 %v6449_v1 }
 0x1a6   : > { %5906 = vmatmul.mubr.bf16.vlgmr.msra.gmra.mrb[48].mxu0 %v4792_v12  ;;  %v3409_v12 = vrot.slane %v3407_v4, 1 }
 0x1a7   : > { %5926 = vmatmul.mubr.bf16.vlgmr.msra.gmra.mrb[48].mxu1 %v4817_v14  ;;  %5930 = vmatpush3.bf16.msra.mxu0 %v6356_v13  ;;  %v6388_v13 = vld [vmem:[%s7785_s1 + $0xb8] sm:$0xff]   ;;  %v4869_v14 = vld [vmem:[%s6545_s21 + $0xc] sm:$0x3] }
 0x1a8   : > { %5950 = vmatpush3.bf16.msra.mxu1 %v6357_v15  ;;  %5931 = vmatprep.subr.bf16.mxu0 %v6449_v1  ;;  %v3410_v15 = vor.u32 %v3409_v12, %v3405_v11  ;;  %v6420_v12 = vld [vmem:[%s7785_s1 + $0x178] sm:$0xff]  }
 0x1a9   : > { %5951 = vmatprep.subr.bf16.mxu1 %v6449_v1  ;;  %5945 = vmatprep.mubr.msk.bf16.mxu0 %vm6450_vm0, %v6449_v1 }
 0x1aa   : > { %5965 = vmatprep.mubr.msk.bf16.mxu1 %vm6450_vm0, %v6449_v1 }
 0x1ab   : > { %5932 = vmatpush3.bf16.msra.mxu0 %v6358_v16  ;;  %v6390_v16 = vld [vmem:[%s7785_s1 + $0xc0] sm:$0xff]  }
 0x1ac   : > { %5952 = vmatpush3.bf16.msra.mxu1 %v6359_v17  ;;  %5933 = vmatprep.subr.bf16.mxu0 %v6449_v1  ;;  %v6391_v17 = vld [vmem:[%s7785_s1 + $0x100] sm:$0xff]  }
 0x1ad   : > { %5953 = vmatprep.subr.bf16.mxu1 %v6449_v1 }
 0x1af   : > { %5934 = vmatpush3.bf16.msra.mxu0 %v6360_v18  ;;  %v6392_v18 = vld [vmem:[%s7785_s1 + $0xc8] sm:$0xff]  }
 0x1b0   : > { %5954 = vmatpush3.bf16.msra.mxu1 %v6361_v19  ;;  %5935 = vmatprep.subr.bf16.mxu0 %v6449_v1  ;;  %v6393_v19 = vld [vmem:[%s7785_s1 + $0x108] sm:$0xff]  }
 0x1b1   : > { %5955 = vmatprep.subr.bf16.mxu1 %v6449_v1 }
 0x1b3   : > { %5936 = vmatpush3.bf16.msra.mxu0 %v6362_v20  ;;  %v6394_v20 = vld [vmem:[%s7785_s1 + $0xd0] sm:$0xff]  }
 0x1b4   : > { %5956 = vmatpush3.bf16.msra.mxu1 %v6363_v21  ;;  %5937 = vmatprep.subr.bf16.mxu0 %v6449_v1  ;;  %v6395_v21 = vld [vmem:[%s7785_s1 + $0x110] sm:$0xff]  }
 0x1b5   : > { %5957 = vmatprep.subr.bf16.mxu1 %v6449_v1 }
 0x1b7   : > { %5938 = vmatpush3.bf16.msra.mxu0 %v6364_v22  ;;  %v6396_v22 = vld [vmem:[%s7785_s1 + $0xd8] sm:$0xff]  }
 0x1b8   : > { %5958 = vmatpush3.bf16.msra.mxu1 %v6365_v23  ;;  %5939 = vmatprep.subr.bf16.mxu0 %v6449_v1  ;;  %v6397_v23 = vld [vmem:[%s7785_s1 + $0x118] sm:$0xff]  }
 0x1b9   : > { %v1613_v28 = vpop.f32.mrb[24].mxu0  ;;  %5959 = vmatprep.subr.bf16.mxu1 %v6449_v1 }
 0x1ba   : > { %v1619_v29 = vadd.f32 %v1613_v28, %v1512_v5  ;;  %v1720_v30 = vpop.f32.mrb[24].mxu1  ;;  %v5667_v31 = vpop.f32.mrb[25].mxu0  ;;  %v6401_v28 = vld [vmem:[%s7785_s1 + $0x128] sm:$0xff]  }
 0x1bb   : > { %v5687_v33 = vpop.f32.mrb[25].mxu1  ;;  %v1616_v34 = vpop.f32.mrb[26].mxu0  ;;  %5940 = vmatpush3.bf16.msra.mxu0 %v6366_v25  ;;  %v6399_v25 = vld [vmem:[%s7785_s1 + $0x120] sm:$0xff]  }
 0x1bc   : > { %v1726_v36 = vadd.f32 %v1720_v30, %v1619_v29  ;;  %v1723_v37 = vpop.f32.mrb[26].mxu1  ;;  %5960 = vmatpush3.bf16.msra.mxu1 %v6367_v26  ;;  %v5668_v38 = vpop.f32.mrb[27].mxu0  ;;  %5941 = vmatprep.subr.bf16.mxu0 %v6449_v1  ;;  %v6400_v26 = vld [vmem:[%s7785_s1 + $0xe8] sm:$0xff]  }
 0x1bd   : > { %v5688_v40 = vpop.f32.mrb[27].mxu1  ;;  %5961 = vmatprep.subr.bf16.mxu1 %v6449_v1 }
 0x1bf   : > { %5942 = vmatpush3.bf16.msra.mxu0 %v6368_v35  ;;  %v6402_v35 = vld [vmem:[%s7785_s1 + $0xf0] sm:$0xff]  }
 0x1c0   : > { %5962 = vmatpush3.bf16.msra.mxu1 %v6369_v39  ;;  %5943 = vmatprep.subr.bf16.mxu0 %v6449_v1  ;;  %v6403_v39 = vld [vmem:[%s7785_s1 + $0x130] sm:$0xff]  }
 0x1c1   : > { %5963 = vmatprep.subr.bf16.mxu1 %v6449_v1 }
 0x1c3   : > { %5944 = vmatpush3.bf16.msra.mxu0 %v6370_v43 }
 0x1c4   : > { %5964 = vmatpush3.bf16.msra.mxu1 %v6371_v44  ;;  %5969 = vmatprep.subr.bf16.mxu0 %v6449_v1  ;;  %v6405_v44 = vld [vmem:[%s7785_s1 + $0x138] sm:$0xff]  }
 0x1c5   : > { %5989 = vmatprep.subr.bf16.mxu1 %v6449_v1 }
 0x1c6   : > { %5946 = vmatmul.mubr.bf16.vlgmr.msra.gmra.mrb[52].mxu0 %v3078_v45 }
 0x1c7   : > { %5966 = vmatmul.mubr.bf16.vlgmr.msra.gmra.mrb[52].mxu1 %v4870_v47  ;;  %5970 = vmatpush3.bf16.msra.mxu0 %v6373_v46  ;;  %v4929_v46 = vld [vmem:[%s6545_s21 + $0x34] sm:$0x3]  ;;  %v6406_v47 = vld [vmem:[%s7785_s1 + $0x140] sm:$0xff]  }
 0x1c8   : > { %5990 = vmatpush3.bf16.msra.mxu1 %v6374_v48  ;;  %5971 = vmatprep.subr.bf16.mxu0 %v6449_v1  ;;  %v4954_v48 = vld [vmem:[%s6545_s21 + $0x48] sm:$0x3] }
 0x1c9   : > { %5991 = vmatprep.subr.bf16.mxu1 %v6449_v1  ;;  %5985 = vmatprep.mubr.msk.bf16.mxu0 %vm6450_vm0, %v6449_v1 }
 0x1ca   : > { %6005 = vmatprep.mubr.msk.bf16.mxu1 %vm6450_vm0, %v6449_v1 }
 0x1cb   : > { %5972 = vmatpush3.bf16.msra.mxu0 %v6375_v49  ;;  %v6407_v49 = vld [vmem:[%s7785_s1 + $0x180] sm:$0xff]  }
 0x1cc   : > { %5992 = vmatpush3.bf16.msra.mxu1 %v6376_v50  ;;  %5973 = vmatprep.subr.bf16.mxu0 %v6449_v1  ;;  %v6408_v50 = vld [vmem:[%s7785_s1 + $0x148] sm:$0xff]  }
 0x1cd   : > { %5993 = vmatprep.subr.bf16.mxu1 %v6449_v1 }
 0x1cf   : > { %5974 = vmatpush3.bf16.msra.mxu0 %v6377_v51  ;;  %v6409_v51 = vld [vmem:[%s7785_s1 + $0x188] sm:$0xff]  }
 0x1d0   : > { %5994 = vmatpush3.bf16.msra.mxu1 %v6378_v52  ;;  %5975 = vmatprep.subr.bf16.mxu0 %v6449_v1  ;;  %v6410_v52 = vld [vmem:[%s7785_s1 + $0x150] sm:$0xff]  }
 0x1d1   : > { %5995 = vmatprep.subr.bf16.mxu1 %v6449_v1 }
 0x1d3   : > { %5976 = vmatpush3.bf16.msra.mxu0 %v6379_v53  ;;  %v6411_v53 = vld [vmem:[%s7785_s1 + $0x190] sm:$0xff]  }
 0x1d4   : > { %5996 = vmatpush3.bf16.msra.mxu1 %v6380_v54  ;;  %5977 = vmatprep.subr.bf16.mxu0 %v6449_v1  ;;  %v6412_v54 = vld [vmem:[%s7785_s1 + $0x158] sm:$0xff]  }
 0x1d5   : > { %5997 = vmatprep.subr.bf16.mxu1 %v6449_v1 }
 0x1d7   : > { %5978 = vmatpush3.bf16.msra.mxu0 %v6381_v55  ;;  %v6413_v55 = vld [vmem:[%s7785_s1 + $0x198] sm:$0xff]  }
 0x1d8   : > { %5998 = vmatpush3.bf16.msra.mxu1 %v6382_v56  ;;  %5979 = vmatprep.subr.bf16.mxu0 %v6449_v1  ;;  %v6414_v56 = vld [vmem:[%s7785_s1 + $0x160] sm:$0xff]  }
 0x1d9   : > { %v1837_v60 = vpop.f32.mrb[28].mxu0  ;;  %5999 = vmatprep.subr.bf16.mxu1 %v6449_v1 }
 0x1da   : > { %v1843_v61 = vadd.f32 %v1837_v60, %v1726_v36  ;;  %v1944_v62 = vpop.f32.mrb[28].mxu1  ;;  %v5707_v63 = vpop.f32.mrb[29].mxu0  ;;  %v6417_v60 = vld [vmem:[%s7785_s1 + $0x1a8] sm:$0xff]  }
 0x1db   : > { %v5727_v0 = vpop.f32.mrb[29].mxu1  ;;  %v1840_v2 = vpop.f32.mrb[30].mxu0  ;;  %5980 = vmatpush3.bf16.msra.mxu0 %v6383_v57  ;;  %v6415_v57 = vld [vmem:[%s7785_s1 + $0x1a0] sm:$0xff]  }
 0x1dc   : > { %v1950_v5 = vadd.f32 %v1944_v62, %v1843_v61  ;;  %v1947_v6 = vpop.f32.mrb[30].mxu1  ;;  %6000 = vmatpush3.bf16.msra.mxu1 %v6384_v59  ;;  %v5708_v7 = vpop.f32.mrb[31].mxu0  ;;  %5981 = vmatprep.subr.bf16.mxu0 %v6449_v1  ;;  %v6416_v59 = vld [vmem:[%s7785_s1 + $0x168] sm:$0xff]   ;;  %v3738_v0 = vshll.u32 %v6422_v58, 16 }
 0x1dd   : > { %v5728_v9 = vpop.f32.mrb[31].mxu1  ;;  %6001 = vmatprep.subr.bf16.mxu1 %v6449_v1 }
 0x1de   : > { %v3740_v11 = vrot.slane %v3738_v0, 1 }
 0x1df   : > { %5982 = vmatpush3.bf16.msra.mxu0 %v6385_v3 }
 0x1e0   : > { %6002 = vmatpush3.bf16.msra.mxu1 %v6386_v8  ;;  %5983 = vmatprep.subr.bf16.mxu0 %v6449_v1  ;;  %v6419_v8 = vld [vmem:[%s7785_s1 + $0x1b0] sm:$0xff]  }
 0x1e1   : > { %6003 = vmatprep.subr.bf16.mxu1 %v6449_v1 }
 0x1e3   : > { %5984 = vmatpush3.bf16.msra.mxu0 %v6387_v10  ;;  %v3736_v10 = vshrl.u32 %v6422_v58, 16 }
 0x1e4   : > { %6004 = vmatpush3.bf16.msra.mxu1 %v6388_v13  ;;  %6009 = vmatprep.subr.bf16.mxu0 %v6449_v1  ;;  %v6421_v13 = vld [vmem:[%s7785_s1 + $0x1b8] sm:$0xff]  }
 0x1e5   : > { %6029 = vmatprep.subr.bf16.mxu1 %v6449_v1 }
 0x1e6   : > { %5986 = vmatmul.mubr.bf16.vlgmr.msra.gmra.mrb[56].mxu0 %v4869_v14  ;;  %v3741_v14 = vor.u32 %v3740_v11, %v3736_v10 }
 0x1e7   : > { %6006 = vmatmul.mubr.bf16.vlgmr.msra.gmra.mrb[56].mxu1 %v3410_v15  ;;  %6010 = vmatpush3.bf16.msra.mxu0 %v6390_v16  ;;  %v6423_v15 = vld [vmem:[%s7785_s1 + $0x1c0] sm:$0xff]   ;;  %v5005_v16 = vld [vmem:[%s6545_s21 + $0x10] sm:$0x3] }
 0x1e8   : > { %6030 = vmatpush3.bf16.msra.mxu1 %v6391_v17  ;;  %6011 = vmatprep.subr.bf16.mxu0 %v6449_v1  ;;  %v6424_v17 = vld [vmem:[%s7785_s1 + $0x200] sm:$0xff]  }
 0x1e9   : > { %6031 = vmatprep.subr.bf16.mxu1 %v6449_v1  ;;  %6025 = vmatprep.mubr.msk.bf16.mxu0 %vm6450_vm0, %v6449_v1 }
 0x1ea   : > { %6045 = vmatprep.mubr.msk.bf16.mxu1 %vm6450_vm0, %v6449_v1 }
 0x1eb   : > { %6012 = vmatpush3.bf16.msra.mxu0 %v6392_v18  ;;  %v6425_v18 = vld [vmem:[%s7785_s1 + $0x1c8] sm:$0xff]  }
 0x1ec   : > { %6032 = vmatpush3.bf16.msra.mxu1 %v6393_v19  ;;  %6013 = vmatprep.subr.bf16.mxu0 %v6449_v1  ;;  %v6426_v19 = vld [vmem:[%s7785_s1 + $0x208] sm:$0xff]  }
 0x1ed   : > { %6033 = vmatprep.subr.bf16.mxu1 %v6449_v1 }
 0x1ef   : > { %6014 = vmatpush3.bf16.msra.mxu0 %v6394_v20  ;;  %v6427_v20 = vld [vmem:[%s7785_s1 + $0x1d0] sm:$0xff]  }
 0x1f0   : > { %6034 = vmatpush3.bf16.msra.mxu1 %v6395_v21  ;;  %6015 = vmatprep.subr.bf16.mxu0 %v6449_v1  ;;  %v6428_v21 = vld [vmem:[%s7785_s1 + $0x210] sm:$0xff]  }
 0x1f1   : > { %6035 = vmatprep.subr.bf16.mxu1 %v6449_v1 }
 0x1f3   : > { %6016 = vmatpush3.bf16.msra.mxu0 %v6396_v22  ;;  %v6429_v22 = vld [vmem:[%s7785_s1 + $0x1d8] sm:$0xff]  }
 0x1f4   : > { %6036 = vmatpush3.bf16.msra.mxu1 %v6397_v23  ;;  %6017 = vmatprep.subr.bf16.mxu0 %v6449_v1  ;;  %v6430_v23 = vld [vmem:[%s7785_s1 + $0x218] sm:$0xff]  }
 0x1f5   : > { %6037 = vmatprep.subr.bf16.mxu1 %v6449_v1 }
 0x1f7   : > { %6018 = vmatpush3.bf16.msra.mxu0 %v6398_v24  ;;  %v6431_v24 = vld [vmem:[%s7785_s1 + $0x1e0] sm:$0xff]  }
 0x1f8   : > { %6038 = vmatpush3.bf16.msra.mxu1 %v6399_v25  ;;  %6019 = vmatprep.subr.bf16.mxu0 %v6449_v1  ;;  %v6432_v25 = vld [vmem:[%s7785_s1 + $0x220] sm:$0xff]  }
 0x1f9   : > { %v2051_v29 = vpop.f32.mrb[32].mxu0  ;;  %6039 = vmatprep.subr.bf16.mxu1 %v6449_v1 }
 0x1fa   : > { %v2057_v30 = vadd.f32 %v2051_v29, %v1950_v5  ;;  %v2168_v31 = vpop.f32.mrb[32].mxu1  ;;  %v5747_v32 = vpop.f32.mrb[33].mxu0  ;;  %v6418_v5 = vld [vmem:[%s7785_s1 + $0x170] sm:$0xff]   ;;  %v6434_v29 = vld [vmem:[%s7785_s1 + $0x228] sm:$0xff]  }
 0x1fb   : > { %v5767_v33 = vpop.f32.mrb[33].mxu1  ;;  %v2054_v34 = vpop.f32.mrb[34].mxu0  ;;  %6020 = vmatpush3.bf16.msra.mxu0 %v6400_v26  ;;  %v6433_v26 = vld [vmem:[%s7785_s1 + $0x1e8] sm:$0xff]  }
 0x1fc   : > { %v2174_v36 = vadd.f32 %v2168_v31, %v2057_v30  ;;  %v2171_v37 = vpop.f32.mrb[34].mxu1  ;;  %6040 = vmatpush3.bf16.msra.mxu1 %v6401_v28  ;;  %v5748_v38 = vpop.f32.mrb[35].mxu0  ;;  %6021 = vmatprep.subr.bf16.mxu0 %v6449_v1  ;;  %v6439_v28 = vld [vmem:[%s6545_s21 + $0x10] ss:$0 sps:$4 sm:$0x77]  }
 0x1fd   : > { %v5768_v40 = vpop.f32.mrb[35].mxu1  ;;  %6041 = vmatprep.subr.bf16.mxu1 %v6449_v1  ;;  %v4069_v37 = vshll.u32 %v6439_v28, 16 }
 0x1fe   : > { %v2175_v41 = vadd.f32 %v7319_v27, %v2174_v36  ;;  %v6435_v36 = vld [vmem:[%s7785_s1 + $0x1f0] sm:$0xff]  }
 0x1ff   : > { %6022 = vmatpush3.bf16.msra.mxu0 %v6402_v35 }
 0x200   : > { %v2176_v43 = vmax.f32 %v2175_v41, 0.0  ;;  %6042 = vmatpush3.bf16.msra.mxu1 %v6403_v39  ;;  %6023 = vmatprep.subr.bf16.mxu0 %v6449_v1  ;;  %v6436_v41 = vld [vmem:[%s7785_s1 + $0x230] sm:$0xff]  }
 0x201   : > { %6043 = vmatprep.subr.bf16.mxu1 %v6449_v1 }
 0x202   : > { %v2177_v45 = vpack.c.bf16 %v2176_v43, %v2176_v43  ;;  %v6437_v43 = vld [vmem:[%s7785_s1 + $0x1f8] sm:$0xff]  }
 0x203   : > { %6024 = vmatpush3.bf16.msra.mxu0 %v6404_v42 }
 0x204   : > { %4655 = vst [vmem:[%s7337_s13 + $0x2] sm:$0x3] %v2177_v45  ;;  %6044 = vmatpush3.bf16.msra.mxu1 %v6405_v44  ;;  %6049 = vmatprep.subr.bf16.mxu0 %v6449_v1  ;;  %v4067_v44 = vshrl.u32 %v6439_v28, 16  ;;  %v4071_v45 = vrot.slane %v4069_v37, 1 }
 0x205   : > { %6069 = vmatprep.subr.bf16.mxu1 %v6449_v1 }
 0x206   : > { %6026 = vmatmul.mubr.bf16.vlgmr.msra.gmra.mrb[60].mxu0 %v4929_v46  ;;  %v6438_v46 = vld [vmem:[%s7785_s1 + $0x238] sm:$0xff]  }
 0x207   : > { %6046 = vmatmul.mubr.bf16.vlgmr.msra.gmra.mrb[60].mxu1 %v4954_v48  ;;  %6050 = vmatpush3.bf16.msra.mxu0 %v6406_v47  ;;  %v5030_v47 = vld [vmem:[%s6545_s21 + $0x24] sm:$0x3]  ;;  %v4072_v48 = vor.u32 %v4071_v45, %v4067_v44 }
 0x208   : > { %6070 = vmatpush3.bf16.msra.mxu1 %v6407_v49  ;;  %6051 = vmatprep.subr.bf16.mxu0 %v6449_v1 }
 0x209   : > { %6071 = vmatprep.subr.bf16.mxu1 %v6449_v1  ;;  %6065 = vmatprep.mubr.msk.bf16.mxu0 %vm6450_vm0, %v6449_v1 }
 0x20a   : > { %6085 = vmatprep.mubr.msk.bf16.mxu1 %vm6450_vm0, %v6449_v1 }
 0x20b   : > { %6052 = vmatpush3.bf16.msra.mxu0 %v6408_v50 }
 0x20c   : > { %6072 = vmatpush3.bf16.msra.mxu1 %v6409_v51  ;;  %6053 = vmatprep.subr.bf16.mxu0 %v6449_v1 }
 0x20d   : > { %6073 = vmatprep.subr.bf16.mxu1 %v6449_v1 }
 0x20f   : > { %6054 = vmatpush3.bf16.msra.mxu0 %v6410_v52 }
 0x210   : > { %6074 = vmatpush3.bf16.msra.mxu1 %v6411_v53  ;;  %6055 = vmatprep.subr.bf16.mxu0 %v6449_v1 }
 0x211   : > { %6075 = vmatprep.subr.bf16.mxu1 %v6449_v1 }
 0x213   : > { %6056 = vmatpush3.bf16.msra.mxu0 %v6412_v54 }
 0x214   : > { %6076 = vmatpush3.bf16.msra.mxu1 %v6413_v55  ;;  %6057 = vmatprep.subr.bf16.mxu0 %v6449_v1 }
 0x215   : > { %6077 = vmatprep.subr.bf16.mxu1 %v6449_v1 }
 0x217   : > { %6058 = vmatpush3.bf16.msra.mxu0 %v6414_v56 }
 0x218   : > { %6078 = vmatpush3.bf16.msra.mxu1 %v6415_v57  ;;  %6059 = vmatprep.subr.bf16.mxu0 %v6449_v1 }
 0x219   : > { %v2296_v61 = vpop.f32.mrb[36].mxu0  ;;  %6079 = vmatprep.subr.bf16.mxu1 %v6449_v1 }
 0x21a   : > { %v2384_v62 = vpop.f32.mrb[36].mxu1  ;;  %v5787_v63 = vpop.f32.mrb[37].mxu0 }
 0x21b   : > { %v7685_v2 = vadd.f32 %v2384_v62, %v2296_v61  ;;  %v5807_v3 = vpop.f32.mrb[37].mxu1  ;;  %v2299_v4 = vpop.f32.mrb[38].mxu0  ;;  %6060 = vmatpush3.bf16.msra.mxu0 %v6416_v59 }
 0x21c   : > { %v2387_v6 = vpop.f32.mrb[38].mxu1  ;;  %6080 = vmatpush3.bf16.msra.mxu1 %v6417_v60  ;;  %v5788_v7 = vpop.f32.mrb[39].mxu0  ;;  %6061 = vmatprep.subr.bf16.mxu0 %v6449_v1 }
 0x21d   : > { %v5808_v9 = vpop.f32.mrb[39].mxu1  ;;  %6081 = vmatprep.subr.bf16.mxu1 %v6449_v1 }
 0x21f   : > { %6062 = vmatpush3.bf16.msra.mxu0 %v6418_v5 }
 0x220   : > { %6082 = vmatpush3.bf16.msra.mxu1 %v6419_v8  ;;  %6063 = vmatprep.subr.bf16.mxu0 %v6449_v1 }
 0x221   : > { %6083 = vmatprep.subr.bf16.mxu1 %v6449_v1 }
 0x223   : > { %6064 = vmatpush3.bf16.msra.mxu0 %v6420_v12 }
 0x224   : > { %6084 = vmatpush3.bf16.msra.mxu1 %v6421_v13  ;;  %6089 = vmatprep.subr.bf16.mxu0 %v6449_v1 }
 0x225   : > { %6109 = vmatprep.subr.bf16.mxu1 %v6449_v1 }
 0x226   : > { %6066 = vmatmul.mubr.bf16.vlgmr.msra.gmra.mrb[64].mxu0 %v3741_v14 }
 0x227   : > { %6086 = vmatmul.mubr.bf16.vlgmr.msra.gmra.mrb[64].mxu1 %v5005_v16  ;;  %6090 = vmatpush3.bf16.msra.mxu0 %v6423_v15 }
 0x228   : > { %6110 = vmatpush3.bf16.msra.mxu1 %v6424_v17  ;;  %6091 = vmatprep.subr.bf16.mxu0 %v6449_v1 }
 0x229   : > { %6111 = vmatprep.subr.bf16.mxu1 %v6449_v1  ;;  %6105 = vmatprep.mubr.msk.bf16.mxu0 %vm6450_vm0, %v6449_v1 }
 0x22a   : > { %6125 = vmatprep.mubr.msk.bf16.mxu1 %vm6450_vm0, %v6449_v1 }
 0x22b   : > { %6092 = vmatpush3.bf16.msra.mxu0 %v6425_v18 }
 0x22c   : > { %6112 = vmatpush3.bf16.msra.mxu1 %v6426_v19  ;;  %6093 = vmatprep.subr.bf16.mxu0 %v6449_v1 }
 0x22d   : > { %6113 = vmatprep.subr.bf16.mxu1 %v6449_v1 }
 0x22f   : > { %6094 = vmatpush3.bf16.msra.mxu0 %v6427_v20 }
 0x230   : > { %6114 = vmatpush3.bf16.msra.mxu1 %v6428_v21  ;;  %6095 = vmatprep.subr.bf16.mxu0 %v6449_v1 }
 0x231   : > { %6115 = vmatprep.subr.bf16.mxu1 %v6449_v1 }
 0x233   : > { %6096 = vmatpush3.bf16.msra.mxu0 %v6429_v22 }
 0x234   : > { %6116 = vmatpush3.bf16.msra.mxu1 %v6430_v23  ;;  %6097 = vmatprep.subr.bf16.mxu0 %v6449_v1 }
 0x235   : > { %6117 = vmatprep.subr.bf16.mxu1 %v6449_v1 }
 0x237   : > { %6098 = vmatpush3.bf16.msra.mxu0 %v6431_v24 }
 0x238   : > { %6118 = vmatpush3.bf16.msra.mxu1 %v6432_v25  ;;  %6099 = vmatprep.subr.bf16.mxu0 %v6449_v1 }
 0x239   : > { %v2500_v30 = vpop.f32.mrb[40].mxu0  ;;  %6119 = vmatprep.subr.bf16.mxu1 %v6449_v1 }
 0x23a   : > { %v2506_v31 = vadd.f32 %v2500_v30, %v7685_v2  ;;  %v2607_v32 = vpop.f32.mrb[40].mxu1  ;;  %v5827_v33 = vpop.f32.mrb[41].mxu0 }
 0x23b   : > { %v5847_v34 = vpop.f32.mrb[41].mxu1  ;;  %v2503_v35 = vpop.f32.mrb[42].mxu0  ;;  %6100 = vmatpush3.bf16.msra.mxu0 %v6433_v26 }
 0x23c   : > { %v2613_v38 = vadd.f32 %v2607_v32, %v2506_v31  ;;  %v2610_v39 = vpop.f32.mrb[42].mxu1  ;;  %6120 = vmatpush3.bf16.msra.mxu1 %v6434_v29  ;;  %v5828_v40 = vpop.f32.mrb[43].mxu0  ;;  %6101 = vmatprep.subr.bf16.mxu0 %v6449_v1 }
 0x23d   : > { %v5848_v42 = vpop.f32.mrb[43].mxu1  ;;  %6121 = vmatprep.subr.bf16.mxu1 %v6449_v1 }
 0x23f   : > { %6102 = vmatpush3.bf16.msra.mxu0 %v6435_v36 }
 0x240   : > { %6122 = vmatpush3.bf16.msra.mxu1 %v6436_v41  ;;  %6103 = vmatprep.subr.bf16.mxu0 %v6449_v1 }
 0x241   : > { %6123 = vmatprep.subr.bf16.mxu1 %v6449_v1 }
 0x243   : > { %6104 = vmatpush3.bf16.msra.mxu0 %v6437_v43 }
 0x244   : > { %6124 = vmatpush3.bf16.msra.mxu1 %v6438_v46 }
 0x246   : > { %6106 = vmatmul.mubr.bf16.vlgmr.msra.gmra.mrb[68].mxu0 %v5030_v47 }
 0x247   : > { %6126 = vmatmul.mubr.bf16.vlgmr.msra.gmra.mrb[68].mxu1 %v4072_v48 }
 0x259   : > { %v2714_v49 = vpop.f32.mrb[44].mxu0 }
 0x25a   : > { %v2720_v50 = vadd.f32 %v2714_v49, %v2613_v38  ;;  %v2831_v51 = vpop.f32.mrb[44].mxu1  ;;  %v5867_v52 = vpop.f32.mrb[45].mxu0 }
 0x25b   : > { %v5887_v53 = vpop.f32.mrb[45].mxu1  ;;  %v2717_v54 = vpop.f32.mrb[46].mxu0 }
 0x25c   : > { %v2837_v55 = vadd.f32 %v2831_v51, %v2720_v50  ;;  %v2834_v56 = vpop.f32.mrb[46].mxu1  ;;  %v5868_v57 = vpop.f32.mrb[47].mxu0 }
 0x25d   : > { %v5888_v58 = vpop.f32.mrb[47].mxu1  ;;  %v6440_v57 = vld [vmem:[%s7786_s2] ss:$0 sm:$0xff] }
 0x279   : > { %v2938_v59 = vpop.f32.mrb[48].mxu0 }
 0x27a   : > { %v2944_v60 = vadd.f32 %v2938_v59, %v2837_v55  ;;  %v3045_v61 = vpop.f32.mrb[48].mxu1  ;;  %v5907_v1 = vpop.f32.mrb[49].mxu0 }
 0x27b   : > { %v5927_v62 = vpop.f32.mrb[49].mxu1  ;;  %v2941_v63 = vpop.f32.mrb[50].mxu0 }
 0x27c   : > { %v3051_v0 = vadd.f32 %v3045_v61, %v2944_v60  ;;  %v3048_v2 = vpop.f32.mrb[50].mxu1  ;;  %v5908_v3 = vpop.f32.mrb[51].mxu0 }
 0x27d   : > { %v5928_v4 = vpop.f32.mrb[51].mxu1 }
 0x299   : > { %v3162_v5 = vpop.f32.mrb[52].mxu0 }
 0x29a   : > { %v3168_v6 = vadd.f32 %v3162_v5, %v3051_v0  ;;  %v3290_v7 = vpop.f32.mrb[52].mxu1  ;;  %v5947_v8 = vpop.f32.mrb[53].mxu0 }
 0x29b   : > { %v5967_v9 = vpop.f32.mrb[53].mxu1  ;;  %v3165_v10 = vpop.f32.mrb[54].mxu0 }
 0x29c   : > { %v3169_v11 = vadd.f32 %v7319_v27, %v3168_v6  ;;  %v3293_v12 = vpop.f32.mrb[54].mxu1  ;;  %v5948_v13 = vpop.f32.mrb[55].mxu0 }
 0x29d   : > { %v5968_v14 = vpop.f32.mrb[55].mxu1 }
 0x29e   : > { %v3170_v15 = vmax.f32 %v3169_v11, 0.0 }
 0x2a0   : > { %v3171_v16 = vpack.c.bf16 %v3170_v15, %v3170_v15 }
 0x2a2   : > { %4868 = vst [vmem:[%s7337_s13 + $0x4] sm:$0x3] %v3171_v16 }
 0x2b9   : > { %v3378_v17 = vpop.f32.mrb[56].mxu0 }
 0x2ba   : > { %v3379_v18 = vadd.f32 %v3378_v17, %v3290_v7  ;;  %v3494_v19 = vpop.f32.mrb[56].mxu1  ;;  %v5987_v20 = vpop.f32.mrb[57].mxu0 }
 0x2bb   : > { %v6007_v21 = vpop.f32.mrb[57].mxu1  ;;  %v3381_v22 = vpop.f32.mrb[58].mxu0 }
 0x2bc   : > { %v3500_v23 = vadd.f32 %v3494_v19, %v3379_v18  ;;  %v3497_v24 = vpop.f32.mrb[58].mxu1  ;;  %v5988_v25 = vpop.f32.mrb[59].mxu0 }
 0x2bd   : > { %v6008_v26 = vpop.f32.mrb[59].mxu1 }
 0x2d9   : > { %v3601_v28 = vpop.f32.mrb[60].mxu0 }
 0x2da   : > { %v3607_v29 = vadd.f32 %v3601_v28, %v3500_v23  ;;  %v3708_v30 = vpop.f32.mrb[60].mxu1  ;;  %v6027_v27 = vpop.f32.mrb[61].mxu0 }
 0x2db   : > { %v6047_v31 = vpop.f32.mrb[61].mxu1  ;;  %v3604_v32 = vpop.f32.mrb[62].mxu0 }
 0x2dc   : > { %v3714_v33 = vadd.f32 %v3708_v30, %v3607_v29  ;;  %v3711_v34 = vpop.f32.mrb[62].mxu1  ;;  %v6028_v35 = vpop.f32.mrb[63].mxu0 }
 0x2dd   : > { %v6048_v36 = vpop.f32.mrb[63].mxu1 }
 0x2f9   : > { %v3825_v37 = vpop.f32.mrb[64].mxu0 }
 0x2fa   : > { %v3831_v38 = vadd.f32 %v3825_v37, %v3714_v33  ;;  %v3932_v39 = vpop.f32.mrb[64].mxu1  ;;  %v6067_v40 = vpop.f32.mrb[65].mxu0 }
 0x2fb   : > { %v6087_v41 = vpop.f32.mrb[65].mxu1  ;;  %v3828_v42 = vpop.f32.mrb[66].mxu0 }
 0x2fc   : > { %v3938_v43 = vadd.f32 %v3932_v39, %v3831_v38  ;;  %v3935_v44 = vpop.f32.mrb[66].mxu1  ;;  %v6068_v45 = vpop.f32.mrb[67].mxu0 }
 0x2fd   : > { %v6088_v46 = vpop.f32.mrb[67].mxu1 }
 0x319   : > { %v4039_v47 = vpop.f32.mrb[68].mxu0 }
 0x31a   : > { %v4045_v48 = vadd.f32 %v4039_v47, %v3938_v43  ;;  %v4156_v49 = vpop.f32.mrb[68].mxu1  ;;  %v6107_v50 = vpop.f32.mrb[69].mxu0 }
 0x31b   : > { %v6127_v51 = vpop.f32.mrb[69].mxu1  ;;  %v4042_v52 = vpop.f32.mrb[70].mxu0 }
 0x31c   : > { %v4162_v53 = vadd.f32 %v4156_v49, %v4045_v48  ;;  %v4159_v54 = vpop.f32.mrb[70].mxu1  ;;  %v6108_v55 = vpop.f32.mrb[71].mxu0 }
 0x31d   : > { %v6128_v56 = vpop.f32.mrb[71].mxu1 }
 0x31e   : > { %v4163_v58 = vadd.f32 %v6440_v57, %v4162_v53 }
 0x320   : > { %v4164_v59 = vmax.f32 %v4163_v58, 0.0 }
 0x322   : > { %v4165_v60 = vpack.c.bf16 %v4164_v59, %v4164_v59 }
 0x324   : > { %5081 = vst [vmem:[%s7337_s13 + $0x6] sm:$0x3] %v4165_v60 }
 0x325 PF: > { %s13_s12 = sadd.s32 1, %s6447_s12  }
 0x326   : > { %p10_p5 = scmp.ge.s32.totalorder %s13_s12, 4  }
 0x328   :  { %12 = sbr.rel (!%p10_p5) target bundleno = 1 (0x1), region = 90 }

</bundles_post_ra>
